<compile_context>
chip_gen: v6e
topology: v6e:2x2x1
jax: 0.10.0
libtpu: 0.0.40
codegen_flags: <defaults>
</compile_context>

<pallas_src>
import functools

import jax
import jax.numpy as jnp
from jax import lax
from jax.experimental import pallas as pl
from jax.experimental.pallas import tpu as pltpu

_LN_EPS = 1e-5        # torch.nn.LayerNorm default eps
_TILE_BATCH = 512     # batch rows per grid step (halve on v7x if VMEM-bound)


def _round_up(n: int, m: int) -> int:
    return ((n + m - 1) // m) * m


def _layernorm_1pass(h, gamma, beta):
    """LayerNorm over the last axis with one-pass (E[x], E[x^2]) statistics."""
    mu = jnp.mean(h, axis=-1, keepdims=True)
    ex2 = jnp.mean(h * h, axis=-1, keepdims=True)
    var = ex2 - mu * mu
    return (h - mu) * lax.rsqrt(var + _LN_EPS) * gamma + beta


def _ms_siren_kernel(x_ref, w1_ref, b1_ref, g0_ref, bt0_ref,
                     wh_ref, bh_ref, gh_ref, bth_ref,
                     g_head_ref, bt_head_ref, w_head_ref, b_head_ref,
                     o_ref, *, num_scales, num_hidden_layers, dim_hidden):
    S, Lh, H = num_scales, num_hidden_layers, dim_hidden
    x = x_ref[...].astype(jnp.float32)                              # [TB, D]

    # ---- Layer 0 of every scale branch as ONE lane-dense GEMM --------------
    # w1 = [s0*W0 | s0*Wr0 | s1*W1 | s1*Wr1 | ...]   -> hcat: [TB, S*2H]
    hcat = jnp.dot(x, w1_ref[...], preferred_element_type=jnp.float32)
    hcat = hcat + b1_ref[...]

    ys = []
    for s in range(S):
        blk = hcat[:, s * 2 * H:(s + 1) * 2 * H]                    # [TB, 2H]
        h, skip = blk[:, :H], blk[:, H:]
        ys.append(jnp.sin(_layernorm_1pass(h, g0_ref[s], bt0_ref[s])) + skip)

    # ---- Hidden layers (identity skip); weights stay VMEM-resident ---------
    for l in range(Lh):
        for s in range(S):
            idx = s * Lh + l
            h = jnp.dot(ys[s], wh_ref[idx], preferred_element_type=jnp.float32)
            h = h + bh_ref[idx]
            ys[s] = jnp.sin(_layernorm_1pass(h, gh_ref[idx], bth_ref[idx])) + ys[s]

    # ---- Mean over scale branches -------------------------------------------
    acc = ys[0]
    for s in range(1, S):
        acc = acc + ys[s]
    x_out = acc * (1.0 / S)                                          # [TB, H]

    # ---- Head: LayerNorm -> sin -> Linear ------------------------------------
    a = jnp.sin(_layernorm_1pass(x_out, g_head_ref[...], bt_head_ref[...]))
    out = jnp.dot(a, w_head_ref[...], preferred_element_type=jnp.float32)
    o_ref[...] = (out + b_head_ref[...]).astype(o_ref.dtype)


def _const_spec(arr):
    """Full-array block with a constant index_map -> DMA'd once, VMEM-resident."""
    nd = arr.ndim
    return pl.BlockSpec(arr.shape, lambda i, _nd=nd: (0,) * _nd)


@jax.jit
def ms_siren_forward(x, packed):
    """x: [batch, dim_input] -> [batch, dim_output].

    (The PyTorch forward returns (output, None); the None is dropped.)
    """
    B, D = x.shape
    S = packed["g0"].shape[0]
    H = packed["g_head"].shape[-1]
    Dout = packed["w_head"].shape[-1]
    Lh = packed["wh"].shape[0] // S

    tb = max(8, min(_TILE_BATCH, _round_up(B, 8)))   # multiple of 8
    Bp = _round_up(B, tb)
    xp = x if Bp == B else jnp.pad(x, ((0, Bp - B), (0, 0)))

    param_list = [packed["w1"], packed["b1"], packed["g0"], packed["bt0"],
                  packed["wh"], packed["bh"], packed["gh"], packed["bth"],
                  packed["g_head"], packed["bt_head"],
                  packed["w_head"], packed["b_head"]]

    kernel = functools.partial(_ms_siren_kernel, num_scales=S,
                               num_hidden_layers=Lh, dim_hidden=H)
    out = pl.pallas_call(
        kernel,
        grid=(Bp // tb,),
        in_specs=[pl.BlockSpec((tb, D), lambda i: (i, 0))]
                 + [_const_spec(p) for p in param_list],
        out_specs=pl.BlockSpec((tb, Dout), lambda i: (i, 0)),
        out_shape=jax.ShapeDtypeStruct((Bp, Dout), jnp.float32),
        compiler_params=pltpu.CompilerParams(
            dimension_semantics=("parallel",)),
    )(xp, *param_list)
    return out[:B]


# --------------------------------------------------------------------------- #
# Parameter construction (PyTorch-like shapes) and packing for the kernel.
# nn.Linear weights are stored transposed as [in, out] so x @ W + b applies.
# --------------------------------------------------------------------------- #
def init_params(key, num_layers, dim_input, dim_hidden, dim_output, scales):
    branches = []
    for _ in range(len(scales)):
        layers = []
        for i in range(num_layers):
            d_in = dim_input if i == 0 else dim_hidden
            key, k1, k2, k3, k4, k5, k6 = jax.random.split(key, 7)
            bound = 1.0 / (d_in ** 0.5)
            layer = {
                "w": jax.random.uniform(k1, (d_in, dim_hidden), jnp.float32,
                                        -bound, bound),
                "b": jax.random.uniform(k2, (1, dim_hidden), jnp.float32,
                                        -bound, bound),
                "gamma": 1.0 + 0.1 * jax.random.normal(k5, (1, dim_hidden),
                                                       jnp.float32),
                "beta": 0.1 * jax.random.normal(k6, (1, dim_hidden),
                                                jnp.float32),
            }
            if i == 0 and dim_input != dim_hidden:   # reshape_layer = Linear
                layer["wr"] = jax.random.uniform(k3, (d_in, dim_hidden),
                                                 jnp.float32, -bound, bound)
                layer["br"] = jax.random.uniform(k4, (1, dim_hidden),
                                                 jnp.float32, -bound, bound)
            layers.append(layer)
        branches.append(layers)
    key, kw, kb, kg, kbt = jax.random.split(key, 5)
    hb = 1.0 / (dim_hidden ** 0.5)
    head = {
        "gamma": 1.0 + 0.1 * jax.random.normal(kg, (1, dim_hidden), jnp.float32),
        "beta": 0.1 * jax.random.normal(kbt, (1, dim_hidden), jnp.float32),
        "w": jax.random.uniform(kw, (dim_hidden, dim_output), jnp.float32,
                                -hb, hb),
        "b": jax.random.uniform(kb, (1, dim_output), jnp.float32, -hb, hb),
    }
    return branches, head


def pack_params(branches, head, scales, dim_input, dim_hidden, num_layers):
    S, H, D = len(scales), dim_hidden, dim_input
    Lh = num_layers - 1
    # Layer 0: fold the ScalingLayer into the weights and merge [W | Wr] of all
    # scales into one [D, S*2H] matrix (exact for power-of-two scales).
    w1_blocks, b1_blocks, g0_l, bt0_l = [], [], [], []
    for s in range(S):
        p0 = branches[s][0]
        if "wr" in p0:
            wr, br = p0["wr"], p0["br"]
        else:                      # identity skip when dim_input == dim_hidden
            wr = jnp.eye(D, H, dtype=jnp.float32)
            br = jnp.zeros((1, H), jnp.float32)
        w1_blocks.append(jnp.concatenate([scales[s] * p0["w"],
                                          scales[s] * wr], axis=1))
        b1_blocks.append(jnp.concatenate([p0["b"], br], axis=1))
        g0_l.append(p0["gamma"])
        bt0_l.append(p0["beta"])
    w1 = jnp.concatenate(w1_blocks, axis=1)          # [D, S*2H]
    b1 = jnp.concatenate(b1_blocks, axis=1)          # [1, S*2H]
    g0 = jnp.stack(g0_l, axis=0)                     # [S, 1, H]
    bt0 = jnp.stack(bt0_l, axis=0)
    # Hidden layers, stacked as [S*Lh, ...] indexed by s*Lh + l.
    wh, bh, gh, bth = [], [], [], []
    for s in range(S):
        for l in range(Lh):
            p = branches[s][l + 1]
            wh.append(p["w"]); bh.append(p["b"])
            gh.append(p["gamma"]); bth.append(p["beta"])
    packed = dict(
        w1=w1, b1=b1, g0=g0, bt0=bt0,
        wh=jnp.stack(wh, 0), bh=jnp.stack(bh, 0),
        gh=jnp.stack(gh, 0), bth=jnp.stack(bth, 0),
        g_head=head["gamma"], bt_head=head["beta"],
        w_head=head["w"], b_head=head["b"])
    return packed


# --------------------------------------------------------------------------- #
# Pure-JAX reference mirroring the PyTorch module.
# --------------------------------------------------------------------------- #
def _layernorm_ref(h, gamma, beta):
    mu = jnp.mean(h, axis=-1, keepdims=True)
    var = jnp.mean((h - mu) ** 2, axis=-1, keepdims=True)
    return (h - mu) / jnp.sqrt(var + _LN_EPS) * gamma + beta


def ms_siren_reference(x, scales, branches, head):
    feats = []
    for s, scale in enumerate(scales):
        xs = scale * x
        p0 = branches[s][0]
        h = xs @ p0["w"] + p0["b"]
        y = jnp.sin(_layernorm_ref(h, p0["gamma"], p0["beta"])) \
            + (xs @ p0["wr"] + p0["br"])
        for lp in branches[s][1:]:
            h = y @ lp["w"] + lp["b"]
            y = jnp.sin(_layernorm_ref(h, lp["gamma"], lp["beta"])) + y
        feats.append(y)
    x_out = jnp.mean(jnp.stack(feats, axis=1), axis=1)
    a = jnp.sin(_layernorm_ref(x_out, head["gamma"], head["beta"]))
    return a @ head["w"] + head["b"]


if __name__ == "__main__":
    num_layers = 3
    dim_input = 4
    dim_hidden = 64
    dim_output = 2
    scales = [1.0, 2.0, 4.0, 8.0]       # MSSIREN default
    batch = 10                           # exercises batch padding (tile = 16)

    key = jax.random.PRNGKey(0)
    kx, kp = jax.random.split(key)
    x = jax.random.normal(kx, (batch, dim_input), jnp.float32)
    branches, head = init_params(kp, num_layers, dim_input, dim_hidden,
                                 dim_output, scales)
    packed = pack_params(branches, head, scales, dim_input, dim_hidden,
                         num_layers)

    out = ms_siren_forward(x, packed)
    out = jax.block_until_ready(out)

    ref = ms_siren_reference(x, scales, branches, head)
    assert out.shape == (batch, dim_output), out.shape
    max_err = float(jnp.max(jnp.abs(out - ref)))
    assert jnp.allclose(out, ref, atol=2e-4, rtol=2e-4), \
        f"mismatch vs reference, max abs err={max_err}"

    print("KERNEL_OK")
</pallas_src>

<mosaic_0001>
module attributes {stable_mosaic.version = 11 : i64} {
  func.func @_ms_siren_kernel(%arg0: i32, %arg1: memref<16x4xf32, #tpu.memory_space<vmem>>, %arg2: memref<4x512xf32, #tpu.memory_space<vmem>>, %arg3: memref<1x512xf32, #tpu.memory_space<vmem>>, %arg4: memref<4x1x64xf32, #tpu.memory_space<vmem>>, %arg5: memref<4x1x64xf32, #tpu.memory_space<vmem>>, %arg6: memref<8x64x64xf32, #tpu.memory_space<vmem>>, %arg7: memref<8x1x64xf32, #tpu.memory_space<vmem>>, %arg8: memref<8x1x64xf32, #tpu.memory_space<vmem>>, %arg9: memref<8x1x64xf32, #tpu.memory_space<vmem>>, %arg10: memref<1x64xf32, #tpu.memory_space<vmem>>, %arg11: memref<1x64xf32, #tpu.memory_space<vmem>>, %arg12: memref<64x2xf32, #tpu.memory_space<vmem>>, %arg13: memref<1x2xf32, #tpu.memory_space<vmem>>, %arg14: memref<16x2xf32, #tpu.memory_space<vmem>>) attributes {dimension_semantics = [#tpu.dimension_semantics<parallel>], iteration_bounds = array<i64: 1>, scalar_prefetch = 0 : i64, scratch_operands = 0 : i64, tpu.core_type = #tpu.core_type<tc>, window_params = [{transform_indices = @transform_0, window_bounds = array<i64: 16, 4>}, {pipeline_mode = #tpu.pipeline_mode<synchronous>, transform_indices = @transform_1, window_bounds = array<i64: 4, 512>}, {pipeline_mode = #tpu.pipeline_mode<synchronous>, transform_indices = @transform_2, window_bounds = array<i64: 1, 512>}, {pipeline_mode = #tpu.pipeline_mode<synchronous>, transform_indices = @transform_3, window_bounds = array<i64: 4, 1, 64>}, {pipeline_mode = #tpu.pipeline_mode<synchronous>, transform_indices = @transform_4, window_bounds = array<i64: 4, 1, 64>}, {pipeline_mode = #tpu.pipeline_mode<synchronous>, transform_indices = @transform_5, window_bounds = array<i64: 8, 64, 64>}, {pipeline_mode = #tpu.pipeline_mode<synchronous>, transform_indices = @transform_6, window_bounds = array<i64: 8, 1, 64>}, {pipeline_mode = #tpu.pipeline_mode<synchronous>, transform_indices = @transform_7, window_bounds = array<i64: 8, 1, 64>}, {pipeline_mode = #tpu.pipeline_mode<synchronous>, transform_indices = @transform_8, window_bounds = array<i64: 8, 1, 64>}, {pipeline_mode = #tpu.pipeline_mode<synchronous>, transform_indices = @transform_9, window_bounds = array<i64: 1, 64>}, {pipeline_mode = #tpu.pipeline_mode<synchronous>, transform_indices = @transform_10, window_bounds = array<i64: 1, 64>}, {pipeline_mode = #tpu.pipeline_mode<synchronous>, transform_indices = @transform_11, window_bounds = array<i64: 64, 2>}, {pipeline_mode = #tpu.pipeline_mode<synchronous>, transform_indices = @transform_12, window_bounds = array<i64: 1, 2>}, {transform_indices = @transform_13, window_bounds = array<i64: 16, 2>}]} {
    %c0 = arith.constant 0 : index
    %c0_0 = arith.constant 0 : index
    %0 = vector.load %arg1[%c0, %c0_0] : memref<16x4xf32, #tpu.memory_space<vmem>>, vector<16x4xf32>
    %c0_1 = arith.constant 0 : index
    %c0_2 = arith.constant 0 : index
    %1 = vector.load %arg2[%c0_1, %c0_2] : memref<4x512xf32, #tpu.memory_space<vmem>>, vector<4x512xf32>
    %cst = arith.constant dense<0.000000e+00> : vector<16x512xf32>
    %2 = tpu.matmul %0, %1, %cst {dimension_numbers = #tpu.dot_dimension_numbers<[1], [0], [0], [1], [0, 0, 1, 1], [], []>} : vector<16x4xf32>, vector<4x512xf32>, vector<16x512xf32> -> vector<16x512xf32>
    %c0_3 = arith.constant 0 : index
    %c0_4 = arith.constant 0 : index
    %3 = vector.load %arg3[%c0_3, %c0_4] : memref<1x512xf32, #tpu.memory_space<vmem>>, vector<1x512xf32>
    %4 = vector.broadcast %3 : vector<1x512xf32> to vector<16x512xf32>
    %5 = arith.addf %2, %4 : vector<16x512xf32>
    %6 = vector.extract_strided_slice %5 {offsets = [0, 0], sizes = [16, 128], strides = [1, 1]} : vector<16x512xf32> to vector<16x128xf32>
    %7 = vector.extract_strided_slice %6 {offsets = [0, 0], sizes = [16, 64], strides = [1, 1]} : vector<16x128xf32> to vector<16x64xf32>
    %8 = vector.extract_strided_slice %6 {offsets = [0, 64], sizes = [16, 64], strides = [1, 1]} : vector<16x128xf32> to vector<16x64xf32>
    %c0_5 = arith.constant 0 : index
    %c0_6 = arith.constant 0 : index
    %c0_7 = arith.constant 0 : index
    %9 = vector.load %arg4[%c0_5, %c0_6, %c0_7] : memref<4x1x64xf32, #tpu.memory_space<vmem>>, vector<1x1x64xf32>
    %10 = vector.shape_cast %9 : vector<1x1x64xf32> to vector<1x64xf32>
    %c0_8 = arith.constant 0 : index
    %c0_9 = arith.constant 0 : index
    %c0_10 = arith.constant 0 : index
    %11 = vector.load %arg5[%c0_8, %c0_9, %c0_10] : memref<4x1x64xf32, #tpu.memory_space<vmem>>, vector<1x1x64xf32>
    %12 = vector.shape_cast %11 : vector<1x1x64xf32> to vector<1x64xf32>
    %cst_11 = arith.constant dense<0.000000e+00> : vector<16xf32>
    %13 = vector.multi_reduction <add>, %7, %cst_11 [1] : vector<16x64xf32> to vector<16xf32>
    %14 = vector.shape_cast %13 : vector<16xf32> to vector<16x1xf32>
    %cst_12 = arith.constant 6.400000e+01 : f32
    %15 = vector.broadcast %cst_12 : f32 to vector<16x1xf32>
    %16 = arith.divf %14, %15 : vector<16x1xf32>
    %17 = arith.mulf %7, %7 : vector<16x64xf32>
    %cst_13 = arith.constant dense<0.000000e+00> : vector<16xf32>
    %18 = vector.multi_reduction <add>, %17, %cst_13 [1] : vector<16x64xf32> to vector<16xf32>
    %19 = vector.shape_cast %18 : vector<16xf32> to vector<16x1xf32>
    %cst_14 = arith.constant 6.400000e+01 : f32
    %20 = vector.broadcast %cst_14 : f32 to vector<16x1xf32>
    %21 = arith.divf %19, %20 : vector<16x1xf32>
    %22 = arith.mulf %16, %16 : vector<16x1xf32>
    %23 = arith.subf %21, %22 : vector<16x1xf32>
    %24 = vector.broadcast %16 : vector<16x1xf32> to vector<16x64xf32>
    %25 = arith.subf %7, %24 : vector<16x64xf32>
    %cst_15 = arith.constant 9.99999974E-6 : f32
    %26 = vector.broadcast %cst_15 : f32 to vector<16x1xf32>
    %27 = arith.addf %23, %26 : vector<16x1xf32>
    %28 = math.rsqrt %27 : vector<16x1xf32>
    %29 = vector.broadcast %28 : vector<16x1xf32> to vector<16x64xf32>
    %30 = arith.mulf %25, %29 : vector<16x64xf32>
    %31 = vector.broadcast %10 : vector<1x64xf32> to vector<16x64xf32>
    %32 = arith.mulf %30, %31 : vector<16x64xf32>
    %33 = vector.broadcast %12 : vector<1x64xf32> to vector<16x64xf32>
    %34 = arith.addf %32, %33 : vector<16x64xf32>
    %35 = math.sin %34 : vector<16x64xf32>
    %36 = arith.addf %35, %8 : vector<16x64xf32>
    %37 = vector.extract_strided_slice %5 {offsets = [0, 128], sizes = [16, 128], strides = [1, 1]} : vector<16x512xf32> to vector<16x128xf32>
    %38 = vector.extract_strided_slice %37 {offsets = [0, 0], sizes = [16, 64], strides = [1, 1]} : vector<16x128xf32> to vector<16x64xf32>
    %39 = vector.extract_strided_slice %37 {offsets = [0, 64], sizes = [16, 64], strides = [1, 1]} : vector<16x128xf32> to vector<16x64xf32>
    %c1 = arith.constant 1 : index
    %c0_16 = arith.constant 0 : index
    %c0_17 = arith.constant 0 : index
    %40 = vector.load %arg4[%c1, %c0_16, %c0_17] : memref<4x1x64xf32, #tpu.memory_space<vmem>>, vector<1x1x64xf32>
    %41 = vector.shape_cast %40 : vector<1x1x64xf32> to vector<1x64xf32>
    %c1_18 = arith.constant 1 : index
    %c0_19 = arith.constant 0 : index
    %c0_20 = arith.constant 0 : index
    %42 = vector.load %arg5[%c1_18, %c0_19, %c0_20] : memref<4x1x64xf32, #tpu.memory_space<vmem>>, vector<1x1x64xf32>
    %43 = vector.shape_cast %42 : vector<1x1x64xf32> to vector<1x64xf32>
    %cst_21 = arith.constant dense<0.000000e+00> : vector<16xf32>
    %44 = vector.multi_reduction <add>, %38, %cst_21 [1] : vector<16x64xf32> to vector<16xf32>
    %45 = vector.shape_cast %44 : vector<16xf32> to vector<16x1xf32>
    %cst_22 = arith.constant 6.400000e+01 : f32
    %46 = vector.broadcast %cst_22 : f32 to vector<16x1xf32>
    %47 = arith.divf %45, %46 : vector<16x1xf32>
    %48 = arith.mulf %38, %38 : vector<16x64xf32>
    %cst_23 = arith.constant dense<0.000000e+00> : vector<16xf32>
    %49 = vector.multi_reduction <add>, %48, %cst_23 [1] : vector<16x64xf32> to vector<16xf32>
    %50 = vector.shape_cast %49 : vector<16xf32> to vector<16x1xf32>
    %cst_24 = arith.constant 6.400000e+01 : f32
    %51 = vector.broadcast %cst_24 : f32 to vector<16x1xf32>
    %52 = arith.divf %50, %51 : vector<16x1xf32>
    %53 = arith.mulf %47, %47 : vector<16x1xf32>
    %54 = arith.subf %52, %53 : vector<16x1xf32>
    %55 = vector.broadcast %47 : vector<16x1xf32> to vector<16x64xf32>
    %56 = arith.subf %38, %55 : vector<16x64xf32>
    %cst_25 = arith.constant 9.99999974E-6 : f32
    %57 = vector.broadcast %cst_25 : f32 to vector<16x1xf32>
    %58 = arith.addf %54, %57 : vector<16x1xf32>
    %59 = math.rsqrt %58 : vector<16x1xf32>
    %60 = vector.broadcast %59 : vector<16x1xf32> to vector<16x64xf32>
    %61 = arith.mulf %56, %60 : vector<16x64xf32>
    %62 = vector.broadcast %41 : vector<1x64xf32> to vector<16x64xf32>
    %63 = arith.mulf %61, %62 : vector<16x64xf32>
    %64 = vector.broadcast %43 : vector<1x64xf32> to vector<16x64xf32>
    %65 = arith.addf %63, %64 : vector<16x64xf32>
    %66 = math.sin %65 : vector<16x64xf32>
    %67 = arith.addf %66, %39 : vector<16x64xf32>
    %68 = vector.extract_strided_slice %5 {offsets = [0, 256], sizes = [16, 128], strides = [1, 1]} : vector<16x512xf32> to vector<16x128xf32>
    %69 = vector.extract_strided_slice %68 {offsets = [0, 0], sizes = [16, 64], strides = [1, 1]} : vector<16x128xf32> to vector<16x64xf32>
    %70 = vector.extract_strided_slice %68 {offsets = [0, 64], sizes = [16, 64], strides = [1, 1]} : vector<16x128xf32> to vector<16x64xf32>
    %c2 = arith.constant 2 : index
    %c0_26 = arith.constant 0 : index
    %c0_27 = arith.constant 0 : index
    %71 = vector.load %arg4[%c2, %c0_26, %c0_27] : memref<4x1x64xf32, #tpu.memory_space<vmem>>, vector<1x1x64xf32>
    %72 = vector.shape_cast %71 : vector<1x1x64xf32> to vector<1x64xf32>
    %c2_28 = arith.constant 2 : index
    %c0_29 = arith.constant 0 : index
    %c0_30 = arith.constant 0 : index
    %73 = vector.load %arg5[%c2_28, %c0_29, %c0_30] : memref<4x1x64xf32, #tpu.memory_space<vmem>>, vector<1x1x64xf32>
    %74 = vector.shape_cast %73 : vector<1x1x64xf32> to vector<1x64xf32>
    %cst_31 = arith.constant dense<0.000000e+00> : vector<16xf32>
    %75 = vector.multi_reduction <add>, %69, %cst_31 [1] : vector<16x64xf32> to vector<16xf32>
    %76 = vector.shape_cast %75 : vector<16xf32> to vector<16x1xf32>
    %cst_32 = arith.constant 6.400000e+01 : f32
    %77 = vector.broadcast %cst_32 : f32 to vector<16x1xf32>
    %78 = arith.divf %76, %77 : vector<16x1xf32>
    %79 = arith.mulf %69, %69 : vector<16x64xf32>
    %cst_33 = arith.constant dense<0.000000e+00> : vector<16xf32>
    %80 = vector.multi_reduction <add>, %79, %cst_33 [1] : vector<16x64xf32> to vector<16xf32>
    %81 = vector.shape_cast %80 : vector<16xf32> to vector<16x1xf32>
    %cst_34 = arith.constant 6.400000e+01 : f32
    %82 = vector.broadcast %cst_34 : f32 to vector<16x1xf32>
    %83 = arith.divf %81, %82 : vector<16x1xf32>
    %84 = arith.mulf %78, %78 : vector<16x1xf32>
    %85 = arith.subf %83, %84 : vector<16x1xf32>
    %86 = vector.broadcast %78 : vector<16x1xf32> to vector<16x64xf32>
    %87 = arith.subf %69, %86 : vector<16x64xf32>
    %cst_35 = arith.constant 9.99999974E-6 : f32
    %88 = vector.broadcast %cst_35 : f32 to vector<16x1xf32>
    %89 = arith.addf %85, %88 : vector<16x1xf32>
    %90 = math.rsqrt %89 : vector<16x1xf32>
    %91 = vector.broadcast %90 : vector<16x1xf32> to vector<16x64xf32>
    %92 = arith.mulf %87, %91 : vector<16x64xf32>
    %93 = vector.broadcast %72 : vector<1x64xf32> to vector<16x64xf32>
    %94 = arith.mulf %92, %93 : vector<16x64xf32>
    %95 = vector.broadcast %74 : vector<1x64xf32> to vector<16x64xf32>
    %96 = arith.addf %94, %95 : vector<16x64xf32>
    %97 = math.sin %96 : vector<16x64xf32>
    %98 = arith.addf %97, %70 : vector<16x64xf32>
    %99 = vector.extract_strided_slice %5 {offsets = [0, 384], sizes = [16, 128], strides = [1, 1]} : vector<16x512xf32> to vector<16x128xf32>
    %100 = vector.extract_strided_slice %99 {offsets = [0, 0], sizes = [16, 64], strides = [1, 1]} : vector<16x128xf32> to vector<16x64xf32>
    %101 = vector.extract_strided_slice %99 {offsets = [0, 64], sizes = [16, 64], strides = [1, 1]} : vector<16x128xf32> to vector<16x64xf32>
    %c3 = arith.constant 3 : index
    %c0_36 = arith.constant 0 : index
    %c0_37 = arith.constant 0 : index
    %102 = vector.load %arg4[%c3, %c0_36, %c0_37] : memref<4x1x64xf32, #tpu.memory_space<vmem>>, vector<1x1x64xf32>
    %103 = vector.shape_cast %102 : vector<1x1x64xf32> to vector<1x64xf32>
    %c3_38 = arith.constant 3 : index
    %c0_39 = arith.constant 0 : index
    %c0_40 = arith.constant 0 : index
    %104 = vector.load %arg5[%c3_38, %c0_39, %c0_40] : memref<4x1x64xf32, #tpu.memory_space<vmem>>, vector<1x1x64xf32>
    %105 = vector.shape_cast %104 : vector<1x1x64xf32> to vector<1x64xf32>
    %cst_41 = arith.constant dense<0.000000e+00> : vector<16xf32>
    %106 = vector.multi_reduction <add>, %100, %cst_41 [1] : vector<16x64xf32> to vector<16xf32>
    %107 = vector.shape_cast %106 : vector<16xf32> to vector<16x1xf32>
    %cst_42 = arith.constant 6.400000e+01 : f32
    %108 = vector.broadcast %cst_42 : f32 to vector<16x1xf32>
    %109 = arith.divf %107, %108 : vector<16x1xf32>
    %110 = arith.mulf %100, %100 : vector<16x64xf32>
    %cst_43 = arith.constant dense<0.000000e+00> : vector<16xf32>
    %111 = vector.multi_reduction <add>, %110, %cst_43 [1] : vector<16x64xf32> to vector<16xf32>
    %112 = vector.shape_cast %111 : vector<16xf32> to vector<16x1xf32>
    %cst_44 = arith.constant 6.400000e+01 : f32
    %113 = vector.broadcast %cst_44 : f32 to vector<16x1xf32>
    %114 = arith.divf %112, %113 : vector<16x1xf32>
    %115 = arith.mulf %109, %109 : vector<16x1xf32>
    %116 = arith.subf %114, %115 : vector<16x1xf32>
    %117 = vector.broadcast %109 : vector<16x1xf32> to vector<16x64xf32>
    %118 = arith.subf %100, %117 : vector<16x64xf32>
    %cst_45 = arith.constant 9.99999974E-6 : f32
    %119 = vector.broadcast %cst_45 : f32 to vector<16x1xf32>
    %120 = arith.addf %116, %119 : vector<16x1xf32>
    %121 = math.rsqrt %120 : vector<16x1xf32>
    %122 = vector.broadcast %121 : vector<16x1xf32> to vector<16x64xf32>
    %123 = arith.mulf %118, %122 : vector<16x64xf32>
    %124 = vector.broadcast %103 : vector<1x64xf32> to vector<16x64xf32>
    %125 = arith.mulf %123, %124 : vector<16x64xf32>
    %126 = vector.broadcast %105 : vector<1x64xf32> to vector<16x64xf32>
    %127 = arith.addf %125, %126 : vector<16x64xf32>
    %128 = math.sin %127 : vector<16x64xf32>
    %129 = arith.addf %128, %101 : vector<16x64xf32>
    %c0_46 = arith.constant 0 : index
    %c0_47 = arith.constant 0 : index
    %c0_48 = arith.constant 0 : index
    %130 = vector.load %arg6[%c0_46, %c0_47, %c0_48] : memref<8x64x64xf32, #tpu.memory_space<vmem>>, vector<1x64x64xf32>
    %131 = vector.shape_cast %130 : vector<1x64x64xf32> to vector<64x64xf32>
    %cst_49 = arith.constant dense<0.000000e+00> : vector<16x64xf32>
    %132 = tpu.matmul %36, %131, %cst_49 {dimension_numbers = #tpu.dot_dimension_numbers<[1], [0], [0], [1], [0, 0, 1, 1], [], []>} : vector<16x64xf32>, vector<64x64xf32>, vector<16x64xf32> -> vector<16x64xf32>
    %c0_50 = arith.constant 0 : index
    %c0_51 = arith.constant 0 : index
    %c0_52 = arith.constant 0 : index
    %133 = vector.load %arg7[%c0_50, %c0_51, %c0_52] : memref<8x1x64xf32, #tpu.memory_space<vmem>>, vector<1x1x64xf32>
    %134 = vector.shape_cast %133 : vector<1x1x64xf32> to vector<1x64xf32>
    %135 = vector.broadcast %134 : vector<1x64xf32> to vector<16x64xf32>
    %136 = arith.addf %132, %135 : vector<16x64xf32>
    %c0_53 = arith.constant 0 : index
    %c0_54 = arith.constant 0 : index
    %c0_55 = arith.constant 0 : index
    %137 = vector.load %arg8[%c0_53, %c0_54, %c0_55] : memref<8x1x64xf32, #tpu.memory_space<vmem>>, vector<1x1x64xf32>
    %138 = vector.shape_cast %137 : vector<1x1x64xf32> to vector<1x64xf32>
    %c0_56 = arith.constant 0 : index
    %c0_57 = arith.constant 0 : index
    %c0_58 = arith.constant 0 : index
    %139 = vector.load %arg9[%c0_56, %c0_57, %c0_58] : memref<8x1x64xf32, #tpu.memory_space<vmem>>, vector<1x1x64xf32>
    %140 = vector.shape_cast %139 : vector<1x1x64xf32> to vector<1x64xf32>
    %cst_59 = arith.constant dense<0.000000e+00> : vector<16xf32>
    %141 = vector.multi_reduction <add>, %136, %cst_59 [1] : vector<16x64xf32> to vector<16xf32>
    %142 = vector.shape_cast %141 : vector<16xf32> to vector<16x1xf32>
    %cst_60 = arith.constant 6.400000e+01 : f32
    %143 = vector.broadcast %cst_60 : f32 to vector<16x1xf32>
    %144 = arith.divf %142, %143 : vector<16x1xf32>
    %145 = arith.mulf %136, %136 : vector<16x64xf32>
    %cst_61 = arith.constant dense<0.000000e+00> : vector<16xf32>
    %146 = vector.multi_reduction <add>, %145, %cst_61 [1] : vector<16x64xf32> to vector<16xf32>
    %147 = vector.shape_cast %146 : vector<16xf32> to vector<16x1xf32>
    %cst_62 = arith.constant 6.400000e+01 : f32
    %148 = vector.broadcast %cst_62 : f32 to vector<16x1xf32>
    %149 = arith.divf %147, %148 : vector<16x1xf32>
    %150 = arith.mulf %144, %144 : vector<16x1xf32>
    %151 = arith.subf %149, %150 : vector<16x1xf32>
    %152 = vector.broadcast %144 : vector<16x1xf32> to vector<16x64xf32>
    %153 = arith.subf %136, %152 : vector<16x64xf32>
    %cst_63 = arith.constant 9.99999974E-6 : f32
    %154 = vector.broadcast %cst_63 : f32 to vector<16x1xf32>
    %155 = arith.addf %151, %154 : vector<16x1xf32>
    %156 = math.rsqrt %155 : vector<16x1xf32>
    %157 = vector.broadcast %156 : vector<16x1xf32> to vector<16x64xf32>
    %158 = arith.mulf %153, %157 : vector<16x64xf32>
    %159 = vector.broadcast %138 : vector<1x64xf32> to vector<16x64xf32>
    %160 = arith.mulf %158, %159 : vector<16x64xf32>
    %161 = vector.broadcast %140 : vector<1x64xf32> to vector<16x64xf32>
    %162 = arith.addf %160, %161 : vector<16x64xf32>
    %163 = math.sin %162 : vector<16x64xf32>
    %164 = arith.addf %163, %36 : vector<16x64xf32>
    %c2_64 = arith.constant 2 : index
    %c0_65 = arith.constant 0 : index
    %c0_66 = arith.constant 0 : index
    %165 = vector.load %arg6[%c2_64, %c0_65, %c0_66] : memref<8x64x64xf32, #tpu.memory_space<vmem>>, vector<1x64x64xf32>
    %166 = vector.shape_cast %165 : vector<1x64x64xf32> to vector<64x64xf32>
    %cst_67 = arith.constant dense<0.000000e+00> : vector<16x64xf32>
    %167 = tpu.matmul %67, %166, %cst_67 {dimension_numbers = #tpu.dot_dimension_numbers<[1], [0], [0], [1], [0, 0, 1, 1], [], []>} : vector<16x64xf32>, vector<64x64xf32>, vector<16x64xf32> -> vector<16x64xf32>
    %c2_68 = arith.constant 2 : index
    %c0_69 = arith.constant 0 : index
    %c0_70 = arith.constant 0 : index
    %168 = vector.load %arg7[%c2_68, %c0_69, %c0_70] : memref<8x1x64xf32, #tpu.memory_space<vmem>>, vector<1x1x64xf32>
    %169 = vector.shape_cast %168 : vector<1x1x64xf32> to vector<1x64xf32>
    %170 = vector.broadcast %169 : vector<1x64xf32> to vector<16x64xf32>
    %171 = arith.addf %167, %170 : vector<16x64xf32>
    %c2_71 = arith.constant 2 : index
    %c0_72 = arith.constant 0 : index
    %c0_73 = arith.constant 0 : index
    %172 = vector.load %arg8[%c2_71, %c0_72, %c0_73] : memref<8x1x64xf32, #tpu.memory_space<vmem>>, vector<1x1x64xf32>
    %173 = vector.shape_cast %172 : vector<1x1x64xf32> to vector<1x64xf32>
    %c2_74 = arith.constant 2 : index
    %c0_75 = arith.constant 0 : index
    %c0_76 = arith.constant 0 : index
    %174 = vector.load %arg9[%c2_74, %c0_75, %c0_76] : memref<8x1x64xf32, #tpu.memory_space<vmem>>, vector<1x1x64xf32>
    %175 = vector.shape_cast %174 : vector<1x1x64xf32> to vector<1x64xf32>
    %cst_77 = arith.constant dense<0.000000e+00> : vector<16xf32>
    %176 = vector.multi_reduction <add>, %171, %cst_77 [1] : vector<16x64xf32> to vector<16xf32>
    %177 = vector.shape_cast %176 : vector<16xf32> to vector<16x1xf32>
    %cst_78 = arith.constant 6.400000e+01 : f32
    %178 = vector.broadcast %cst_78 : f32 to vector<16x1xf32>
    %179 = arith.divf %177, %178 : vector<16x1xf32>
    %180 = arith.mulf %171, %171 : vector<16x64xf32>
    %cst_79 = arith.constant dense<0.000000e+00> : vector<16xf32>
    %181 = vector.multi_reduction <add>, %180, %cst_79 [1] : vector<16x64xf32> to vector<16xf32>
    %182 = vector.shape_cast %181 : vector<16xf32> to vector<16x1xf32>
    %cst_80 = arith.constant 6.400000e+01 : f32
    %183 = vector.broadcast %cst_80 : f32 to vector<16x1xf32>
    %184 = arith.divf %182, %183 : vector<16x1xf32>
    %185 = arith.mulf %179, %179 : vector<16x1xf32>
    %186 = arith.subf %184, %185 : vector<16x1xf32>
    %187 = vector.broadcast %179 : vector<16x1xf32> to vector<16x64xf32>
    %188 = arith.subf %171, %187 : vector<16x64xf32>
    %cst_81 = arith.constant 9.99999974E-6 : f32
    %189 = vector.broadcast %cst_81 : f32 to vector<16x1xf32>
    %190 = arith.addf %186, %189 : vector<16x1xf32>
    %191 = math.rsqrt %190 : vector<16x1xf32>
    %192 = vector.broadcast %191 : vector<16x1xf32> to vector<16x64xf32>
    %193 = arith.mulf %188, %192 : vector<16x64xf32>
    %194 = vector.broadcast %173 : vector<1x64xf32> to vector<16x64xf32>
    %195 = arith.mulf %193, %194 : vector<16x64xf32>
    %196 = vector.broadcast %175 : vector<1x64xf32> to vector<16x64xf32>
    %197 = arith.addf %195, %196 : vector<16x64xf32>
    %198 = math.sin %197 : vector<16x64xf32>
    %199 = arith.addf %198, %67 : vector<16x64xf32>
    %c4 = arith.constant 4 : index
    %c0_82 = arith.constant 0 : index
    %c0_83 = arith.constant 0 : index
    %200 = vector.load %arg6[%c4, %c0_82, %c0_83] : memref<8x64x64xf32, #tpu.memory_space<vmem>>, vector<1x64x64xf32>
    %201 = vector.shape_cast %200 : vector<1x64x64xf32> to vector<64x64xf32>
    %cst_84 = arith.constant dense<0.000000e+00> : vector<16x64xf32>
    %202 = tpu.matmul %98, %201, %cst_84 {dimension_numbers = #tpu.dot_dimension_numbers<[1], [0], [0], [1], [0, 0, 1, 1], [], []>} : vector<16x64xf32>, vector<64x64xf32>, vector<16x64xf32> -> vector<16x64xf32>
    %c4_85 = arith.constant 4 : index
    %c0_86 = arith.constant 0 : index
    %c0_87 = arith.constant 0 : index
    %203 = vector.load %arg7[%c4_85, %c0_86, %c0_87] : memref<8x1x64xf32, #tpu.memory_space<vmem>>, vector<1x1x64xf32>
    %204 = vector.shape_cast %203 : vector<1x1x64xf32> to vector<1x64xf32>
    %205 = vector.broadcast %204 : vector<1x64xf32> to vector<16x64xf32>
    %206 = arith.addf %202, %205 : vector<16x64xf32>
    %c4_88 = arith.constant 4 : index
    %c0_89 = arith.constant 0 : index
    %c0_90 = arith.constant 0 : index
    %207 = vector.load %arg8[%c4_88, %c0_89, %c0_90] : memref<8x1x64xf32, #tpu.memory_space<vmem>>, vector<1x1x64xf32>
    %208 = vector.shape_cast %207 : vector<1x1x64xf32> to vector<1x64xf32>
    %c4_91 = arith.constant 4 : index
    %c0_92 = arith.constant 0 : index
    %c0_93 = arith.constant 0 : index
    %209 = vector.load %arg9[%c4_91, %c0_92, %c0_93] : memref<8x1x64xf32, #tpu.memory_space<vmem>>, vector<1x1x64xf32>
    %210 = vector.shape_cast %209 : vector<1x1x64xf32> to vector<1x64xf32>
    %cst_94 = arith.constant dense<0.000000e+00> : vector<16xf32>
    %211 = vector.multi_reduction <add>, %206, %cst_94 [1] : vector<16x64xf32> to vector<16xf32>
    %212 = vector.shape_cast %211 : vector<16xf32> to vector<16x1xf32>
    %cst_95 = arith.constant 6.400000e+01 : f32
    %213 = vector.broadcast %cst_95 : f32 to vector<16x1xf32>
    %214 = arith.divf %212, %213 : vector<16x1xf32>
    %215 = arith.mulf %206, %206 : vector<16x64xf32>
    %cst_96 = arith.constant dense<0.000000e+00> : vector<16xf32>
    %216 = vector.multi_reduction <add>, %215, %cst_96 [1] : vector<16x64xf32> to vector<16xf32>
    %217 = vector.shape_cast %216 : vector<16xf32> to vector<16x1xf32>
    %cst_97 = arith.constant 6.400000e+01 : f32
    %218 = vector.broadcast %cst_97 : f32 to vector<16x1xf32>
    %219 = arith.divf %217, %218 : vector<16x1xf32>
    %220 = arith.mulf %214, %214 : vector<16x1xf32>
    %221 = arith.subf %219, %220 : vector<16x1xf32>
    %222 = vector.broadcast %214 : vector<16x1xf32> to vector<16x64xf32>
    %223 = arith.subf %206, %222 : vector<16x64xf32>
    %cst_98 = arith.constant 9.99999974E-6 : f32
    %224 = vector.broadcast %cst_98 : f32 to vector<16x1xf32>
    %225 = arith.addf %221, %224 : vector<16x1xf32>
    %226 = math.rsqrt %225 : vector<16x1xf32>
    %227 = vector.broadcast %226 : vector<16x1xf32> to vector<16x64xf32>
    %228 = arith.mulf %223, %227 : vector<16x64xf32>
    %229 = vector.broadcast %208 : vector<1x64xf32> to vector<16x64xf32>
    %230 = arith.mulf %228, %229 : vector<16x64xf32>
    %231 = vector.broadcast %210 : vector<1x64xf32> to vector<16x64xf32>
    %232 = arith.addf %230, %231 : vector<16x64xf32>
    %233 = math.sin %232 : vector<16x64xf32>
    %234 = arith.addf %233, %98 : vector<16x64xf32>
    %c6 = arith.constant 6 : index
    %c0_99 = arith.constant 0 : index
    %c0_100 = arith.constant 0 : index
    %235 = vector.load %arg6[%c6, %c0_99, %c0_100] : memref<8x64x64xf32, #tpu.memory_space<vmem>>, vector<1x64x64xf32>
    %236 = vector.shape_cast %235 : vector<1x64x64xf32> to vector<64x64xf32>
    %cst_101 = arith.constant dense<0.000000e+00> : vector<16x64xf32>
    %237 = tpu.matmul %129, %236, %cst_101 {dimension_numbers = #tpu.dot_dimension_numbers<[1], [0], [0], [1], [0, 0, 1, 1], [], []>} : vector<16x64xf32>, vector<64x64xf32>, vector<16x64xf32> -> vector<16x64xf32>
    %c6_102 = arith.constant 6 : index
    %c0_103 = arith.constant 0 : index
    %c0_104 = arith.constant 0 : index
    %238 = vector.load %arg7[%c6_102, %c0_103, %c0_104] : memref<8x1x64xf32, #tpu.memory_space<vmem>>, vector<1x1x64xf32>
    %239 = vector.shape_cast %238 : vector<1x1x64xf32> to vector<1x64xf32>
    %240 = vector.broadcast %239 : vector<1x64xf32> to vector<16x64xf32>
    %241 = arith.addf %237, %240 : vector<16x64xf32>
    %c6_105 = arith.constant 6 : index
    %c0_106 = arith.constant 0 : index
    %c0_107 = arith.constant 0 : index
    %242 = vector.load %arg8[%c6_105, %c0_106, %c0_107] : memref<8x1x64xf32, #tpu.memory_space<vmem>>, vector<1x1x64xf32>
    %243 = vector.shape_cast %242 : vector<1x1x64xf32> to vector<1x64xf32>
    %c6_108 = arith.constant 6 : index
    %c0_109 = arith.constant 0 : index
    %c0_110 = arith.constant 0 : index
    %244 = vector.load %arg9[%c6_108, %c0_109, %c0_110] : memref<8x1x64xf32, #tpu.memory_space<vmem>>, vector<1x1x64xf32>
    %245 = vector.shape_cast %244 : vector<1x1x64xf32> to vector<1x64xf32>
    %cst_111 = arith.constant dense<0.000000e+00> : vector<16xf32>
    %246 = vector.multi_reduction <add>, %241, %cst_111 [1] : vector<16x64xf32> to vector<16xf32>
    %247 = vector.shape_cast %246 : vector<16xf32> to vector<16x1xf32>
    %cst_112 = arith.constant 6.400000e+01 : f32
    %248 = vector.broadcast %cst_112 : f32 to vector<16x1xf32>
    %249 = arith.divf %247, %248 : vector<16x1xf32>
    %250 = arith.mulf %241, %241 : vector<16x64xf32>
    %cst_113 = arith.constant dense<0.000000e+00> : vector<16xf32>
    %251 = vector.multi_reduction <add>, %250, %cst_113 [1] : vector<16x64xf32> to vector<16xf32>
    %252 = vector.shape_cast %251 : vector<16xf32> to vector<16x1xf32>
    %cst_114 = arith.constant 6.400000e+01 : f32
    %253 = vector.broadcast %cst_114 : f32 to vector<16x1xf32>
    %254 = arith.divf %252, %253 : vector<16x1xf32>
    %255 = arith.mulf %249, %249 : vector<16x1xf32>
    %256 = arith.subf %254, %255 : vector<16x1xf32>
    %257 = vector.broadcast %249 : vector<16x1xf32> to vector<16x64xf32>
    %258 = arith.subf %241, %257 : vector<16x64xf32>
    %cst_115 = arith.constant 9.99999974E-6 : f32
    %259 = vector.broadcast %cst_115 : f32 to vector<16x1xf32>
    %260 = arith.addf %256, %259 : vector<16x1xf32>
    %261 = math.rsqrt %260 : vector<16x1xf32>
    %262 = vector.broadcast %261 : vector<16x1xf32> to vector<16x64xf32>
    %263 = arith.mulf %258, %262 : vector<16x64xf32>
    %264 = vector.broadcast %243 : vector<1x64xf32> to vector<16x64xf32>
    %265 = arith.mulf %263, %264 : vector<16x64xf32>
    %266 = vector.broadcast %245 : vector<1x64xf32> to vector<16x64xf32>
    %267 = arith.addf %265, %266 : vector<16x64xf32>
    %268 = math.sin %267 : vector<16x64xf32>
    %269 = arith.addf %268, %129 : vector<16x64xf32>
    %c1_116 = arith.constant 1 : index
    %c0_117 = arith.constant 0 : index
    %c0_118 = arith.constant 0 : index
    %270 = vector.load %arg6[%c1_116, %c0_117, %c0_118] : memref<8x64x64xf32, #tpu.memory_space<vmem>>, vector<1x64x64xf32>
    %271 = vector.shape_cast %270 : vector<1x64x64xf32> to vector<64x64xf32>
    %cst_119 = arith.constant dense<0.000000e+00> : vector<16x64xf32>
    %272 = tpu.matmul %164, %271, %cst_119 {dimension_numbers = #tpu.dot_dimension_numbers<[1], [0], [0], [1], [0, 0, 1, 1], [], []>} : vector<16x64xf32>, vector<64x64xf32>, vector<16x64xf32> -> vector<16x64xf32>
    %c1_120 = arith.constant 1 : index
    %c0_121 = arith.constant 0 : index
    %c0_122 = arith.constant 0 : index
    %273 = vector.load %arg7[%c1_120, %c0_121, %c0_122] : memref<8x1x64xf32, #tpu.memory_space<vmem>>, vector<1x1x64xf32>
    %274 = vector.shape_cast %273 : vector<1x1x64xf32> to vector<1x64xf32>
    %275 = vector.broadcast %274 : vector<1x64xf32> to vector<16x64xf32>
    %276 = arith.addf %272, %275 : vector<16x64xf32>
    %c1_123 = arith.constant 1 : index
    %c0_124 = arith.constant 0 : index
    %c0_125 = arith.constant 0 : index
    %277 = vector.load %arg8[%c1_123, %c0_124, %c0_125] : memref<8x1x64xf32, #tpu.memory_space<vmem>>, vector<1x1x64xf32>
    %278 = vector.shape_cast %277 : vector<1x1x64xf32> to vector<1x64xf32>
    %c1_126 = arith.constant 1 : index
    %c0_127 = arith.constant 0 : index
    %c0_128 = arith.constant 0 : index
    %279 = vector.load %arg9[%c1_126, %c0_127, %c0_128] : memref<8x1x64xf32, #tpu.memory_space<vmem>>, vector<1x1x64xf32>
    %280 = vector.shape_cast %279 : vector<1x1x64xf32> to vector<1x64xf32>
    %cst_129 = arith.constant dense<0.000000e+00> : vector<16xf32>
    %281 = vector.multi_reduction <add>, %276, %cst_129 [1] : vector<16x64xf32> to vector<16xf32>
    %282 = vector.shape_cast %281 : vector<16xf32> to vector<16x1xf32>
    %cst_130 = arith.constant 6.400000e+01 : f32
    %283 = vector.broadcast %cst_130 : f32 to vector<16x1xf32>
    %284 = arith.divf %282, %283 : vector<16x1xf32>
    %285 = arith.mulf %276, %276 : vector<16x64xf32>
    %cst_131 = arith.constant dense<0.000000e+00> : vector<16xf32>
    %286 = vector.multi_reduction <add>, %285, %cst_131 [1] : vector<16x64xf32> to vector<16xf32>
    %287 = vector.shape_cast %286 : vector<16xf32> to vector<16x1xf32>
    %cst_132 = arith.constant 6.400000e+01 : f32
    %288 = vector.broadcast %cst_132 : f32 to vector<16x1xf32>
    %289 = arith.divf %287, %288 : vector<16x1xf32>
    %290 = arith.mulf %284, %284 : vector<16x1xf32>
    %291 = arith.subf %289, %290 : vector<16x1xf32>
    %292 = vector.broadcast %284 : vector<16x1xf32> to vector<16x64xf32>
    %293 = arith.subf %276, %292 : vector<16x64xf32>
    %cst_133 = arith.constant 9.99999974E-6 : f32
    %294 = vector.broadcast %cst_133 : f32 to vector<16x1xf32>
    %295 = arith.addf %291, %294 : vector<16x1xf32>
    %296 = math.rsqrt %295 : vector<16x1xf32>
    %297 = vector.broadcast %296 : vector<16x1xf32> to vector<16x64xf32>
    %298 = arith.mulf %293, %297 : vector<16x64xf32>
    %299 = vector.broadcast %278 : vector<1x64xf32> to vector<16x64xf32>
    %300 = arith.mulf %298, %299 : vector<16x64xf32>
    %301 = vector.broadcast %280 : vector<1x64xf32> to vector<16x64xf32>
    %302 = arith.addf %300, %301 : vector<16x64xf32>
    %303 = math.sin %302 : vector<16x64xf32>
    %304 = arith.addf %303, %164 : vector<16x64xf32>
    %c3_134 = arith.constant 3 : index
    %c0_135 = arith.constant 0 : index
    %c0_136 = arith.constant 0 : index
    %305 = vector.load %arg6[%c3_134, %c0_135, %c0_136] : memref<8x64x64xf32, #tpu.memory_space<vmem>>, vector<1x64x64xf32>
    %306 = vector.shape_cast %305 : vector<1x64x64xf32> to vector<64x64xf32>
    %cst_137 = arith.constant dense<0.000000e+00> : vector<16x64xf32>
    %307 = tpu.matmul %199, %306, %cst_137 {dimension_numbers = #tpu.dot_dimension_numbers<[1], [0], [0], [1], [0, 0, 1, 1], [], []>} : vector<16x64xf32>, vector<64x64xf32>, vector<16x64xf32> -> vector<16x64xf32>
    %c3_138 = arith.constant 3 : index
    %c0_139 = arith.constant 0 : index
    %c0_140 = arith.constant 0 : index
    %308 = vector.load %arg7[%c3_138, %c0_139, %c0_140] : memref<8x1x64xf32, #tpu.memory_space<vmem>>, vector<1x1x64xf32>
    %309 = vector.shape_cast %308 : vector<1x1x64xf32> to vector<1x64xf32>
    %310 = vector.broadcast %309 : vector<1x64xf32> to vector<16x64xf32>
    %311 = arith.addf %307, %310 : vector<16x64xf32>
    %c3_141 = arith.constant 3 : index
    %c0_142 = arith.constant 0 : index
    %c0_143 = arith.constant 0 : index
    %312 = vector.load %arg8[%c3_141, %c0_142, %c0_143] : memref<8x1x64xf32, #tpu.memory_space<vmem>>, vector<1x1x64xf32>
    %313 = vector.shape_cast %312 : vector<1x1x64xf32> to vector<1x64xf32>
    %c3_144 = arith.constant 3 : index
    %c0_145 = arith.constant 0 : index
    %c0_146 = arith.constant 0 : index
    %314 = vector.load %arg9[%c3_144, %c0_145, %c0_146] : memref<8x1x64xf32, #tpu.memory_space<vmem>>, vector<1x1x64xf32>
    %315 = vector.shape_cast %314 : vector<1x1x64xf32> to vector<1x64xf32>
    %cst_147 = arith.constant dense<0.000000e+00> : vector<16xf32>
    %316 = vector.multi_reduction <add>, %311, %cst_147 [1] : vector<16x64xf32> to vector<16xf32>
    %317 = vector.shape_cast %316 : vector<16xf32> to vector<16x1xf32>
    %cst_148 = arith.constant 6.400000e+01 : f32
    %318 = vector.broadcast %cst_148 : f32 to vector<16x1xf32>
    %319 = arith.divf %317, %318 : vector<16x1xf32>
    %320 = arith.mulf %311, %311 : vector<16x64xf32>
    %cst_149 = arith.constant dense<0.000000e+00> : vector<16xf32>
    %321 = vector.multi_reduction <add>, %320, %cst_149 [1] : vector<16x64xf32> to vector<16xf32>
    %322 = vector.shape_cast %321 : vector<16xf32> to vector<16x1xf32>
    %cst_150 = arith.constant 6.400000e+01 : f32
    %323 = vector.broadcast %cst_150 : f32 to vector<16x1xf32>
    %324 = arith.divf %322, %323 : vector<16x1xf32>
    %325 = arith.mulf %319, %319 : vector<16x1xf32>
    %326 = arith.subf %324, %325 : vector<16x1xf32>
    %327 = vector.broadcast %319 : vector<16x1xf32> to vector<16x64xf32>
    %328 = arith.subf %311, %327 : vector<16x64xf32>
    %cst_151 = arith.constant 9.99999974E-6 : f32
    %329 = vector.broadcast %cst_151 : f32 to vector<16x1xf32>
    %330 = arith.addf %326, %329 : vector<16x1xf32>
    %331 = math.rsqrt %330 : vector<16x1xf32>
    %332 = vector.broadcast %331 : vector<16x1xf32> to vector<16x64xf32>
    %333 = arith.mulf %328, %332 : vector<16x64xf32>
    %334 = vector.broadcast %313 : vector<1x64xf32> to vector<16x64xf32>
    %335 = arith.mulf %333, %334 : vector<16x64xf32>
    %336 = vector.broadcast %315 : vector<1x64xf32> to vector<16x64xf32>
    %337 = arith.addf %335, %336 : vector<16x64xf32>
    %338 = math.sin %337 : vector<16x64xf32>
    %339 = arith.addf %338, %199 : vector<16x64xf32>
    %c5 = arith.constant 5 : index
    %c0_152 = arith.constant 0 : index
    %c0_153 = arith.constant 0 : index
    %340 = vector.load %arg6[%c5, %c0_152, %c0_153] : memref<8x64x64xf32, #tpu.memory_space<vmem>>, vector<1x64x64xf32>
    %341 = vector.shape_cast %340 : vector<1x64x64xf32> to vector<64x64xf32>
    %cst_154 = arith.constant dense<0.000000e+00> : vector<16x64xf32>
    %342 = tpu.matmul %234, %341, %cst_154 {dimension_numbers = #tpu.dot_dimension_numbers<[1], [0], [0], [1], [0, 0, 1, 1], [], []>} : vector<16x64xf32>, vector<64x64xf32>, vector<16x64xf32> -> vector<16x64xf32>
    %c5_155 = arith.constant 5 : index
    %c0_156 = arith.constant 0 : index
    %c0_157 = arith.constant 0 : index
    %343 = vector.load %arg7[%c5_155, %c0_156, %c0_157] : memref<8x1x64xf32, #tpu.memory_space<vmem>>, vector<1x1x64xf32>
    %344 = vector.shape_cast %343 : vector<1x1x64xf32> to vector<1x64xf32>
    %345 = vector.broadcast %344 : vector<1x64xf32> to vector<16x64xf32>
    %346 = arith.addf %342, %345 : vector<16x64xf32>
    %c5_158 = arith.constant 5 : index
    %c0_159 = arith.constant 0 : index
    %c0_160 = arith.constant 0 : index
    %347 = vector.load %arg8[%c5_158, %c0_159, %c0_160] : memref<8x1x64xf32, #tpu.memory_space<vmem>>, vector<1x1x64xf32>
    %348 = vector.shape_cast %347 : vector<1x1x64xf32> to vector<1x64xf32>
    %c5_161 = arith.constant 5 : index
    %c0_162 = arith.constant 0 : index
    %c0_163 = arith.constant 0 : index
    %349 = vector.load %arg9[%c5_161, %c0_162, %c0_163] : memref<8x1x64xf32, #tpu.memory_space<vmem>>, vector<1x1x64xf32>
    %350 = vector.shape_cast %349 : vector<1x1x64xf32> to vector<1x64xf32>
    %cst_164 = arith.constant dense<0.000000e+00> : vector<16xf32>
    %351 = vector.multi_reduction <add>, %346, %cst_164 [1] : vector<16x64xf32> to vector<16xf32>
    %352 = vector.shape_cast %351 : vector<16xf32> to vector<16x1xf32>
    %cst_165 = arith.constant 6.400000e+01 : f32
    %353 = vector.broadcast %cst_165 : f32 to vector<16x1xf32>
    %354 = arith.divf %352, %353 : vector<16x1xf32>
    %355 = arith.mulf %346, %346 : vector<16x64xf32>
    %cst_166 = arith.constant dense<0.000000e+00> : vector<16xf32>
    %356 = vector.multi_reduction <add>, %355, %cst_166 [1] : vector<16x64xf32> to vector<16xf32>
    %357 = vector.shape_cast %356 : vector<16xf32> to vector<16x1xf32>
    %cst_167 = arith.constant 6.400000e+01 : f32
    %358 = vector.broadcast %cst_167 : f32 to vector<16x1xf32>
    %359 = arith.divf %357, %358 : vector<16x1xf32>
    %360 = arith.mulf %354, %354 : vector<16x1xf32>
    %361 = arith.subf %359, %360 : vector<16x1xf32>
    %362 = vector.broadcast %354 : vector<16x1xf32> to vector<16x64xf32>
    %363 = arith.subf %346, %362 : vector<16x64xf32>
    %cst_168 = arith.constant 9.99999974E-6 : f32
    %364 = vector.broadcast %cst_168 : f32 to vector<16x1xf32>
    %365 = arith.addf %361, %364 : vector<16x1xf32>
    %366 = math.rsqrt %365 : vector<16x1xf32>
    %367 = vector.broadcast %366 : vector<16x1xf32> to vector<16x64xf32>
    %368 = arith.mulf %363, %367 : vector<16x64xf32>
    %369 = vector.broadcast %348 : vector<1x64xf32> to vector<16x64xf32>
    %370 = arith.mulf %368, %369 : vector<16x64xf32>
    %371 = vector.broadcast %350 : vector<1x64xf32> to vector<16x64xf32>
    %372 = arith.addf %370, %371 : vector<16x64xf32>
    %373 = math.sin %372 : vector<16x64xf32>
    %374 = arith.addf %373, %234 : vector<16x64xf32>
    %c7 = arith.constant 7 : index
    %c0_169 = arith.constant 0 : index
    %c0_170 = arith.constant 0 : index
    %375 = vector.load %arg6[%c7, %c0_169, %c0_170] : memref<8x64x64xf32, #tpu.memory_space<vmem>>, vector<1x64x64xf32>
    %376 = vector.shape_cast %375 : vector<1x64x64xf32> to vector<64x64xf32>
    %cst_171 = arith.constant dense<0.000000e+00> : vector<16x64xf32>
    %377 = tpu.matmul %269, %376, %cst_171 {dimension_numbers = #tpu.dot_dimension_numbers<[1], [0], [0], [1], [0, 0, 1, 1], [], []>} : vector<16x64xf32>, vector<64x64xf32>, vector<16x64xf32> -> vector<16x64xf32>
    %c7_172 = arith.constant 7 : index
    %c0_173 = arith.constant 0 : index
    %c0_174 = arith.constant 0 : index
    %378 = vector.load %arg7[%c7_172, %c0_173, %c0_174] : memref<8x1x64xf32, #tpu.memory_space<vmem>>, vector<1x1x64xf32>
    %379 = vector.shape_cast %378 : vector<1x1x64xf32> to vector<1x64xf32>
    %380 = vector.broadcast %379 : vector<1x64xf32> to vector<16x64xf32>
    %381 = arith.addf %377, %380 : vector<16x64xf32>
    %c7_175 = arith.constant 7 : index
    %c0_176 = arith.constant 0 : index
    %c0_177 = arith.constant 0 : index
    %382 = vector.load %arg8[%c7_175, %c0_176, %c0_177] : memref<8x1x64xf32, #tpu.memory_space<vmem>>, vector<1x1x64xf32>
    %383 = vector.shape_cast %382 : vector<1x1x64xf32> to vector<1x64xf32>
    %c7_178 = arith.constant 7 : index
    %c0_179 = arith.constant 0 : index
    %c0_180 = arith.constant 0 : index
    %384 = vector.load %arg9[%c7_178, %c0_179, %c0_180] : memref<8x1x64xf32, #tpu.memory_space<vmem>>, vector<1x1x64xf32>
    %385 = vector.shape_cast %384 : vector<1x1x64xf32> to vector<1x64xf32>
    %cst_181 = arith.constant dense<0.000000e+00> : vector<16xf32>
    %386 = vector.multi_reduction <add>, %381, %cst_181 [1] : vector<16x64xf32> to vector<16xf32>
    %387 = vector.shape_cast %386 : vector<16xf32> to vector<16x1xf32>
    %cst_182 = arith.constant 6.400000e+01 : f32
    %388 = vector.broadcast %cst_182 : f32 to vector<16x1xf32>
    %389 = arith.divf %387, %388 : vector<16x1xf32>
    %390 = arith.mulf %381, %381 : vector<16x64xf32>
    %cst_183 = arith.constant dense<0.000000e+00> : vector<16xf32>
    %391 = vector.multi_reduction <add>, %390, %cst_183 [1] : vector<16x64xf32> to vector<16xf32>
    %392 = vector.shape_cast %391 : vector<16xf32> to vector<16x1xf32>
    %cst_184 = arith.constant 6.400000e+01 : f32
    %393 = vector.broadcast %cst_184 : f32 to vector<16x1xf32>
    %394 = arith.divf %392, %393 : vector<16x1xf32>
    %395 = arith.mulf %389, %389 : vector<16x1xf32>
    %396 = arith.subf %394, %395 : vector<16x1xf32>
    %397 = vector.broadcast %389 : vector<16x1xf32> to vector<16x64xf32>
    %398 = arith.subf %381, %397 : vector<16x64xf32>
    %cst_185 = arith.constant 9.99999974E-6 : f32
    %399 = vector.broadcast %cst_185 : f32 to vector<16x1xf32>
    %400 = arith.addf %396, %399 : vector<16x1xf32>
    %401 = math.rsqrt %400 : vector<16x1xf32>
    %402 = vector.broadcast %401 : vector<16x1xf32> to vector<16x64xf32>
    %403 = arith.mulf %398, %402 : vector<16x64xf32>
    %404 = vector.broadcast %383 : vector<1x64xf32> to vector<16x64xf32>
    %405 = arith.mulf %403, %404 : vector<16x64xf32>
    %406 = vector.broadcast %385 : vector<1x64xf32> to vector<16x64xf32>
    %407 = arith.addf %405, %406 : vector<16x64xf32>
    %408 = math.sin %407 : vector<16x64xf32>
    %409 = arith.addf %408, %269 : vector<16x64xf32>
    %410 = arith.addf %304, %339 : vector<16x64xf32>
    %411 = arith.addf %410, %374 : vector<16x64xf32>
    %412 = arith.addf %411, %409 : vector<16x64xf32>
    %cst_186 = arith.constant 2.500000e-01 : f32
    %413 = vector.broadcast %cst_186 : f32 to vector<16x64xf32>
    %414 = arith.mulf %412, %413 : vector<16x64xf32>
    %c0_187 = arith.constant 0 : index
    %c0_188 = arith.constant 0 : index
    %415 = vector.load %arg10[%c0_187, %c0_188] : memref<1x64xf32, #tpu.memory_space<vmem>>, vector<1x64xf32>
    %c0_189 = arith.constant 0 : index
    %c0_190 = arith.constant 0 : index
    %416 = vector.load %arg11[%c0_189, %c0_190] : memref<1x64xf32, #tpu.memory_space<vmem>>, vector<1x64xf32>
    %cst_191 = arith.constant dense<0.000000e+00> : vector<16xf32>
    %417 = vector.multi_reduction <add>, %414, %cst_191 [1] : vector<16x64xf32> to vector<16xf32>
    %418 = vector.shape_cast %417 : vector<16xf32> to vector<16x1xf32>
    %cst_192 = arith.constant 6.400000e+01 : f32
    %419 = vector.broadcast %cst_192 : f32 to vector<16x1xf32>
    %420 = arith.divf %418, %419 : vector<16x1xf32>
    %421 = arith.mulf %414, %414 : vector<16x64xf32>
    %cst_193 = arith.constant dense<0.000000e+00> : vector<16xf32>
    %422 = vector.multi_reduction <add>, %421, %cst_193 [1] : vector<16x64xf32> to vector<16xf32>
    %423 = vector.shape_cast %422 : vector<16xf32> to vector<16x1xf32>
    %cst_194 = arith.constant 6.400000e+01 : f32
    %424 = vector.broadcast %cst_194 : f32 to vector<16x1xf32>
    %425 = arith.divf %423, %424 : vector<16x1xf32>
    %426 = arith.mulf %420, %420 : vector<16x1xf32>
    %427 = arith.subf %425, %426 : vector<16x1xf32>
    %428 = vector.broadcast %420 : vector<16x1xf32> to vector<16x64xf32>
    %429 = arith.subf %414, %428 : vector<16x64xf32>
    %cst_195 = arith.constant 9.99999974E-6 : f32
    %430 = vector.broadcast %cst_195 : f32 to vector<16x1xf32>
    %431 = arith.addf %427, %430 : vector<16x1xf32>
    %432 = math.rsqrt %431 : vector<16x1xf32>
    %433 = vector.broadcast %432 : vector<16x1xf32> to vector<16x64xf32>
    %434 = arith.mulf %429, %433 : vector<16x64xf32>
    %435 = vector.broadcast %415 : vector<1x64xf32> to vector<16x64xf32>
    %436 = arith.mulf %434, %435 : vector<16x64xf32>
    %437 = vector.broadcast %416 : vector<1x64xf32> to vector<16x64xf32>
    %438 = arith.addf %436, %437 : vector<16x64xf32>
    %439 = math.sin %438 : vector<16x64xf32>
    %c0_196 = arith.constant 0 : index
    %c0_197 = arith.constant 0 : index
    %440 = vector.load %arg12[%c0_196, %c0_197] : memref<64x2xf32, #tpu.memory_space<vmem>>, vector<64x2xf32>
    %cst_198 = arith.constant dense<0.000000e+00> : vector<16x2xf32>
    %441 = tpu.matmul %439, %440, %cst_198 {dimension_numbers = #tpu.dot_dimension_numbers<[1], [0], [0], [1], [0, 0, 1, 1], [], []>} : vector<16x64xf32>, vector<64x2xf32>, vector<16x2xf32> -> vector<16x2xf32>
    %c0_199 = arith.constant 0 : index
    %c0_200 = arith.constant 0 : index
    %442 = vector.load %arg13[%c0_199, %c0_200] : memref<1x2xf32, #tpu.memory_space<vmem>>, vector<1x2xf32>
    %443 = vector.broadcast %442 : vector<1x2xf32> to vector<16x2xf32>
    %444 = arith.addf %441, %443 : vector<16x2xf32>
    %c0_201 = arith.constant 0 : index
    %c0_202 = arith.constant 0 : index
    %445 = vector.load %arg14[%c0_201, %c0_202] : memref<16x2xf32, #tpu.memory_space<vmem>>, vector<16x2xf32>
    tpu.vector_store %arg14[%c0_201, %c0_202], %444 {strides = array<i32>} : memref<16x2xf32, #tpu.memory_space<vmem>>, vector<16x2xf32>,
    return
  }
  func.func @transform_0(%arg0: i32) -> (i32, i32) {
    %c0_i32 = arith.constant 0 : i32
    %c0_i32_0 = arith.constant 0 : i32
    return %arg0, %c0_i32 : i32, i32
  }
  func.func @transform_1(%arg0: i32) -> (i32, i32) {
    %c0_i32 = arith.constant 0 : i32
    %c0_i32_0 = arith.constant 0 : i32
    %c0_i32_1 = arith.constant 0 : i32
    return %c0_i32, %c0_i32_0 : i32, i32
  }
  func.func @transform_2(%arg0: i32) -> (i32, i32) {
    %c0_i32 = arith.constant 0 : i32
    %c0_i32_0 = arith.constant 0 : i32
    %c0_i32_1 = arith.constant 0 : i32
    return %c0_i32, %c0_i32_0 : i32, i32
  }
  func.func @transform_3(%arg0: i32) -> (i32, i32, i32) {
    %c0_i32 = arith.constant 0 : i32
    %c0_i32_0 = arith.constant 0 : i32
    %c0_i32_1 = arith.constant 0 : i32
    %c0_i32_2 = arith.constant 0 : i32
    return %c0_i32, %c0_i32_0, %c0_i32_1 : i32, i32, i32
  }
  func.func @transform_4(%arg0: i32) -> (i32, i32, i32) {
    %c0_i32 = arith.constant 0 : i32
    %c0_i32_0 = arith.constant 0 : i32
    %c0_i32_1 = arith.constant 0 : i32
    %c0_i32_2 = arith.constant 0 : i32
    return %c0_i32, %c0_i32_0, %c0_i32_1 : i32, i32, i32
  }
  func.func @transform_5(%arg0: i32) -> (i32, i32, i32) {
    %c0_i32 = arith.constant 0 : i32
    %c0_i32_0 = arith.constant 0 : i32
    %c0_i32_1 = arith.constant 0 : i32
    %c0_i32_2 = arith.constant 0 : i32
    return %c0_i32, %c0_i32_0, %c0_i32_1 : i32, i32, i32
  }
  func.func @transform_6(%arg0: i32) -> (i32, i32, i32) {
    %c0_i32 = arith.constant 0 : i32
    %c0_i32_0 = arith.constant 0 : i32
    %c0_i32_1 = arith.constant 0 : i32
    %c0_i32_2 = arith.constant 0 : i32
    return %c0_i32, %c0_i32_0, %c0_i32_1 : i32, i32, i32
  }
  func.func @transform_7(%arg0: i32) -> (i32, i32, i32) {
    %c0_i32 = arith.constant 0 : i32
    %c0_i32_0 = arith.constant 0 : i32
    %c0_i32_1 = arith.constant 0 : i32
    %c0_i32_2 = arith.constant 0 : i32
    return %c0_i32, %c0_i32_0, %c0_i32_1 : i32, i32, i32
  }
  func.func @transform_8(%arg0: i32) -> (i32, i32, i32) {
    %c0_i32 = arith.constant 0 : i32
    %c0_i32_0 = arith.constant 0 : i32
    %c0_i32_1 = arith.constant 0 : i32
    %c0_i32_2 = arith.constant 0 : i32
    return %c0_i32, %c0_i32_0, %c0_i32_1 : i32, i32, i32
  }
  func.func @transform_9(%arg0: i32) -> (i32, i32) {
    %c0_i32 = arith.constant 0 : i32
    %c0_i32_0 = arith.constant 0 : i32
    %c0_i32_1 = arith.constant 0 : i32
    return %c0_i32, %c0_i32_0 : i32, i32
  }
  func.func @transform_10(%arg0: i32) -> (i32, i32) {
    %c0_i32 = arith.constant 0 : i32
    %c0_i32_0 = arith.constant 0 : i32
    %c0_i32_1 = arith.constant 0 : i32
    return %c0_i32, %c0_i32_0 : i32, i32
  }
  func.func @transform_11(%arg0: i32) -> (i32, i32) {
    %c0_i32 = arith.constant 0 : i32
    %c0_i32_0 = arith.constant 0 : i32
    %c0_i32_1 = arith.constant 0 : i32
    return %c0_i32, %c0_i32_0 : i32, i32
  }
  func.func @transform_12(%arg0: i32) -> (i32, i32) {
    %c0_i32 = arith.constant 0 : i32
    %c0_i32_0 = arith.constant 0 : i32
    %c0_i32_1 = arith.constant 0 : i32
    return %c0_i32, %c0_i32_0 : i32, i32
  }
  func.func @transform_13(%arg0: i32) -> (i32, i32) {
    %c0_i32 = arith.constant 0 : i32
    %c0_i32_0 = arith.constant 0 : i32
    return %arg0, %c0_i32 : i32, i32
  }
}

</mosaic_0001>

<bundles_post_ra>
// kernel: ms_siren_forward.1
= control target key start
LH: loop header
LB: loop body
LE: loop exit
PB: predicated region body
PF: predicated region fallthrough
CT: control target
= control target key end

     0   :  { %18 = vsyncpa [#allocation3], 0  ;;  %s5307_s25 = smov [#allocation2]   ;;  %s8318_s0 = inlined_call_operand.vmem [shape: f32[16,4], index: 0, kind: input, shape index: {}]   ;;  %s8319_s1 = inlined_call_operand.vmem [shape: f32[4,512], index: 1, kind: input, shape index: {}]   ;;  %s8320_s2 = inlined_call_operand.vmem [shape: f32[1,512], index: 2, kind: input, shape index: {}]   ;;  %s8321_s3 = inlined_call_operand.vmem [shape: f32[4,1,64], index: 3, kind: input, shape index: {}]   ;;  %s8322_s4 = inlined_call_operand.vmem [shape: f32[4,1,64], index: 4, kind: input, shape index: {}]   ;;  %s8323_s5 = inlined_call_operand.hbm [shape: f32[8,64,64], index: 5, kind: input, shape index: {}]   ;;  %s8324_s6 = inlined_call_operand.vmem [shape: f32[8,1,64], index: 6, kind: input, shape index: {}]   ;;  %s8325_s7 = inlined_call_operand.vmem [shape: f32[8,1,64], index: 7, kind: input, shape index: {}]   ;;  %s8326_s8 = inlined_call_operand.vmem [shape: f32[8,1,64], index: 8, kind: input, shape index: {}]   ;;  %s8327_s9 = inlined_call_operand.vmem [shape: f32[1,64], index: 9, kind: input, shape index: {}]   ;;  %s8328_s10 = inlined_call_operand.vmem [shape: f32[1,64], index: 10, kind: input, shape index: {}]   ;;  %s8329_s11 = inlined_call_operand.vmem [shape: f32[64,2], index: 11, kind: input, shape index: {}]   ;;  %s8330_s12 = inlined_call_operand.vmem [shape: f32[1,2], index: 12, kind: input, shape index: {}]   ;;  %s8331_s13 = inlined_call_operand.vmem [shape: f32[16,2], index: 13, kind: output, shape index: {}]  }
   0x1   :  { %s34_s26 = sshll.u32 %s5307_s25, 4  ;;  %s35_s26 = int_to_ptr.vmem [resolvable:$true] %s34_s26 }
   0x2   :  { %s5293_s27 = scalar_lea.vmem %s35_s26, 8192  ;;  %p5298_p1 = scmp.lt.s32.totalorder %s35_s26, %s35_s26 }
   0x3   :  { %p5294_p0 = scmp.ne.s32.totalorder %s35_s26, %s5293_s27  ;;  %p5299_p2 = scmp.lt.s32.totalorder %s5293_s27, %s5293_s27 }
   0x5   :  { %p5300_p3 = por %p5299_p2, %p5298_p1 }
   0x7   :  { %p5301_p4 = pnand %p5300_p3, %p5294_p0 }
   0x9   :  { %5304 = shalt.err (!%p5301_p4)
}
   0xa   :  { %s5308_s28 = smov 128   ;;  %s5309_s29 = smov 8  }
   0xb   :  { %40 = dma.hbm_to_vmem [thread:$0]  %s8323_s5, 8192, %s35_s26, [#allocation3], %s5308_s28, %s5308_s28, %s5309_s29  }
   0xc   :  { %5305 = dma.done.wait [#allocation3], 8192  }
   0xd   :  { %5306 = vsyncadd [#allocation3], 4294959104  ;;  %v5310_v0 = vmov 0.0   ;;  %v60_v1 = vld [vmem:[%s8319_s1] sm:$0xff]  ;;  %vm95_vm0 = vcmask 1043456   ;;  %v61_v3 = vld [vmem:[%s8319_s1 + $0x8] sm:$0xff]  ;;  %v64_v7 = vlaneseq }
   0xe   :  { %168 = vmatprep.mubr.f32.mxu1 %v5310_v0  ;;  %v86_v2 = vcombine.high %v60_v1, %v60_v1  ;;  %v58_v4 = vld [vmem:[%s8318_s0] sm:$0xff]  ;;  %vm88_vm1 = vcmask 31744   ;;  %v87_v5 = vcombine.high %v61_v3, %v61_v3  ;;  %v59_v6 = vld [vmem:[%s8318_s0 + $0x8] sm:$0xff]  ;;  %vm260_vm2 = vcmask 523264   ;;  %s5311_s0 = smov 64  }
   0xf   :  { %v65_v8 = vshrl.u32 %v64_v7, 7  ;;  %v62_v10 = vld [vmem:[%s8320_s2] sm:$0xf] }
  0x10   :  { %4558 = vmatprep.subr.msk.mxu1 %vm95_vm0, %v86_v2 }
  0x11   :  { %4559 = vmatpush1.msk.msra.mxu1 %vm95_vm0, %v60_v1  ;;  %v66_v9 = vsub.s32 0, %v65_v8  ;;  %v70_v11 = vsub.s32 1, %v65_v8  ;;  %v74_v23 = vsub.s32 2, %v65_v8  ;;  %v78_v27 = vsub.s32 3, %v65_v8 }
  0x12   :  { %4560 = vmatmul.mubr.msk.f32.vlgmr.msra.gmra.mxu1 %vm88_vm1, %v58_v4  ;;  %4562 = vmatprep.subr.msk.mxu1 %vm95_vm0, %v87_v5 }
  0x13   :  { %174 = vmatprep.mubr.f32.mxu1 %v5310_v0  ;;  %4563 = vmatpush1.msk.msra.mxu1 %vm95_vm0, %v61_v3  ;;  %v67_v12 = vrot.slane %v62_v10, %v66_v9  ;;  %v71_v13 = vrot.slane %v62_v10, %v70_v11  ;;  %v75_v31 = vrot.slane %v62_v10, %v74_v23 }
  0x14   :  { %v79_v34 = vrot.slane %v62_v10, %v78_v27 }
  0x16   :  { %4561 = vmatmul.mubr.msk.f32.gmra.mxu1 %vm88_vm1, %v59_v6 }
  0x17   :  { %245 = vmatprep.mubr.f32.mxu1 %v5310_v0 }
  0x1a   :  { %4564 = vmatmul.mubr.msk.f32.vlgmr.msra.gmra.mxu1 %vm88_vm1, %v58_v4 }
  0x1b   :  { %251 = vmatprep.mubr.f32.mxu1 %v5310_v0 }
  0x1e   :  { %4565 = vmatmul.mubr.msk.f32.gmra.mxu1 %vm88_vm1, %v59_v6 }
  0xd2   :  { %v170_v14 = vpop.f32.mrf.mxu1 }
  0xd3   :  { %v5406_v15 = vadd.f32 %v170_v14, %v67_v12 }
  0xd4   :  { %v172_v16 = vpop.f32.mrf.mxu1 }
  0xd5   :  { %v5408_v17 = vadd.f32 %v172_v16, %v71_v13  ;;  %v261_v18 = vsel %vm260_vm2, %v5406_v15, 0.0  ;;  %v270_v19 = vmul.f32 %v5406_v15, %v5406_v15 }
  0xd6   :  { %v176_v20 = vpop.f32.mrf.mxu1  ;;  %262 = vadd.xlane.f32.xlu0 %v261_v18 }
  0xd7   :  { %v5414_v21 = vadd.f32 %v176_v20, %v67_v12  ;;  %v272_v22 = vsel %vm260_vm2, %v270_v19, 0.0  ;;  %v538_v26 = vmul.f32 %v5408_v17, %v5408_v17  ;;  %v530_v30 = vsel %vm260_vm2, %v5408_v17, 0.0 }
  0xd8   :  { %v178_v24 = vpop.f32.mrf.mxu1  ;;  %273 = vadd.xlane.f32.xlu1 %v272_v22 }
  0xd9   :  { %v264_v25 = vsel %vm260_vm2, %v5414_v21, 0.0  ;;  %v5421_v29 = vadd.f32 %v178_v24, %v71_v13  ;;  %v540_v32 = vsel %vm260_vm2, %v538_v26, 0.0  ;;  %v271_v33 = vmul.f32 %v5414_v21, %v5414_v21 }
  0xda   :  { %265 = vadd.xlane.f32.xlu0 %v264_v25  ;;  %v247_v28 = vpop.f32.mrf.mxu1 }
  0xdb   :  { %v533_v36 = vsel %vm260_vm2, %v5421_v29, 0.0  ;;  %v5430_v37 = vadd.f32 %v247_v28, %v75_v31  ;;  %v539_v38 = vmul.f32 %v5421_v29, %v5421_v29  ;;  %v275_v40 = vsel %vm260_vm2, %v271_v33, 0.0  ;;  %v4567_v33 = vld [vmem:[%s8322_s4] ss:$0 sm:$0xff] }
  0xdc   :  { %531 = vadd.xlane.f32.xlu1 %v530_v30  ;;  %v249_v35 = vpop.f32.mrf.mxu1  ;;  %v4566_v30 = vld [vmem:[%s8321_s3] ss:$0 sm:$0xff] }
  0xdd   :  { %v5435_v41 = vadd.f32 %v249_v35, %v79_v34  ;;  %v543_v42 = vsel %vm260_vm2, %v539_v38, 0.0  ;;  %v798_v43 = vsel %vm260_vm2, %v5430_v37, 0.0  ;;  %v806_v45 = vmul.f32 %v5430_v37, %v5430_v37 }
  0xde   :  { %541 = vadd.xlane.f32.xlu0 %v540_v32  ;;  %v253_v39 = vpop.f32.mrf.mxu1 }
  0xdf   :  { %v5440_v44 = vadd.f32 %v253_v39, %v75_v31  ;;  %v1066_v46 = vsel %vm260_vm2, %v5435_v41, 0.0  ;;  %v808_v48 = vsel %vm260_vm2, %v806_v45, 0.0  ;;  %v1074_v53 = vmul.f32 %v5435_v41, %v5435_v41 }
  0xe0   :  { %534 = vadd.xlane.f32.xlu1 %v533_v36  ;;  %v255_v47 = vpop.f32.mrf.mxu1 }
  0xe1   :  { %v807_v49 = vmul.f32 %v5440_v44, %v5440_v44  ;;  %v5449_v50 = vadd.f32 %v255_v47, %v79_v34  ;;  %v801_v51 = vsel %vm260_vm2, %v5440_v44, 0.0  ;;  %v1076_v56 = vsel %vm260_vm2, %v1074_v53, 0.0 }
  0xe2   :  { %276 = vadd.xlane.f32.xlu0 %v275_v40 }
  0xe3   :  { %v811_v52 = vsel %vm260_vm2, %v807_v49, 0.0  ;;  %v1069_v54 = vsel %vm260_vm2, %v5449_v50, 0.0  ;;  %v1075_v55 = vmul.f32 %v5449_v50, %v5449_v50 }
  0xe4   :  { %544 = vadd.xlane.f32.xlu1 %v543_v42 }
  0xe5   :  { %v1079_v57 = vsel %vm260_vm2, %v1075_v55, 0.0 }
  0xe6   :  { %799 = vadd.xlane.f32.xlu0 %v798_v43 }
  0xe8   :  { %1067 = vadd.xlane.f32.xlu1 %v1066_v46 }
  0xea   :  { %809 = vadd.xlane.f32.xlu0 %v808_v48 }
  0xec   :  { %802 = vadd.xlane.f32.xlu1 %v801_v51 }
  0xee   :  { %812 = vadd.xlane.f32.xlu0 %v811_v52 }
  0xf0   :  { %1070 = vadd.xlane.f32.xlu1 %v1069_v54 }
  0xf2   :  { %1077 = vadd.xlane.f32.xlu0 %v1076_v56 }
  0xf4   :  { %1080 = vadd.xlane.f32.xlu1 %v1079_v57 }
 0x105   :  { %520 = vrot.lane.b32.xlu1 %v5414_v21, %s5311_s0 }
 0x108   :  { %518 = vrot.lane.b32.xlu0 %v5406_v15, %s5311_s0 }
 0x109   :  { %786 = vrot.lane.b32.xlu1 %v5408_v17, %s5311_s0 }
 0x10c   :  { %1054 = vrot.lane.b32.xlu0 %v5430_v37, %s5311_s0 }
 0x10d   :  { %788 = vrot.lane.b32.xlu1 %v5421_v29, %s5311_s0 }
 0x110   :  { %1322 = vrot.lane.b32.xlu0 %v5435_v41, %s5311_s0 }
 0x111   :  { %1056 = vrot.lane.b32.xlu1 %v5440_v44, %s5311_s0 }
 0x115   :  { %1324 = vrot.lane.b32.xlu1 %v5449_v50, %s5311_s0 }
 0x15f   :  { %v263_v58 = vpop.xlane.xlu0 %262 }
 0x160   :  { %v268_v59 = vmul.f32 0.015625, %v263_v58 }
 0x161   :  { %v274_v60 = vpop.xlane.xlu1 %273 }
 0x162   :  { %v280_v61 = vmul.f32 %v268_v59, %v268_v59  ;;  %v278_v62 = vmul.f32 0.015625, %v274_v60  ;;  %v284_v23 = vsub.f32 %v5406_v15, %v268_v59 }
 0x163   :  { %v266_v63 = vpop.xlane.xlu0 %265 }
 0x164   :  { %v282_v0 = vsub.f32 %v278_v62, %v280_v61  ;;  %v269_v5 = vmul.f32 0.015625, %v266_v63  ;;  %v5502_v61 = vld [vmem:[%s8322_s4 + $0x1] ss:$0 sm:$0xff] }
 0x165   :  { %v532_v1 = vpop.xlane.xlu1 %531 }
 0x166   :  { %v286_v2 = vadd.f32 1e-05, %v282_v0  ;;  %v536_v3 = vmul.f32 0.015625, %v532_v1  ;;  %v281_v10 = vmul.f32 %v269_v5, %v269_v5  ;;  %v285_v48 = vsub.f32 %v5414_v21, %v269_v5 }
 0x167   :  { %v542_v4 = vpop.xlane.xlu0 %541 }
 0x168   :  { %5128 = vrsqrt.f32 %v286_v2  ;;  %v548_v6 = vmul.f32 %v536_v3, %v536_v3  ;;  %v546_v7 = vmul.f32 0.015625, %v542_v4  ;;  %v552_v38 = vsub.f32 %v5408_v17, %v536_v3  ;;  %v5492_v17 = vld [vmem:[%s8321_s3 + $0x1] ss:$0 sm:$0xff] }
 0x169   :  { %v535_v13 = vpop.xlane.xlu1 %534 }
 0x16a   :  { %v550_v8 = vsub.f32 %v546_v7, %v548_v6  ;;  %v5477_v34 = vmul.f32 0.015625, %v535_v13 }
 0x16b   :  { %v277_v9 = vpop.xlane.xlu0 %276 }
 0x16c   :  { %v554_v11 = vadd.f32 1e-05, %v550_v8  ;;  %v279_v12 = vmul.f32 0.015625, %v277_v9  ;;  %v549_v43 = vmul.f32 %v5477_v34, %v5477_v34 }
 0x16d   :  { %v545_v24 = vpop.xlane.xlu1 %544 }
 0x16e   :  { %5130 = vrsqrt.f32 %v554_v11  ;;  %v283_v14 = vsub.f32 %v279_v12, %v281_v10  ;;  %v547_v39 = vmul.f32 0.015625, %v545_v24 }
 0x16f   :  { %v800_v16 = vpop.xlane.xlu0 %799 }
 0x170   :  { %v287_v18 = vadd.f32 1e-05, %v283_v14  ;;  %v804_v19 = vmul.f32 0.015625, %v800_v16  ;;  %v551_v52 = vsub.f32 %v547_v39, %v549_v43 }
 0x171   :  { %v1068_v36 = vpop.xlane.xlu1 %1067 }
 0x172   :  { %5132 = vrsqrt.f32 %v287_v18  ;;  %v816_v20 = vmul.f32 %v804_v19, %v804_v19  ;;  %v5487_v49 = vmul.f32 0.015625, %v1068_v36  ;;  %v555_v62 = vadd.f32 1e-05, %v551_v52 }
 0x173   :  { %v810_v22 = vpop.xlane.xlu0 %809  ;;  %v820_v8 = vsub.f32 %v5430_v37, %v804_v19  ;;  %v8333_v19 = vmov 2475754826  }
 0x174   :  { %v814_v25 = vmul.f32 0.015625, %v810_v22  ;;  %v1084_v55 = vmul.f32 %v5487_v49, %v5487_v49 }
 0x175   :  { %v5129_v26 = vpop.eup %5128  ;;  %v803_v56 = vpop.xlane.xlu1 %802 }
 0x176   :  { %v290_v27 = vmul.f32 %v5129_v26, %v284_v23  ;;  %v818_v28 = vsub.f32 %v814_v25, %v816_v20  ;;  %v5504_v63 = vmul.f32 0.015625, %v803_v56  ;;  %v8348_v23 = vmov 683565275  }
 0x177   :  { %v813_v31 = vpop.xlane.xlu0 %812  ;;  %v8337_v25 = vmov 2131351028  }
 0x178   :  { %v822_v32 = vadd.f32 1e-05, %v818_v28  ;;  %v298_v35 = vmul.f32 %v4566_v30, %v290_v27  ;;  %v5515_v9 = vmul.f32 %v5504_v63, %v5504_v63  ;;  %v5517_v11 = vmul.f32 0.015625, %v813_v31 }
 0x179   :  { %v8339_v31 = vmov 2102212464  }
 0x17a   :  { %5134 = vrsqrt.f32 %v822_v32  ;;  %v5480_v40 = vadd.f32 %v4567_v33, %v298_v35  ;;  %v8351_v35 = vmov 920167782  }
 0x17b   :  { %v5131_v15 = vpop.eup %5130  ;;  %v1078_v45 = vpop.xlane.xlu0 %1077  ;;  %5136 = vrsqrt.f32 %v555_v62 }
 0x17c   :  { %v558_v42 = vmul.f32 %v5131_v15, %v552_v38  ;;  %v308_v46 = vand.u32 2147483647, %v5480_v40  ;;  %v311_v47 = vand.u32 2139095040, %v5480_v40  ;;  %v1082_v57 = vmul.f32 0.015625, %v1078_v45 }
 0x17d   :  { %v8342_v38 = vmov 1326507024   ;;  %vm310_vm14 = vcmp.lt.s32.totalorder %v5480_v40, 0 }
 0x17e   :  { %v312_v53 = vshrl.u32 %v311_v47, 23  ;;  %v315_v58 = vand.u32 8388607, %v308_v46  ;;  %v566_v59 = vmul.f32 %v5492_v17, %v558_v42  ;;  %v1086_v1 = vsub.f32 %v1082_v57, %v1084_v55 }
 0x17f   :  { %v5133_v51 = vpop.eup %5132  ;;  %vm5641_vm0 = vcmp.le.f32.partialorder %v308_v46, 0.7853982 }
 0x180   :  { %v291_v54 = vmul.f32 %v5133_v51, %v285_v48  ;;  %v4568_v21 = vadd.s32 4294967169, %v312_v53  ;;  %v316_v2 = vor.u32 8388608, %v315_v58  ;;  %v5509_v4 = vadd.f32 %v5502_v61, %v566_v59 }
 0x181   :  { %v1090_v12 = vadd.f32 1e-05, %v1086_v1  ;;  %v819_v1 = vsub.f32 %v5517_v11, %v5515_v9 }
 0x182   :  { %v299_v60 = vmul.f32 %v4566_v30, %v291_v54  ;;  %v318_v0 = vadd.s32 1, %v4568_v21  ;;  %v5519_v14 = vshll.u32 %v316_v2, 8  ;;  %v579_v22 = vand.u32 2139095040, %v5509_v4 }
 0x183   :  { %5138 = vrsqrt.f32 %v1090_v12 }
 0x184   :  { %v5506_v3 = vadd.f32 %v4567_v33, %v299_v60  ;;  %vm319_vm3 = vcmp.gt.s32.totalorder %v318_v0, 0 }
 0x185   :  { %v320_v5 = vsel %vm319_vm3, %v318_v0, 0  ;;  %v5540_v0 = vld [vmem:[%s8321_s3 + $0x2] ss:$0 sm:$0xff] }
 0x186   :  { %v415_v6 = vand.u32 2139095040, %v5506_v3  ;;  %v322_v10 = vand.u32 31, %v320_v5  ;;  %v321_v13 = vshrl.u32 %v320_v5, 5  ;;  %v8336_v20 = vand.u32 2147483647, %v5506_v3 }
 0x187   :  { %v5135_v7 = vpop.eup %5134 }
 0x188   :  { %v826_v16 = vmul.f32 %v5135_v7, %v820_v8  ;;  %v323_v18 = vsub.s32 32, %v322_v10  ;;  %v325_v37 = vshll.u32 %v8348_v23, %v322_v10  ;;  %v328_v24 = vshll.u32 %v8333_v19, %v322_v10  ;;  %v1071_v7 = vpop.xlane.xlu1 %1070 }
 0x189   :  { %v331_v26 = vshll.u32 %v8337_v25, %v322_v10  ;;  %v416_v27 = vshrl.u32 %v415_v6, 23  ;;  %v334_v33 = vshll.u32 %v8339_v31, %v322_v10  ;;  %v337_v15 = vshll.u32 %v8351_v35, %v322_v10 }
 0x18a   :  { %v326_v28 = vshrl.u32 %v8333_v19, %v323_v18  ;;  %v329_v30 = vshrl.u32 %v8337_v25, %v323_v18  ;;  %v332_v32 = vshrl.u32 %v8339_v31, %v323_v18  ;;  %v335_v36 = vshrl.u32 %v8351_v35, %v323_v18 }
 0x18b   :  { %v338_v39 = vshrl.u32 %v8342_v38, %v323_v18  ;;  %vm340_vm4 = vcmp.lt.s32.totalorder %v321_v13, 1  ;;  %vm341_vm5 = vcmp.lt.s32.totalorder %v321_v13, 2  ;;  %vm343_vm6 = vcmp.lt.s32.totalorder %v321_v13, 4 }
 0x18c   :  { %v327_v42 = vor.u32 %v326_v28, %v325_v37  ;;  %v330_v43 = vor.u32 %v329_v30, %v328_v24  ;;  %v333_v45 = vor.u32 %v332_v32, %v331_v26  ;;  %v336_v47 = vor.u32 %v335_v36, %v334_v33  ;;  %v5557_v24 = vpop.eup %5136  ;;  %v5566_v30 = vld [vmem:[%s8322_s4 + $0x2] ss:$0 sm:$0xff] }
 0x18d   :  { %v339_v48 = vor.u32 %v338_v39, %v337_v15  ;;  %v4572_v51 = vadd.s32 4294967169, %v416_v27  ;;  %v324_v52 = vshrl.u32 %v8348_v23, %v323_v18  ;;  %vm342_vm7 = vcmp.lt.s32.totalorder %v321_v13, 3 }
 0x18e   :  { %v345_v53 = vsel %vm343_vm6, %v333_v45, 2102212464  ;;  %v348_v54 = vsel %vm340_vm4, %v327_v42, %v330_v43  ;;  %v352_v55 = vsel %vm340_vm4, %v330_v43, %v333_v45  ;;  %v349_v56 = vsel %vm343_vm6, %v336_v47, 920167782 }
 0x18f   :  { %v353_v57 = vsel %vm343_vm6, %v339_v48, 1326507024  ;;  %v422_v58 = vadd.s32 1, %v4572_v51  ;;  %v344_v21 = vsel %vm340_vm4, %v324_v52, %v327_v42  ;;  %v346_v59 = vsel %vm342_vm7, %v330_v43, %v345_v53 }
 0x190   :  { %v350_v60 = vsel %vm342_vm7, %v333_v45, %v349_v56  ;;  %v354_v62 = vsel %vm342_vm7, %v336_v47, %v353_v57  ;;  %v419_v6 = vand.u32 8388607, %v8336_v20  ;;  %v347_v9 = vsel %vm341_vm5, %v344_v21, %v346_v59 }
 0x191   :  { %v351_v2 = vsel %vm341_vm5, %v348_v54, %v350_v60  ;;  %v355_v5 = vsel %vm341_vm5, %v352_v55, %v354_v62  ;;  %vm423_vm8 = vcmp.gt.s32.totalorder %v422_v58, 0  ;;  %v834_v11 = vmul.f32 %v5540_v0, %v826_v16 }
 0x192   :  { %v5549_v8 = vmul.u32.u64.low %v5519_v14, %v355_v5  ;;  %v5550_v10 = vmul.u32.u64.high %v5519_v14, %v355_v5, %v5549_v8  ;;  %v5553_v18 = vmul.u32.u64.low %v5519_v14, %v351_v2  ;;  %v5554_v37 = vmul.u32.u64.high %v5519_v14, %v351_v2, %v5553_v18 }
 0x193   :  { %v580_v26 = vshrl.u32 %v579_v22, 23  ;;  %v1088_v27 = vsub.f32 %v5435_v41, %v5487_v49  ;;  %v424_v28 = vsel %vm423_vm8, %v422_v58, 0  ;;  %v5568_v32 = vadd.f32 1e-05, %v819_v1  ;;  %v4602_v49 = vld [vmem:[%s8321_s3 + $0x3] ss:$0 sm:$0xff] }
 0x194   :  { %v5570_v33 = vmul.f32 0.015625, %v1071_v7  ;;  %v426_v13 = vand.u32 31, %v424_v28  ;;  %v8332_v36 = vand.u32 2147483647, %v5509_v4  ;;  %v363_v16 = vmul.u32 %v5519_v14, %v347_v9 }
 0x195   :  { %vm365_vm9 = vc.u32 %v5550_v10, %v5553_v18  ;;  %v366_v12 = vadd.s32 1, %v5554_v37  ;;  %v420_v22 = vor.u32 8388608, %v419_v6  ;;  %v5577_v15 = vshrl.u32 %v424_v28, 5 }
 0x196   :  { %v427_v39 = vsub.s32 32, %v426_v13  ;;  %v5580_v42 = vadd.f32 %v5566_v30, %v834_v11  ;;  %v4580_v43 = vadd.s32 4294967169, %v580_v26  ;;  %v429_v47 = vshll.u32 %v8348_v23, %v426_v13 }
 0x197   :  { %v367_v45 = vsel %vm365_vm9, %v366_v12, %v5554_v37  ;;  %v432_v48 = vshll.u32 %v8333_v19, %v426_v13  ;;  %v435_v14 = vshll.u32 %v8337_v25, %v426_v13  ;;  %v438_v54 = vshll.u32 %v8339_v31, %v426_v13 }
 0x198   :  { %v368_v51 = vadd.s32 %v367_v45, %v363_v16  ;;  %v430_v52 = vshrl.u32 %v8333_v19, %v427_v39  ;;  %v433_v53 = vshrl.u32 %v8337_v25, %v427_v39  ;;  %v436_v55 = vshrl.u32 %v8339_v31, %v427_v39 }
 0x199   :  { %v439_v56 = vshrl.u32 %v8351_v35, %v427_v39  ;;  %v441_v57 = vshll.u32 %v8351_v35, %v426_v13  ;;  %v442_v58 = vshrl.u32 %v8342_v38, %v427_v39  ;;  %vm444_vm10 = vcmp.lt.s32.totalorder %v5577_v15, 1 }
 0x19a   :  { %v369_v21 = vadd.s32 536870912, %v368_v51  ;;  %v431_v59 = vor.u32 %v430_v52, %v429_v47  ;;  %v434_v60 = vor.u32 %v433_v53, %v432_v48  ;;  %v428_v62 = vshrl.u32 %v8348_v23, %v427_v39  ;;  %v5139_v47 = vpop.eup %5138 }
 0x19b   :  { %v437_v1 = vor.u32 %v436_v55, %v435_v14  ;;  %v440_v2 = vor.u32 %v439_v56, %v438_v54  ;;  %v443_v5 = vor.u32 %v442_v58, %v441_v57  ;;  %vm445_vm11 = vcmp.lt.s32.totalorder %v5577_v15, 2 }
 0x19c   :  { %v370_v6 = vshrl.u32 %v369_v21, 30  ;;  %vm447_vm12 = vcmp.lt.s32.totalorder %v5577_v15, 4  ;;  %v452_v7 = vsel %vm444_vm10, %v431_v59, %v434_v60  ;;  %vm446_vm13 = vcmp.lt.s32.totalorder %v5577_v15, 3 }
 0x19d   :  { %v453_v8 = vsel %vm447_vm12, %v440_v2, 920167782  ;;  %v456_v37 = vsel %vm444_vm10, %v434_v60, %v437_v1  ;;  %v457_v9 = vsel %vm447_vm12, %v443_v5, 1326507024  ;;  %v449_v28 = vsel %vm447_vm12, %v437_v1, 2102212464 }
 0x19e   :  { %v371_v11 = vshll.u32 %v370_v6, 30  ;;  %v394_v26 = vsub.s32 4, %v370_v6  ;;  %v454_v13 = vsel %vm446_vm13, %v437_v1, %v453_v8  ;;  %v458_v12 = vsel %vm446_vm13, %v440_v2, %v457_v9 }
 0x19f   :  { %v455_v16 = vsel %vm445_vm11, %v452_v7, %v454_v13  ;;  %v460_v39 = vshll.u32 %v420_v22, 8  ;;  %v586_v45 = vadd.s32 1, %v4580_v43  ;;  %v448_v14 = vsel %vm444_vm10, %v428_v62, %v431_v59  ;;  %v5663_v13 = vld [vmem:[%s8322_s4 + $0x3] ss:$0 sm:$0xff] }
 0x1a0   :  { %v5609_v48 = vsub.s32 %v368_v51, %v371_v11  ;;  %v459_v52 = vsel %vm445_vm11, %v456_v37, %v458_v12  ;;  %v450_v53 = vsel %vm446_vm13, %v434_v60, %v449_v28  ;;  %v8335_v22 = vand.u32 2147483647, %v5580_v42  ;;  %8361 = vst [vmem:[#allocation5_spill] sm:$0xff] %v5663_v13 }
 0x1a1   :  { %v5617_v54 = vmul.u32.u64.low %v460_v39, %v459_v52  ;;  %v5618_v55 = vmul.u32.u64.high %v460_v39, %v459_v52, %v5617_v54  ;;  %v395_v51 = vsel %vm310_vm14, %v394_v26, %v370_v6  ;;  %v1094_v58 = vmul.f32 %v5139_v47, %v1088_v27  ;;  %v1081_v27 = vpop.xlane.xlu1 %1080 }
 0x1a2   :  { %v374_v43 = vsub.s32 0, %v5609_v48  ;;  %v5624_v56 = vmul.u32.u64.low %v460_v39, %v455_v16  ;;  %v5625_v57 = vmul.u32.u64.high %v460_v39, %v455_v16, %v5624_v56  ;;  %v847_v21 = vand.u32 2139095040, %v5580_v42 }
 0x1a3   :  { %v583_v59 = vand.u32 8388607, %v8332_v36  ;;  %vm587_vm15 = vcmp.gt.s32.totalorder %v586_v45, 0  ;;  %v553_v60 = vsub.f32 %v5421_v29, %v5477_v34  ;;  %v5637_v62 = vmul.f32 %v5570_v33, %v5570_v33 }
 0x1a4   :  { %v4569_v41 = vmin.u32 %v374_v43, %v5609_v48  ;;  %v397_v29 = vsel %vm5641_vm0, 0, %v395_v51  ;;  %v451_v34 = vsel %vm445_vm11, %v448_v14, %v450_v53  ;;  %v848_v2 = vshrl.u32 %v847_v21, 23 }
 0x1a5   :  { %v851_v46 = vand.u32 8388607, %v8335_v22  ;;  %5140 = vrsqrt.f32 %v5568_v32  ;;  %vm469_vm1 = vc.u32 %v5618_v55, %v5624_v56  ;;  %v588_v6 = vsel %vm587_vm15, %v586_v45, 0 }
 0x1a6   :  { %v376_v5 = vclz %v4569_v41  ;;  %v470_v7 = vadd.s32 1, %v5625_v57  ;;  %v4592_v8 = vadd.s32 4294967169, %v848_v2  ;;  %v584_v37 = vor.u32 8388608, %v583_v59 }
 0x1a7   :  { %v1102_v9 = vmul.f32 %v4602_v49, %v1094_v58  ;;  %v5658_v11 = vmul.f32 0.015625, %v1081_v27  ;;  %v401_v15 = vadd.s32 3, %v397_v29  ;;  %v467_v28 = vmul.u32 %v460_v39, %v451_v34 }
 0x1a8   :  { %v4570_v26 = vadd.s32 4294967294, %v376_v5  ;;  %v471_v32 = vsel %vm469_vm1, %v470_v7, %v5625_v57  ;;  %v852_v16 = vor.u32 8388608, %v851_v46  ;;  %v854_v12 = vadd.s32 1, %v4592_v8 }
 0x1a9   :  { %v5666_v45 = vand.u32 31, %v588_v6  ;;  %v5669_v47 = vmul.f32 %v5557_v24, %v553_v60  ;;  %v364_v14 = vadd.s32 %v5553_v18, %v5550_v10  ;;  %v472_v52 = vadd.s32 %v471_v32, %v467_v28 }
 0x1aa   :  { %vm4571_vm3 = vcmp.lt.s32.totalorder %v4570_v26, 0  ;;  %vm855_vm4 = vcmp.gt.s32.totalorder %v854_v12, 0  ;;  %v5673_v53 = vshll.u32 %v584_v37, 8  ;;  %v5676_v54 = vadd.f32 %v5663_v13, %v1102_v9 }
 0x1ab   :  { %v379_v39 = vsel %vm4571_vm3, 0, %v4570_v26  ;;  %v5678_v57 = vand.u32 3, %v401_v15  ;;  %v473_v58 = vadd.s32 536870912, %v472_v52  ;;  %v5681_v24 = vadd.s32 %v5624_v56, %v5618_v55 }
 0x1ac   :  { %v380_v43 = vsub.s32 32, %v379_v39  ;;  %v384_v51 = vsub.s32 4294967266, %v379_v39  ;;  %v856_v21 = vsel %vm855_vm4, %v854_v12, 0  ;;  %v5683_v59 = vshll.u32 %v852_v16, 8 }
 0x1ad   :  { %v5686_v10 = vsub.s32 32, %v5666_v45  ;;  %v381_v18 = vshll.u32 %v5609_v48, %v379_v39  ;;  %v5689_v49 = vshrl.u32 %v473_v58, 30  ;;  %v858_v27 = vand.u32 31, %v856_v21 }
 0x1ae   :  { %v382_v60 = vshrl.u32 %v364_v14, %v380_v43  ;;  %v385_v41 = vadd.s32 127, %v384_v51  ;;  %v5691_v29 = vshrl.u32 %v588_v6, 5  ;;  %v593_v34 = vshll.u32 %v8348_v23, %v5666_v45 }
 0x1af   :  { %v475_v46 = vshll.u32 %v5689_v49, 30  ;;  %v596_v5 = vshll.u32 %v8333_v19, %v5666_v45  ;;  %v859_v48 = vsub.s32 32, %v858_v27  ;;  %v5701_v7 = vshrl.u32 %v8348_v23, %v5686_v10 }
 0x1b0   :  { %v383_v56 = vor.u32 %v382_v60, %v381_v18  ;;  %v386_v2 = vshll.u32 %v385_v41, 23  ;;  %v594_v6 = vshrl.u32 %v8333_v19, %v5686_v10  ;;  %v5707_v8 = vshll.u32 %v8337_v25, %v5666_v45 }
 0x1b1   :  { %v5709_v9 = vsub.s32 %v472_v52, %v475_v46  ;;  %v5711_v26 = vshrl.u32 %v856_v21, 5  ;;  %v597_v15 = vshrl.u32 %v8337_v25, %v5686_v10  ;;  %v861_v32 = vshll.u32 %v8348_v23, %v858_v27 }
 0x1b2   :  { %v387_v37 = vor.u32 4788187, %v386_v2  ;;  %v5715_v28 = vpop.eup %5140  ;;  %v862_v16 = vshrl.u32 %v8333_v19, %v859_v48  ;;  %v864_v12 = vshll.u32 %v8333_v19, %v858_v27  ;;  %v865_v14 = vshrl.u32 %v8337_v25, %v859_v48 }
 0x1b3   :  { %v390_v43 = vcvt.s32.f32 %v383_v56  ;;  %v478_v52 = vsub.s32 0, %v5709_v9  ;;  %v868_v51 = vshrl.u32 %v8339_v31, %v859_v48  ;;  %v867_v58 = vshll.u32 %v8337_v25, %v858_v27 }
 0x1b4   :  { %v388_v39 = vand.u32 2147483647, %v387_v37  ;;  %v870_v21 = vshll.u32 %v8339_v31, %v858_v27  ;;  %v871_v18 = vshrl.u32 %v8351_v35, %v859_v48  ;;  %v5726_v60 = vor.u32 %v594_v6, %v593_v34 }
 0x1b5   :  { %v4573_v2 = vmin.u32 %v478_v52, %v5709_v9  ;;  %v863_v46 = vor.u32 %v862_v16, %v861_v32  ;;  %v866_v36 = vor.u32 %v865_v14, %v864_v12  ;;  %v869_v19 = vor.u32 %v868_v51, %v867_v58 }
 0x1b6   :  { %v391_v41 = vmul.f32 %v390_v43, %v388_v39  ;;  %v872_v37 = vor.u32 %v871_v18, %v870_v21  ;;  %v873_v56 = vshll.u32 %v8351_v35, %v858_v27  ;;  %v874_v22 = vshrl.u32 %v8342_v38, %v859_v48 }
 0x1b7   :  { %v480_v20 = vclz %v4573_v2  ;;  %v860_v25 = vshrl.u32 %v8348_v23, %v859_v48  ;;  %v5732_v31 = vor.u32 %v597_v15, %v596_v5  ;;  %vm876_vm5 = vcmp.lt.s32.totalorder %v5711_v26, 1 }
 0x1b8   :  { %v392_v55 = vxor.u32 2147483648, %v391_v41  ;;  %v875_v13 = vor.u32 %v874_v22, %v873_v56  ;;  %vm877_vm6 = vcmp.lt.s32.totalorder %v5711_v26, 2  ;;  %vm878_vm7 = vcmp.lt.s32.totalorder %v5711_v26, 3 }
 0x1b9   :  { %v4574_v6 = vadd.s32 4294967294, %v480_v20  ;;  %vm879_vm8 = vcmp.lt.s32.totalorder %v5711_v26, 4  ;;  %v880_v27 = vsel %vm876_vm5, %v860_v25, %v863_v46  ;;  %vm414_vm9 = vcmp.lt.s32.totalorder %v5506_v3, 0 }
 0x1ba   :  { %v393_v34 = vsel %vm310_vm14, %v392_v55, %v391_v41  ;;  %v881_v22 = vsel %vm879_vm8, %v869_v19, 2102212464  ;;  %v884_v48 = vsel %vm876_vm5, %v863_v46, %v866_v36  ;;  %v885_v20 = vsel %vm879_vm8, %v872_v37, 920167782 }
 0x1bb   :  { %v396_v5 = vsel %vm5641_vm0, %v5480_v40, %v393_v34  ;;  %vm4575_vm10 = vcmp.lt.s32.totalorder %v4574_v6, 0  ;;  %v882_v25 = vsel %vm878_vm7, %v866_v36, %v881_v22  ;;  %v886_v1 = vsel %vm878_vm7, %v869_v19, %v885_v20 }
 0x1bc   :  { %5142 = vcosq.f32 %v396_v5  ;;  %vm608_vm11 = vcmp.lt.s32.totalorder %v5691_v29, 1  ;;  %v483_v55 = vsel %vm4575_vm10, 0, %v4574_v6  ;;  %v887_v15 = vsel %vm877_vm6, %v884_v48, %v886_v1 }
 0x1bd   :  { %5144 = vsinq.f32 %v396_v5  ;;  %v8362_v32 = vmov 2102212464   ;;  %v484_v12 = vsub.s32 32, %v483_v55  ;;  %v488_v14 = vsub.s32 4294967266, %v483_v55 }
 0x1be   :  { %v600_v16 = vshrl.u32 %v8362_v32, %v5686_v10  ;;  %v498_v39 = vsub.s32 4, %v5689_v49  ;;  %v888_v43 = vsel %vm876_vm5, %v866_v36, %v869_v19  ;;  %v883_v52 = vsel %vm877_vm6, %v880_v27, %v882_v25 }
 0x1bf   :  { %v889_v51 = vsel %vm879_vm8, %v875_v13, 1326507024  ;;  %v5769_v58 = vmul.u32.u64.low %v5683_v59, %v887_v15  ;;  %v5770_v21 = vmul.u32.u64.high %v5683_v59, %v887_v15, %v5769_v58  ;;  %vm609_vm12 = vcmp.lt.s32.totalorder %v5691_v29, 2 }
 0x1c0   :  { %v485_v18 = vshll.u32 %v5709_v9, %v483_v55  ;;  %v486_v41 = vshrl.u32 %v5681_v24, %v484_v12  ;;  %v489_v2 = vadd.s32 127, %v488_v14  ;;  %v890_v19 = vsel %vm878_vm7, %v872_v37, %v889_v51 }
 0x1c1   :  { %v891_v36 = vsel %vm877_vm6, %v888_v43, %v890_v19  ;;  %v601_v13 = vor.u32 %v600_v16, %v5707_v8  ;;  %v602_v46 = vshll.u32 %v8362_v32, %v5666_v45  ;;  %v603_v56 = vshrl.u32 %v8351_v35, %v5686_v10 }
 0x1c2   :  { %v8363_v34 = vand.u32 2147483647, %v5506_v3  ;;  %v487_v24 = vor.u32 %v486_v41, %v485_v18  ;;  %v490_v6 = vshll.u32 %v489_v2, 23  ;;  %vm407_vm14 = vcmp.eq.s32.totalorder %v5678_v57, 2 }
 0x1c3   :  { %v5792_v37 = vmul.u32.u64.low %v5683_v59, %v891_v36  ;;  %v5793_v26 = vmul.u32.u64.high %v5683_v59, %v891_v36, %v5792_v37  ;;  %v902_v8 = vadd.s32 1, %v5770_v21  ;;  %v604_v27 = vor.u32 %v603_v56, %v602_v46 }
 0x1c4   :  { %vm5787_vm13 = vcmp.le.f32.partialorder %v8363_v34, 0.7853982  ;;  %v605_v5 = vshll.u32 %v8351_v35, %v5666_v45  ;;  %v606_v22 = vshrl.u32 %v8342_v38, %v5686_v10  ;;  %vm404_vm15 = vcmp.eq.s32.totalorder %v5678_v57, 0 }
 0x1c5   :  { %v491_v48 = vor.u32 4788187, %v490_v6  ;;  %v499_v20 = vsel %vm414_vm9, %v498_v39, %v5689_v49  ;;  %v899_v25 = vmul.u32 %v5683_v59, %v883_v52  ;;  %vm611_vm0 = vcmp.lt.s32.totalorder %v5691_v29, 4 }
 0x1c6   :  { %vm403_vm1 = vcmp.lt.s32.totalorder %v5678_v57, 2  ;;  %v607_v1 = vor.u32 %v606_v22, %v605_v5  ;;  %vm610_vm3 = vcmp.lt.s32.totalorder %v5691_v29, 3  ;;  %v616_v45 = vsel %vm608_vm11, %v5726_v60, %v5732_v31 }
 0x1c7   :  { %v617_v10 = vsel %vm611_vm0, %v604_v27, 920167782  ;;  %vm400_vm4 = vweird.f32 %v5480_v40  ;;  %v492_v49 = vand.u32 2147483647, %v491_v48  ;;  %v494_v55 = vcvt.s32.f32 %v487_v24 }
 0x1c8   :  { %vm901_vm5 = vc.u32 %v5793_v26, %v5769_v58  ;;  %v613_v59 = vsel %vm611_vm0, %v601_v13, 2102212464  ;;  %v612_v16 = vsel %vm608_vm11, %v5701_v7, %v5726_v60  ;;  %v618_v12 = vsel %vm610_vm3, %v601_v13, %v617_v10  ;;  %v519_v10 = vpop.permute.xlu0 %518 }
 0x1c9   :  { %v903_v15 = vsel %vm901_vm5, %v902_v8, %v5770_v21  ;;  %v620_v14 = vsel %vm608_vm11, %v5732_v31, %v601_v13  ;;  %v495_v39 = vmul.f32 %v494_v55, %v492_v49  ;;  %v619_v52 = vsel %vm609_vm12, %v616_v45, %v618_v12  ;;  %v5143_v21 = vpop.eup %5142 }
 0x1ca   :  { %v904_v43 = vadd.s32 %v903_v15, %v899_v25  ;;  %v621_v51 = vsel %vm611_vm0, %v607_v1, 1326507024  ;;  %v614_v7 = vsel %vm610_vm3, %v5732_v31, %v613_v59  ;;  %v5145_v2 = vpop.eup %5144  ;;  %v408_v19 = vxor.u32 2147483648, %v5143_v21 }
 0x1cb   :  { %v622_v60 = vsel %vm610_vm3, %v604_v27, %v621_v51  ;;  %v5840_v18 = vmul.u32.u64.low %v5673_v53, %v619_v52  ;;  %v5841_v41 = vmul.u32.u64.high %v5673_v53, %v619_v52, %v5840_v18  ;;  %v496_v36 = vxor.u32 2147483648, %v495_v39 }
 0x1cc   :  { %v905_v13 = vadd.s32 536870912, %v904_v43  ;;  %v623_v46 = vsel %vm609_vm12, %v620_v14, %v622_v60  ;;  %v405_v56 = vxor.u32 2147483648, %v5145_v2  ;;  %v501_v34 = vsel %vm5787_vm13, 0, %v499_v20 }
 0x1cd   :  { %v5849_v31 = vmul.u32.u64.low %v5673_v53, %v623_v46  ;;  %v5850_v24 = vmul.u32.u64.high %v5673_v53, %v623_v46, %v5849_v31  ;;  %v409_v6 = vsel %vm407_vm14, %v408_v19, %v5145_v2  ;;  %v497_v37 = vsel %vm414_vm9, %v496_v36, %v495_v39  ;;  %v1337_v19 = vld [vmem:[#allocation2 + $0x38] sm:$0xff] }
 0x1ce   :  { %v906_v8 = vshrl.u32 %v905_v13, 30  ;;  %v615_v27 = vsel %vm609_vm12, %v612_v16, %v614_v7  ;;  %v406_v5 = vsel %vm404_vm15, %v5143_v21, %v405_v56  ;;  %v500_v22 = vsel %vm5787_vm13, %v5506_v3, %v497_v37  ;;  %4840 = vmatprep.subr.mxu0 %v1337_v19  ;;  %v1336_v31 = vld [vmem:[#allocation2 + $0x30] sm:$0xff] }
 0x1cf   :  { %v634_v48 = vadd.s32 1, %v5841_v41  ;;  %v1115_v20 = vand.u32 2139095040, %v5676_v54  ;;  %v410_v25 = vsel %vm403_vm1, %v406_v5, %v409_v6  ;;  %5146 = vcosq.f32 %v500_v22  ;;  %4841 = vmatpush3.msra.mxu0 %v1337_v19 }
 0x1d0   :  { %v505_v1 = vadd.s32 3, %v501_v34  ;;  %v907_v45 = vshll.u32 %v906_v8, 30  ;;  %v411_v29 = vsel %vm400_vm4, nan, %v410_v25  ;;  %5148 = vsinq.f32 %v500_v22  ;;  %4842 = vmatprep.subr.mxu0 %v1336_v31 }
 0x1d1   :  { %v631_v49 = vmul.u32 %v5673_v53, %v615_v27  ;;  %vm633_vm6 = vc.u32 %v5850_v24, %v5840_v18  ;;  %v5872_v9 = vadd.f32 %v519_v10, %v411_v29  ;;  %v567_v59 = vmul.f32 %v5492_v17, %v5669_v47  ;;  %v1692_v27 = vld [vmem:[#allocation2 + $0xb8] sm:$0xff]  ;;  %4843 = vmatpush3.msra.mxu0 %v1336_v31  ;;  %v1691_v10 = vld [vmem:[#allocation2 + $0xb0] sm:$0xff] }
 0x1d2   :  { %v5874_v55 = vsub.s32 %v904_v43, %v907_v45  ;;  %v635_v57 = vsel %vm633_vm6, %v634_v48, %v5841_v41  ;;  %v930_v15 = vsub.s32 4, %v906_v8  ;;  %v1116_v40 = vshrl.u32 %v1115_v20, 23  ;;  %4859 = vmatprep.subr.mxu1 %v1692_v27  ;;  %v1335_v48 = vld [vmem:[#allocation2 + $0x28] sm:$0xff] }
 0x1d3   :  { %v636_v16 = vadd.s32 %v635_v57, %v631_v49  ;;  %v1087_v12 = vsub.f32 %v5658_v11, %v5637_v62  ;;  %4856 = vmatprep.mubr.msk.f32.mxu0 %vm260_vm2, %v5872_v9  ;;  %v5884_v14 = vand.u32 3, %v505_v1  ;;  %v8366_v52 = vand.u32 2147483647, %v5676_v54  ;;  %4844 = vmatprep.subr.mxu0 %v1335_v48 }
 0x1d4   :  { %v910_v53 = vsub.s32 0, %v5874_v55  ;;  %v4604_v43 = vadd.s32 4294967169, %v1116_v40  ;;  %v821_v17 = vsub.f32 %v5440_v44, %v5504_v63  ;;  %vm846_vm7 = vcmp.lt.s32.totalorder %v5580_v42, 0  ;;  %4860 = vmatpush3.msra.mxu1 %v1692_v27  ;;  %4845 = vmatpush3.msra.mxu0 %v1335_v48  ;;  %v521_v27 = vpop.permute.xlu1 %520 }
 0x1d5   :  { %v637_v39 = vadd.s32 536870912, %v636_v16  ;;  %v1119_v51 = vand.u32 8388607, %v8366_v52  ;;  %v5893_v62 = vadd.f32 %v5502_v61, %v567_v59  ;;  %v1089_v11 = vsub.f32 %v5449_v50, %v5570_v33  ;;  %4861 = vmatprep.subr.mxu1 %v1691_v10 }
 0x1d6   :  { %v4593_v47 = vmin.u32 %v910_v53, %v5874_v55  ;;  %v931_v21 = vsel %vm846_vm7, %v930_v15, %v906_v8  ;;  %v1122_v60 = vadd.s32 1, %v4604_v43  ;;  %v5902_v41 = vmul.f32 %v5715_v28, %v821_v17  ;;  %4862 = vmatpush3.msra.mxu1 %v1691_v10 }
 0x1d7   :  { %v5899_v7 = vshrl.u32 %v637_v39, 30  ;;  %v5904_v44 = vadd.f32 1e-05, %v1087_v12  ;;  %v8367_v63 = vand.u32 2147483647, %v5580_v42  ;;  %vm507_vm9 = vcmp.lt.s32.totalorder %v5884_v14, 2 }
 0x1d8   :  { %v912_v61 = vclz %v4593_v47  ;;  %v1120_v13 = vor.u32 8388608, %v1119_v51  ;;  %vm1123_vm10 = vcmp.gt.s32.totalorder %v1122_v60, 0  ;;  %vm504_vm11 = vweird.f32 %v5506_v3  ;;  %v1690_v12 = vld [vmem:[#allocation2 + $0xa8] sm:$0xff]  ;;  %v1333_v51 = vld [vmem:[#allocation2 + $0x18] sm:$0xff] }
 0x1d9   :  { %vm5908_vm8 = vcmp.le.f32.partialorder %v8367_v63, 0.7853982  ;;  %v639_v36 = vshll.u32 %v5899_v7, 30  ;;  %v1124_v56 = vsel %vm1123_vm10, %v1122_v60, 0  ;;  %v683_v34 = vand.u32 2139095040, %v5893_v62  ;;  %4863 = vmatprep.subr.mxu1 %v1690_v12  ;;  %v1689_v63 = vld [vmem:[#allocation2 + $0xa0] sm:$0xff] }
 0x1da   :  { %v4594_v28 = vadd.s32 4294967294, %v912_v61  ;;  %v933_v46 = vsel %vm5908_vm8, 0, %v931_v21  ;;  %vm508_vm12 = vcmp.eq.s32.totalorder %v5884_v14, 0  ;;  %v5921_v37 = vand.u32 31, %v1124_v56  ;;  %4864 = vmatpush3.msra.mxu1 %v1690_v12 }
 0x1db   :  { %v5919_v6 = vsub.s32 %v636_v16, %v639_v36  ;;  %v680_v8 = vand.u32 2147483647, %v5893_v62  ;;  %vm511_vm13 = vcmp.eq.s32.totalorder %v5884_v14, 2  ;;  %v900_v5 = vadd.s32 %v5769_v58, %v5793_v26  ;;  %4865 = vmatprep.subr.mxu1 %v1689_v63  ;;  %v1688_v14 = vld [vmem:[#allocation2 + $0x98] sm:$0xff] }
 0x1dc   :  { %vm4595_vm14 = vcmp.lt.s32.totalorder %v4594_v28, 0  ;;  %v5929_v22 = vadd.s32 %v5840_v18, %v5850_v24  ;;  %v5147_v20 = vpop.eup %5146  ;;  %v5931_v1 = vadd.s32 3, %v933_v46  ;;  %v5934_v29 = vshll.u32 %v1120_v13, 8  ;;  %v1334_v24 = vld [vmem:[#allocation2 + $0x20] sm:$0xff]  ;;  %v1332_v13 = vld [vmem:[#allocation2 + $0x10] sm:$0xff]  ;;  %4866 = vmatpush3.msra.mxu1 %v1689_v63 }
 0x1dd   :  { %v915_v25 = vsel %vm4595_vm14, 0, %v4594_v28  ;;  %v642_v45 = vsub.s32 0, %v5919_v6  ;;  %v5149_v58 = vpop.eup %5148  ;;  %v512_v26 = vxor.u32 2147483648, %v5147_v20  ;;  %v684_v18 = vshrl.u32 %v683_v34, 23  ;;  %4846 = vmatprep.subr.mxu0 %v1334_v24  ;;  %4867 = vmatprep.subr.mxu1 %v1688_v14 }
 0x1de   :  { %v916_v49 = vsub.s32 32, %v915_v25  ;;  %v920_v57 = vsub.s32 4294967266, %v915_v25  ;;  %v509_v59 = vxor.u32 2147483648, %v5149_v58  ;;  %v5938_v16 = vsub.s32 32, %v5921_v37  ;;  %4847 = vmatpush3.msra.mxu0 %v1334_v24  ;;  %4868 = vmatpush3.msra.mxu1 %v1688_v14 }
 0x1df   :  { %v4581_v15 = vmin.u32 %v642_v45, %v5919_v6  ;;  %v5942_v40 = vand.u32 8388607, %v680_v8  ;;  %v513_v53 = vsel %vm511_vm13, %v512_v26, %v5149_v58  ;;  %v917_v39 = vshll.u32 %v5874_v55, %v915_v25  ;;  %4848 = vmatprep.subr.mxu0 %v1333_v51  ;;  %v1331_v45 = vld [vmem:[#allocation2 + $0x8] sm:$0xff] }
 0x1e0   :  { %v918_v43 = vshrl.u32 %v900_v5, %v916_v49  ;;  %v921_v52 = vadd.s32 127, %v920_v57  ;;  %v510_v17 = vsel %vm508_vm12, %v5147_v20, %v509_v59  ;;  %v662_v21 = vsub.s32 4, %v5899_v7  ;;  %4849 = vmatpush3.msra.mxu0 %v1333_v51  ;;  %v1687_v49 = vld [vmem:[#allocation2 + $0x90] sm:$0xff] }
 0x1e1   :  { %v644_v47 = vclz %v4581_v15  ;;  %v5950_v60 = vshrl.u32 %v1124_v56, 5  ;;  %v514_v61 = vsel %vm507_vm9, %v510_v17, %v513_v53  ;;  %v5954_v36 = vadd.s32 4294967169, %v684_v18  ;;  %4850 = vmatprep.subr.mxu0 %v1332_v13  ;;  %4869 = vmatprep.subr.mxu1 %v1687_v49  ;;  %v1330_v15 = vld [vmem:[#allocation2] sm:$0xff] }
 0x1e2   :  { %v919_v55 = vor.u32 %v918_v43, %v917_v39  ;;  %v922_v19 = vshll.u32 %v921_v52, 23  ;;  %v515_v28 = vsel %vm504_vm11, nan, %v514_v61  ;;  %v5960_v56 = vshrl.u32 %v8348_v23, %v5938_v16  ;;  %4851 = vmatpush3.msra.mxu0 %v1332_v13  ;;  %4870 = vmatpush3.msra.mxu1 %v1687_v49  ;;  %v1686_v52 = vld [vmem:[#allocation2 + $0x88] sm:$0xff]  ;;  %v2050_v61 = vld [vmem:[#allocation2 + $0x138] sm:$0xff] }
 0x1e3   :  { %v4582_v46 = vadd.s32 4294967294, %v644_v47  ;;  %v8370_v34 = vmov 2475754826   ;;  %v1129_v48 = vshll.u32 %v8348_v23, %v5921_v37  ;;  %v8371_v20 = vmov 2131351028   ;;  %4852 = vmatprep.subr.mxu0 %v1331_v45  ;;  %4871 = vmatprep.subr.mxu1 %v1686_v52 }
 0x1e4   :  { %v1130_v31 = vshrl.u32 %v8370_v34, %v5938_v16  ;;  %v923_v5 = vor.u32 4788187, %v922_v19  ;;  %v1132_v3 = vshll.u32 %v8370_v34, %v5921_v37  ;;  %v1133_v25 = vshrl.u32 %v8371_v20, %v5938_v16  ;;  %4853 = vmatpush3.msra.mxu0 %v1331_v45  ;;  %4872 = vmatpush3.msra.mxu1 %v1686_v52 }
 0x1e5   :  { %v5970_v10 = vadd.f32 %v521_v27, %v515_v28  ;;  %v926_v58 = vcvt.s32.f32 %v919_v55  ;;  %vm4583_vm15 = vcmp.lt.s32.totalorder %v4582_v46, 0  ;;  %v1136_v26 = vshrl.u32 %v8362_v32, %v5938_v16  ;;  %4854 = vmatprep.subr.mxu0 %v1330_v15 }
 0x1e6   :  { %v924_v57 = vand.u32 2147483647, %v923_v5  ;;  %v647_v18 = vsel %vm4583_vm15, 0, %v4582_v46  ;;  %v1131_v24 = vor.u32 %v1130_v31, %v1129_v48  ;;  %v1135_v59 = vshll.u32 %v8371_v20, %v5921_v37  ;;  %4855 = vmatpush3.msra.mxu0 %v1330_v15 }
 0x1e7   :  { %v648_v12 = vsub.s32 32, %v647_v18  ;;  %v652_v53 = vsub.s32 4294967266, %v647_v18  ;;  %v1134_v39 = vor.u32 %v1133_v25, %v1132_v3  ;;  %v1138_v43 = vshll.u32 %v8362_v32, %v5921_v37  ;;  %4878 = vmatprep.subr.mxu0 %v2050_v61  ;;  %4857 = vmatmul.mubr.msk.f32.vlgmr.msra.gmra.mxu0 %vm260_vm2, %v5970_v10  ;;  %v2048_v25 = vld [vmem:[#allocation2 + $0x128] sm:$0xff] }
 0x1e8   :  { %v927_v51 = vmul.f32 %v926_v58, %v924_v57  ;;  %v649_v17 = vshll.u32 %v5919_v6, %v647_v18  ;;  %v1139_v47 = vshrl.u32 %v8351_v35, %v5938_v16  ;;  %v1142_v63 = vshrl.u32 %v8342_v38, %v5938_v16  ;;  %v1685_v6 = vld [vmem:[#allocation2 + $0x80] sm:$0xff]  ;;  %v2049_v16 = vld [vmem:[#allocation2 + $0x130] sm:$0xff]  ;;  %4879 = vmatpush3.msra.mxu0 %v2050_v61 }
 0x1e9   :  { %vm578_vm0 = vcmp.lt.s32.totalorder %v5509_v4, 0  ;;  %v650_v55 = vshrl.u32 %v5929_v22, %v648_v12  ;;  %v653_v19 = vadd.s32 127, %v652_v53  ;;  %v1137_v13 = vor.u32 %v1136_v26, %v1135_v59  ;;  %4873 = vmatprep.subr.mxu1 %v1685_v6  ;;  %4880 = vmatprep.subr.mxu0 %v2049_v16  ;;  %v2047_v59 = vld [vmem:[#allocation2 + $0x120] sm:$0xff] }
 0x1ea   :  { %v1141_v28 = vshll.u32 %v8351_v35, %v5921_v37  ;;  %v928_v46 = vxor.u32 2147483648, %v927_v51  ;;  %v1140_v31 = vor.u32 %v1139_v47, %v1138_v43  ;;  %vm1144_vm1 = vcmp.lt.s32.totalorder %v5950_v60, 1  ;;  %v5992_v37 = vld [vmem:[#allocation2 + $0x1b8] sm:$0xff]  ;;  %4874 = vmatpush3.msra.mxu1 %v1685_v6  ;;  %4881 = vmatpush3.msra.mxu0 %v2049_v16 }
 0x1eb   :  { %vm1145_vm3 = vcmp.lt.s32.totalorder %v5950_v60, 2  ;;  %v651_v22 = vor.u32 %v650_v55, %v649_v17  ;;  %v654_v14 = vshll.u32 %v653_v19, 23  ;;  %vm1147_vm4 = vcmp.lt.s32.totalorder %v5950_v60, 4  ;;  %4897 = vmatprep.subr.mxu1 %v5992_v37  ;;  %4882 = vmatprep.subr.mxu0 %v2048_v25 }
 0x1ec   :  { %v1143_v27 = vor.u32 %v1142_v63, %v1141_v28  ;;  %v929_v5 = vsel %vm846_vm7, %v928_v46, %v927_v51  ;;  %vm1146_vm5 = vcmp.lt.s32.totalorder %v5950_v60, 3  ;;  %v1152_v48 = vsel %vm1144_vm1, %v1131_v24, %v1134_v39  ;;  %4883 = vmatpush3.msra.mxu0 %v2048_v25  ;;  %v2046_v51 = vld [vmem:[#allocation2 + $0x118] sm:$0xff]  ;;  %v2045_v28 = vld [vmem:[#allocation2 + $0x110] sm:$0xff]  ;;  %v2044_v46 = vld [vmem:[#allocation2 + $0x108] sm:$0xff] }
 0x1ed   :  { %v1153_v3 = vsel %vm1147_vm4, %v1140_v31, 920167782  ;;  %v932_v45 = vsel %vm5908_vm8, %v5580_v42, %v929_v5  ;;  %v655_v58 = vor.u32 4788187, %v654_v14  ;;  %v1148_v26 = vsel %vm1144_vm1, %v5960_v56, %v1131_v24  ;;  %4884 = vmatprep.subr.mxu0 %v2047_v59  ;;  %v2043_v14 = vld [vmem:[#allocation2 + $0x100] sm:$0xff] }
 0x1ee   :  { %v1149_v49 = vsel %vm1147_vm4, %v1137_v13, 2102212464  ;;  %5150 = vcosq.f32 %v932_v45  ;;  %v658_v57 = vcvt.s32.f32 %v651_v22  ;;  %v1154_v18 = vsel %vm1146_vm5, %v1137_v13, %v1153_v3  ;;  %4885 = vmatpush3.msra.mxu0 %v2047_v59 }
 0x1ef   :  { %v1156_v2 = vsel %vm1144_vm1, %v1134_v39, %v1137_v13  ;;  %5152 = vsinq.f32 %v932_v45  ;;  %v656_v15 = vand.u32 2147483647, %v655_v58  ;;  %v1155_v56 = vsel %vm1145_vm3, %v1152_v48, %v1154_v18  ;;  %4886 = vmatprep.subr.mxu0 %v2046_v51 }
 0x1f0   :  { %v1157_v24 = vsel %vm1147_vm4, %v1143_v27, 1326507024  ;;  %v1150_v12 = vsel %vm1146_vm5, %v1134_v39, %v1149_v49  ;;  %v6023_v43 = vmul.u32.u64.low %v5934_v29, %v1155_v56  ;;  %v6024_v52 = vmul.u32.u64.high %v5934_v29, %v1155_v56, %v6023_v43  ;;  %4887 = vmatpush3.msra.mxu0 %v2046_v51 }
 0x1f1   :  { %v1158_v53 = vsel %vm1146_vm5, %v1140_v31, %v1157_v24  ;;  %v659_v17 = vmul.f32 %v658_v57, %v656_v15  ;;  %v690_v63 = vadd.s32 1, %v5954_v36  ;;  %v835_v61 = vmul.f32 %v5540_v0, %v5902_v41  ;;  %4888 = vmatprep.subr.mxu0 %v2045_v28 }
 0x1f2   :  { %v1159_v47 = vsel %vm1145_vm3, %v1156_v2, %v1158_v53  ;;  %v6033_v39 = vand.u32 3, %v5931_v1  ;;  %v663_v55 = vsel %vm578_vm0, %v662_v21, %v5899_v7  ;;  %5154 = vrsqrt.f32 %v5904_v44  ;;  %4889 = vmatpush3.msra.mxu0 %v2045_v28 }
 0x1f3   :  { %v6041_v19 = vmul.u32.u64.low %v5934_v29, %v1159_v47  ;;  %v6042_v13 = vmul.u32.u64.high %v5934_v29, %v1159_v47, %v6041_v19  ;;  %v660_v36 = vxor.u32 2147483648, %v659_v17  ;;  %v1151_v0 = vsel %vm1145_vm3, %v1148_v26, %v1150_v12  ;;  %4890 = vmatprep.subr.mxu0 %v2044_v46 }
 0x1f4   :  { %vm691_vm6 = vcmp.gt.s32.totalorder %v690_v63, 0  ;;  %v8372_v41 = vand.u32 2147483647, %v5509_v4  ;;  %v1170_v7 = vadd.s32 1, %v6024_v52  ;;  %v688_v21 = vor.u32 8388608, %v5942_v40  ;;  %4891 = vmatpush3.msra.mxu0 %v2044_v46 }
 0x1f5   :  { %v692_v6 = vsel %vm691_vm6, %v690_v63, 0  ;;  %v661_v44 = vsel %vm578_vm0, %v660_v36, %v659_v17  ;;  %v6060_v16 = vadd.f32 %v5566_v30, %v835_v61  ;;  %vm940_vm8 = vcmp.eq.s32.totalorder %v6033_v39, 0  ;;  %4892 = vmatprep.subr.mxu0 %v2043_v14 }
 0x1f6   :  { %vm6049_vm7 = vcmp.le.f32.partialorder %v8372_v41, 0.7853982  ;;  %v694_v31 = vand.u32 31, %v692_v6  ;;  %v1167_v22 = vmul.u32 %v5934_v29, %v1151_v0  ;;  %vm1169_vm9 = vc.u32 %v6042_v13, %v6023_v43  ;;  %4893 = vmatpush3.msra.mxu0 %v2043_v14 }
 0x1f7   :  { %v665_v60 = vsel %vm6049_vm7, 0, %v663_v55  ;;  %v664_v40 = vsel %vm6049_vm7, %v5509_v4, %v661_v44  ;;  %vm939_vm10 = vcmp.lt.s32.totalorder %v6033_v39, 2  ;;  %vm943_vm11 = vcmp.eq.s32.totalorder %v6033_v39, 2 }
 0x1f8   :  { %5156 = vcosq.f32 %v664_v40  ;;  %v1171_v30 = vsel %vm1169_vm9, %v1170_v7, %v6024_v52  ;;  %v695_v27 = vsub.s32 32, %v694_v31  ;;  %vm936_vm12 = vweird.f32 %v5580_v42 }
 0x1f9   :  { %5158 = vsinq.f32 %v664_v40  ;;  %v669_v5 = vadd.s32 3, %v665_v60  ;;  %v1172_v48 = vadd.s32 %v1171_v30, %v1167_v22  ;;  %v6073_v29 = vshll.u32 %v688_v21, 8 }
 0x1fa   :  { %v698_v3 = vshrl.u32 %v8370_v34, %v695_v27  ;;  %v701_v25 = vshrl.u32 %v8371_v20, %v695_v27  ;;  %v704_v45 = vshrl.u32 %v8362_v32, %v695_v27  ;;  %v951_v58 = vand.u32 2139095040, %v6060_v16 }
 0x1fb   :  { %v1173_v26 = vadd.s32 536870912, %v1172_v48  ;;  %v697_v49 = vshll.u32 %v8348_v23, %v694_v31  ;;  %v700_v57 = vshll.u32 %v8370_v34, %v694_v31  ;;  %v707_v18 = vshrl.u32 %v8351_v35, %v695_v27  ;;  %v5151_v2 = vpop.eup %5150 }
 0x1fc   :  { %v693_v59 = vshrl.u32 %v692_v6, 5  ;;  %v703_v15 = vshll.u32 %v8371_v20, %v694_v31  ;;  %v706_v56 = vshll.u32 %v8362_v32, %v694_v31  ;;  %v710_v24 = vshrl.u32 %v8342_v38, %v695_v27  ;;  %v5153_v12 = vpop.eup %5152 }
 0x1fd   :  { %v944_v53 = vxor.u32 2147483648, %v5151_v2  ;;  %v6085_v52 = vshrl.u32 %v1173_v26, 30  ;;  %v699_v51 = vor.u32 %v698_v3, %v697_v49  ;;  %v702_v17 = vor.u32 %v701_v25, %v700_v57 }
 0x1fe   :  { %v941_v47 = vxor.u32 2147483648, %v5153_v12  ;;  %v705_v63 = vor.u32 %v704_v45, %v703_v15  ;;  %v708_v61 = vor.u32 %v707_v18, %v706_v56  ;;  %v709_v55 = vshll.u32 %v8351_v35, %v694_v31  ;;  %v1055_v31 = vpop.permute.xlu0 %1054 }
 0x1ff   :  { %v945_v19 = vsel %vm943_vm11, %v944_v53, %v5153_v12  ;;  %v670_v28 = vand.u32 3, %v669_v5  ;;  %v1175_v36 = vshll.u32 %v6085_v52, 30  ;;  %v952_v0 = vshrl.u32 %v951_v58, 23  ;;  %v5155_v21 = vpop.eup %5154 }
 0x200   :  { %v942_v41 = vsel %vm940_vm8, %v5151_v2, %v941_v47  ;;  %v696_v1 = vshrl.u32 %v8348_v23, %v695_v27  ;;  %v711_v7 = vor.u32 %v710_v24, %v709_v55  ;;  %vm712_vm13 = vcmp.lt.s32.totalorder %v693_v59, 1 }
 0x201   :  { %v946_v6 = vsel %vm939_vm10, %v942_v41, %v945_v19  ;;  %v6096_v46 = vsub.s32 %v1172_v48, %v1175_v36  ;;  %vm715_vm14 = vcmp.lt.s32.totalorder %v693_v59, 4  ;;  %v720_v44 = vsel %vm712_vm13, %v699_v51, %v702_v17 }
 0x202   :  { %v947_v60 = vsel %vm936_vm12, nan, %v946_v6  ;;  %vm714_vm15 = vcmp.lt.s32.totalorder %v693_v59, 3  ;;  %v717_v40 = vsel %vm715_vm14, %v705_v63, 2102212464  ;;  %v721_v22 = vsel %vm715_vm14, %v708_v61, 920167782 }
 0x203   :  { %v6101_v14 = vadd.f32 %v1055_v31, %v947_v60  ;;  %v1178_v30 = vsub.s32 0, %v6096_v46  ;;  %vm713_vm0 = vcmp.lt.s32.totalorder %v693_v59, 2  ;;  %v722_v27 = vsel %vm714_vm15, %v705_v63, %v721_v22 }
 0x204   :  { %v716_v39 = vsel %vm712_vm13, %v696_v1, %v699_v51  ;;  %v723_v5 = vsel %vm713_vm0, %v720_v44, %v722_v27  ;;  %v724_v48 = vsel %vm712_vm13, %v702_v17, %v705_v63  ;;  %v725_v3 = vsel %vm715_vm14, %v711_v7, 1326507024  ;;  %v5284_v44 = vld [vmem:[%s8321_s3 + $0x3] ss:$0 sm:$0xff] }
 0x205   :  { %v5157_v25 = vpop.eup %5156  ;;  %v4605_v42 = vmin.u32 %v1178_v30, %v6096_v46  ;;  %v718_v45 = vsel %vm714_vm15, %v702_v17, %v717_v40  ;;  %v726_v58 = vsel %vm714_vm15, %v708_v61, %v725_v3  ;;  %v4596_v26 = vadd.s32 4294967169, %v952_v0  ;;  %4894 = vmatprep.mubr.msk.f32.mxu0 %vm260_vm2, %v6101_v14 }
 0x206   :  { %v5159_v49 = vpop.eup %5158  ;;  %v676_v57 = vxor.u32 2147483648, %v5157_v25  ;;  %v727_v18 = vsel %vm713_vm0, %v724_v48, %v726_v58  ;;  %v6112_v2 = vmul.u32.u64.low %v6073_v29, %v723_v5  ;;  %v6113_v15 = vmul.u32.u64.high %v6073_v29, %v723_v5, %v6112_v2 }
 0x207   :  { %vm671_vm1 = vcmp.lt.s32.totalorder %v670_v28, 2  ;;  %v673_v56 = vxor.u32 2147483648, %v5159_v49  ;;  %vm675_vm3 = vcmp.eq.s32.totalorder %v670_v28, 2  ;;  %v1180_v24 = vclz %v4605_v42  ;;  %v8375_v42 = vld [vmem:[#allocation5_spill] sm:$0xff] }
 0x208   :  { %vm672_vm4 = vcmp.eq.s32.totalorder %v670_v28, 0  ;;  %v677_v12 = vsel %vm675_vm3, %v676_v57, %v5159_v49  ;;  %v6117_v53 = vmul.u32.u64.low %v6073_v29, %v727_v18  ;;  %v6118_v51 = vmul.u32.u64.high %v6073_v29, %v727_v18, %v6117_v53  ;;  %v787_v28 = vpop.permute.xlu1 %786 }
 0x209   :  { %v674_v17 = vsel %vm672_vm4, %v5157_v25, %v673_v56  ;;  %v4606_v47 = vadd.s32 4294967294, %v1180_v24  ;;  %v719_v63 = vsel %vm713_vm0, %v716_v39, %v718_v45  ;;  %v958_v61 = vadd.s32 1, %v4596_v26 }
 0x20a   :  { %v1095_v55 = vmul.f32 %v5155_v21, %v1089_v11  ;;  %vm668_vm5 = vweird.f32 %v5509_v4  ;;  %v678_v19 = vsel %vm671_vm1, %v674_v17, %v677_v12  ;;  %v738_v36 = vadd.s32 1, %v6113_v15 }
 0x20b   :  { %v679_v0 = vsel %vm668_vm5, nan, %v678_v19  ;;  %vm4607_vm6 = vcmp.lt.s32.totalorder %v4606_v47, 0  ;;  %vm959_vm7 = vcmp.gt.s32.totalorder %v958_v61, 0  ;;  %v735_v59 = vmul.u32 %v6073_v29, %v719_v63 }
 0x20c   :  { %v6126_v41 = vadd.f32 %v787_v28, %v679_v0  ;;  %v1183_v1 = vsel %vm4607_vm6, 0, %v4606_v47  ;;  %vm737_vm8 = vc.u32 %v6118_v51, %v6112_v2  ;;  %v1168_v50 = vadd.s32 %v6023_v43, %v6042_v13 }
 0x20d   :  { %v1184_v33 = vsub.s32 32, %v1183_v1  ;;  %v1188_v4 = vsub.s32 4294967266, %v1183_v1  ;;  %v739_v11 = vsel %vm737_vm8, %v738_v36, %v6113_v15  ;;  %v948_v21 = vand.u32 2147483647, %v6060_v16 }
 0x20e   :  { %v740_v7 = vadd.s32 %v739_v11, %v735_v59  ;;  %v960_v6 = vsel %vm959_vm7, %v958_v61, 0  ;;  %v1103_v60 = vmul.f32 %v5284_v44, %v1095_v55  ;;  %4875 = vmatprep.mubr.msk.f32.mxu1 %vm260_vm2, %v6126_v41  ;;  %v1185_v29 = vshll.u32 %v6096_v46, %v1183_v1 }
 0x20f   :  { %v1186_v31 = vshrl.u32 %v1168_v50, %v1184_v33  ;;  %v1189_v43 = vadd.s32 127, %v1188_v4  ;;  %v962_v13 = vand.u32 31, %v960_v6  ;;  %v955_v5 = vand.u32 8388607, %v948_v21 }
 0x210   :  { %v741_v40 = vadd.s32 536870912, %v740_v7  ;;  %v6148_v45 = vadd.f32 %v8375_v42, %v1103_v60  ;;  %v961_v12 = vshrl.u32 %v960_v6, 5  ;;  %v8376_v19 = vand.u32 2147483647, %v5676_v54 }
 0x211   :  { %v1187_v22 = vor.u32 %v1186_v31, %v1185_v29  ;;  %v1190_v30 = vshll.u32 %v1189_v43, 23  ;;  %v963_v27 = vsub.s32 32, %v962_v13  ;;  %v965_v3 = vshll.u32 %v8348_v23, %v962_v13 }
 0x212   :  { %v6141_v39 = vshrl.u32 %v741_v40, 30  ;;  %v968_v58 = vshll.u32 %v8370_v34, %v962_v13  ;;  %v974_v49 = vshll.u32 %v8362_v32, %v962_v13  ;;  %v971_v17 = vshll.u32 %v8371_v20, %v962_v13 }
 0x213   :  { %v1191_v48 = vor.u32 4788187, %v1190_v30  ;;  %v966_v25 = vshrl.u32 %v8370_v34, %v963_v27  ;;  %v969_v26 = vshrl.u32 %v8371_v20, %v963_v27  ;;  %v1194_v18 = vcvt.s32.f32 %v1187_v22 }
 0x214   :  { %v743_v46 = vshll.u32 %v6141_v39, 30  ;;  %v972_v15 = vshrl.u32 %v8362_v32, %v963_v27  ;;  %v975_v56 = vshrl.u32 %v8351_v35, %v963_v27  ;;  %v978_v55 = vshrl.u32 %v8342_v38, %v963_v27 }
 0x215   :  { %v1192_v57 = vand.u32 2147483647, %v1191_v48  ;;  %v967_v53 = vor.u32 %v966_v25, %v965_v3  ;;  %v970_v63 = vor.u32 %v969_v26, %v968_v58  ;;  %vm6162_vm9 = vcmp.le.f32.partialorder %v8376_v19, 0.7853982 }
 0x216   :  { %v6156_v24 = vsub.s32 %v740_v7, %v743_v46  ;;  %v976_v61 = vor.u32 %v975_v56, %v974_v49  ;;  %vm1114_vm10 = vcmp.lt.s32.totalorder %v5676_v54, 0  ;;  %v956_v1 = vor.u32 8388608, %v955_v5 }
 0x217   :  { %v1195_v47 = vmul.f32 %v1194_v18, %v1192_v57  ;;  %v973_v59 = vor.u32 %v972_v15, %v971_v17  ;;  %v977_v50 = vshll.u32 %v8351_v35, %v962_v13  ;;  %v1198_v33 = vsub.s32 4, %v6085_v52 }
 0x218   :  { %v746_v28 = vsub.s32 0, %v6156_v24  ;;  %vm980_vm11 = vcmp.lt.s32.totalorder %v961_v12, 1  ;;  %vm983_vm12 = vcmp.lt.s32.totalorder %v961_v12, 4  ;;  %v1219_v44 = vand.u32 2139095040, %v6148_v45 }
 0x219   :  { %v1196_v0 = vxor.u32 2147483648, %v1195_v47  ;;  %v979_v11 = vor.u32 %v978_v55, %v977_v50  ;;  %v988_v7 = vsel %vm980_vm11, %v967_v53, %v970_v63  ;;  %v989_v6 = vsel %vm983_vm12, %v976_v61, 920167782 }
 0x21a   :  { %v4585_v4 = vmin.u32 %v746_v28, %v6156_v24  ;;  %v964_v31 = vshrl.u32 %v8348_v23, %v963_v27  ;;  %vm982_vm13 = vcmp.lt.s32.totalorder %v961_v12, 3  ;;  %vm981_vm14 = vcmp.lt.s32.totalorder %v961_v12, 2 }
 0x21b   :  { %v1197_v60 = vsel %vm1114_vm10, %v1196_v0, %v1195_v47  ;;  %v985_v43 = vsel %vm983_vm12, %v973_v59, 2102212464  ;;  %v990_v13 = vsel %vm982_vm13, %v973_v59, %v989_v6  ;;  %v996_v40 = vshll.u32 %v956_v1, 8 }
 0x21c   :  { %v748_v29 = vclz %v4585_v4  ;;  %v984_v30 = vsel %vm980_vm11, %v964_v31, %v967_v53  ;;  %v991_v5 = vsel %vm981_vm14, %v988_v7, %v990_v13  ;;  %v992_v48 = vsel %vm980_vm11, %v970_v63, %v973_v59 }
 0x21d   :  { %v1200_v3 = vsel %vm6162_vm9, %v5676_v54, %v1197_v60  ;;  %v993_v25 = vsel %vm983_vm12, %v979_v11, 1326507024  ;;  %v6185_v27 = vmul.u32.u64.low %v996_v40, %v991_v5  ;;  %v6186_v42 = vmul.u32.u64.high %v996_v40, %v991_v5, %v6185_v27 }
 0x21e   :  { %v4586_v22 = vadd.s32 4294967294, %v748_v29  ;;  %v986_v46 = vsel %vm982_vm13, %v970_v63, %v985_v43  ;;  %v994_v58 = vsel %vm982_vm13, %v976_v61, %v993_v25  ;;  %v1220_v26 = vshrl.u32 %v1219_v44, 23 }
 0x21f   :  { %v1199_v49 = vsel %vm1114_vm10, %v1198_v33, %v6085_v52  ;;  %v736_v57 = vadd.s32 %v6112_v2, %v6118_v51  ;;  %v995_v15 = vsel %vm981_vm14, %v992_v48, %v994_v58  ;;  %5160 = vcosq.f32 %v1200_v3 }
 0x220   :  { %vm4587_vm15 = vcmp.lt.s32.totalorder %v4586_v22, 0  ;;  %v4608_v17 = vadd.s32 4294967169, %v1220_v26  ;;  %v987_v63 = vsel %vm981_vm14, %v984_v30, %v986_v46  ;;  %v1006_v52 = vadd.s32 1, %v6186_v42 }
 0x221   :  { %v751_v18 = vsel %vm4587_vm15, 0, %v4586_v22  ;;  %v6197_v61 = vmul.u32.u64.low %v996_v40, %v995_v15  ;;  %v6198_v55 = vmul.u32.u64.high %v996_v40, %v995_v15, %v6197_v61  ;;  %v1201_v2 = vsel %vm6162_vm9, 0, %v1199_v49 }
 0x222   :  { %v752_v56 = vsub.s32 32, %v751_v18  ;;  %v756_v53 = vsub.s32 4294967266, %v751_v18  ;;  %v753_v47 = vshll.u32 %v6156_v24, %v751_v18  ;;  %v1226_v0 = vadd.s32 1, %v4608_v17 }
 0x223   :  { %5162 = vsinq.f32 %v1200_v3  ;;  %v1216_v51 = vand.u32 2147483647, %v6148_v45  ;;  %v766_v24 = vsub.s32 4, %v6141_v39  ;;  %v1003_v12 = vmul.u32 %v996_v40, %v987_v63 }
 0x224   :  { %v754_v19 = vshrl.u32 %v736_v57, %v752_v56  ;;  %v757_v28 = vadd.s32 127, %v756_v53  ;;  %vm1227_vm0 = vcmp.gt.s32.totalorder %v1226_v0, 0  ;;  %vm1005_vm1 = vc.u32 %v6198_v55, %v6185_v27 }
 0x225   :  { %v1228_v50 = vsel %vm1227_vm0, %v1226_v0, 0  ;;  %v1205_v33 = vadd.s32 3, %v1201_v2  ;;  %v1007_v11 = vsel %vm1005_vm1, %v1006_v52, %v6186_v42  ;;  %vm682_vm3 = vcmp.lt.s32.totalorder %v5893_v62, 0 }
 0x226   :  { %v755_v1 = vor.u32 %v754_v19, %v753_v47  ;;  %v758_v59 = vshll.u32 %v757_v28, 23  ;;  %v1008_v36 = vadd.s32 %v1007_v11, %v1003_v12  ;;  %v1230_v7 = vand.u32 31, %v1228_v50 }
 0x227   :  { %v767_v60 = vsel %vm682_vm3, %v766_v24, %v6141_v39  ;;  %v1223_v29 = vand.u32 8388607, %v1216_v51  ;;  %v6214_v13 = vand.u32 3, %v1205_v33  ;;  %vm6218_vm4 = vcmp.le.f32.partialorder %v680_v8, 0.7853982 }
 0x228   :  { %v759_v4 = vor.u32 4788187, %v758_v59  ;;  %v762_v44 = vcvt.s32.f32 %v755_v1  ;;  %v1009_v31 = vadd.s32 536870912, %v1008_v36  ;;  %v1231_v43 = vsub.s32 32, %v1230_v7 }
 0x229   :  { %v769_v30 = vsel %vm6218_vm4, 0, %v767_v60  ;;  %v1224_v3 = vor.u32 8388608, %v1223_v29  ;;  %v1229_v58 = vshrl.u32 %v1228_v50, 5  ;;  %v1233_v26 = vshll.u32 %v8348_v23, %v1230_v7 }
 0x22a   :  { %v760_v6 = vand.u32 2147483647, %v759_v4  ;;  %v6224_v5 = vshrl.u32 %v1009_v31, 30  ;;  %v1234_v39 = vshrl.u32 %v8370_v34, %v1231_v43  ;;  %v1237_v25 = vshrl.u32 %v8371_v20, %v1231_v43 }
 0x22b   :  { %v1240_v42 = vshrl.u32 %v8362_v32, %v1231_v43  ;;  %v1239_v49 = vshll.u32 %v8371_v20, %v1230_v7  ;;  %vm1211_vm5 = vcmp.eq.s32.totalorder %v6214_v13, 2  ;;  %v773_v18 = vadd.s32 3, %v769_v30 }
 0x22c   :  { %v763_v22 = vmul.f32 %v762_v44, %v760_v6  ;;  %v5161_v46 = vpop.eup %5160  ;;  %v1011_v8 = vshll.u32 %v6224_v5, 30  ;;  %v1236_v15 = vshll.u32 %v8370_v34, %v1230_v7  ;;  %vm1208_vm6 = vcmp.eq.s32.totalorder %v6214_v13, 0 }
 0x22d   :  { %v1235_v17 = vor.u32 %v1234_v39, %v1233_v26  ;;  %v1241_v47 = vor.u32 %v1240_v42, %v1239_v49  ;;  %v1242_v19 = vshll.u32 %v8362_v32, %v1230_v7  ;;  %v1243_v28 = vshrl.u32 %v8351_v35, %v1231_v43 }
 0x22e   :  { %v764_v48 = vxor.u32 2147483648, %v763_v22  ;;  %v6240_v53 = vsub.s32 %v1008_v36, %v1011_v8  ;;  %v1238_v61 = vor.u32 %v1237_v25, %v1236_v15  ;;  %vm1248_vm7 = vcmp.lt.s32.totalorder %v1229_v58, 1 }
 0x22f   :  { %v1264_v0 = vshll.u32 %v1224_v3, 8  ;;  %v1244_v2 = vor.u32 %v1243_v28, %v1242_v19  ;;  %v1245_v1 = vshll.u32 %v8351_v35, %v1230_v7  ;;  %v1246_v59 = vshrl.u32 %v8342_v38, %v1231_v43 }
 0x230   :  { %v765_v57 = vsel %vm682_vm3, %v764_v48, %v763_v22  ;;  %v5163_v63 = vpop.eup %5162  ;;  %v1014_v52 = vsub.s32 0, %v6240_v53  ;;  %vm1251_vm8 = vcmp.lt.s32.totalorder %v1229_v58, 4  ;;  %v1212_v12 = vxor.u32 2147483648, %v5161_v46 }
 0x231   :  { %v768_v56 = vsel %vm6218_vm4, %v5893_v62, %v765_v57  ;;  %v1209_v24 = vxor.u32 2147483648, %v5163_v63  ;;  %v1253_v33 = vsel %vm1251_vm8, %v1241_v47, 2102212464  ;;  %v1232_v4 = vshrl.u32 %v8348_v23, %v1231_v43 }
 0x232   :  { %5164 = vcosq.f32 %v768_v56  ;;  %v4597_v50 = vmin.u32 %v1014_v52, %v6240_v53  ;;  %v1247_v11 = vor.u32 %v1246_v59, %v1245_v1  ;;  %v1256_v36 = vsel %vm1248_vm7, %v1235_v17, %v1238_v61 }
 0x233   :  { %5166 = vsinq.f32 %v768_v56  ;;  %v1257_v6 = vsel %vm1251_vm8, %v1244_v2, 920167782  ;;  %vm1249_vm9 = vcmp.lt.s32.totalorder %v1229_v58, 2  ;;  %vm1250_vm10 = vcmp.lt.s32.totalorder %v1229_v58, 3 }
 0x234   :  { %v1016_v44 = vclz %v4597_v50  ;;  %v1260_v7 = vsel %vm1248_vm7, %v1238_v61, %v1241_v47  ;;  %v1252_v60 = vsel %vm1248_vm7, %v1232_v4, %v1235_v17  ;;  %v1254_v29 = vsel %vm1250_vm10, %v1238_v61, %v1253_v33 }
 0x235   :  { %v1258_v31 = vsel %vm1250_vm10, %v1241_v47, %v1257_v6  ;;  %v1261_v40 = vsel %vm1251_vm8, %v1247_v11, 1326507024  ;;  %v1213_v22 = vsel %vm1211_vm5, %v1212_v12, %v5163_v63  ;;  %v1210_v48 = vsel %vm1208_vm6, %v5161_v46, %v1209_v24  ;;  %v1323_v24 = vpop.permute.xlu0 %1322 }
 0x236   :  { %v4598_v43 = vadd.s32 4294967294, %v1016_v44  ;;  %v1259_v30 = vsel %vm1249_vm9, %v1256_v36, %v1258_v31  ;;  %v1262_v39 = vsel %vm1250_vm10, %v1244_v2, %v1261_v40  ;;  %v1255_v8 = vsel %vm1249_vm9, %v1252_v60, %v1254_v29  ;;  %v789_v36 = vpop.permute.xlu1 %788  ;;  %v2407_v40 = vld [vmem:[#allocation2 + $0x1b0] sm:$0xff] }
 0x237   :  { %v1263_v3 = vsel %vm1249_vm9, %v1260_v7, %v1262_v39  ;;  %v6259_v25 = vmul.u32.u64.low %v1264_v0, %v1259_v30  ;;  %v6260_v42 = vmul.u32.u64.high %v1264_v0, %v1259_v30, %v6259_v25  ;;  %vm1207_vm12 = vcmp.lt.s32.totalorder %v6214_v13, 2 }
 0x238   :  { %vm4599_vm11 = vcmp.lt.s32.totalorder %v4598_v43, 0  ;;  %v6263_v26 = vmul.u32.u64.low %v1264_v0, %v1263_v3  ;;  %v6264_v49 = vmul.u32.u64.high %v1264_v0, %v1263_v3, %v6263_v26  ;;  %v774_v58 = vand.u32 3, %v773_v18 }
 0x239   :  { %v1019_v57 = vsel %vm4599_vm11, 0, %v4598_v43  ;;  %v1214_v15 = vsel %vm1207_vm12, %v1210_v48, %v1213_v22  ;;  %v1004_v56 = vadd.s32 %v6185_v27, %v6198_v55  ;;  %vm1204_vm13 = vweird.f32 %v5676_v54  ;;  %v2404_v26 = vld [vmem:[#allocation2 + $0x198] sm:$0xff] }
 0x23a   :  { %v1020_v17 = vsub.s32 32, %v1019_v57  ;;  %v1024_v46 = vsub.s32 4294967266, %v1019_v57  ;;  %v1271_v47 = vmul.u32 %v1264_v0, %v1255_v8  ;;  %v1274_v63 = vadd.s32 1, %v6260_v42 }
 0x23b   :  { %v1021_v19 = vshll.u32 %v6240_v53, %v1019_v57  ;;  %vm1273_vm14 = vc.u32 %v6264_v49, %v6259_v25  ;;  %v1215_v18 = vsel %vm1204_vm13, nan, %v1214_v15  ;;  %vm779_vm15 = vcmp.eq.s32.totalorder %v774_v58, 2  ;;  %v2403_v57 = vld [vmem:[#allocation2 + $0x190] sm:$0xff] }
 0x23c   :  { %v1022_v28 = vshrl.u32 %v1004_v56, %v1020_v17  ;;  %v1025_v52 = vadd.s32 127, %v1024_v46  ;;  %v1275_v27 = vsel %vm1273_vm14, %v1274_v63, %v6260_v42  ;;  %vm776_vm0 = vcmp.eq.s32.totalorder %v774_v58, 0  ;;  %v2405_v42 = vld [vmem:[#allocation2 + $0x1a0] sm:$0xff]  ;;  %v2402_v17 = vld [vmem:[#allocation2 + $0x188] sm:$0xff] }
 0x23d   :  { %v1276_v0 = vadd.s32 %v1275_v27, %v1271_v47  ;;  %vm775_vm1 = vcmp.lt.s32.totalorder %v774_v58, 2  ;;  %v6275_v33 = vadd.f32 %v1323_v24, %v1215_v18  ;;  %vm772_vm3 = vweird.f32 %v5893_v62  ;;  %v2406_v62 = vld [vmem:[#allocation2 + $0x1a8] sm:$0xff]  ;;  %v2401_v46 = vld [vmem:[#allocation2 + $0x180] sm:$0xff] }
 0x23e   :  { %v1023_v1 = vor.u32 %v1022_v28, %v1021_v19  ;;  %v1026_v54 = vshll.u32 %v1025_v52, 23  ;;  %vm950_vm4 = vcmp.lt.s32.totalorder %v6060_v16, 0  ;;  %v1034_v30 = vsub.s32 4, %v6224_v5 }
 0x23f   :  { %v5165_v61 = vpop.eup %5164  ;;  %v1277_v50 = vadd.s32 536870912, %v1276_v0  ;;  %vm6292_vm5 = vcmp.le.f32.partialorder %v948_v21, 0.7853982  ;;  %vm1040_vm10 = vweird.f32 %v6060_v16  ;;  %vm1218_vm11 = vcmp.lt.s32.totalorder %v6148_v45, 0 }
 0x240   :  { %v5167_v13 = vpop.eup %5166  ;;  %v780_v2 = vxor.u32 2147483648, %v5165_v61  ;;  %v1027_v12 = vor.u32 4788187, %v1026_v54  ;;  %v1030_v44 = vcvt.s32.f32 %v1023_v1  ;;  %v1035_v58 = vsel %vm950_vm4, %v1034_v30, %v6224_v5 }
 0x241   :  { %v777_v55 = vxor.u32 2147483648, %v5167_v13  ;;  %v6278_v7 = vshrl.u32 %v1277_v50, 30  ;;  %v1037_v15 = vsel %vm6292_vm5, 0, %v1035_v58  ;;  %v1272_v5 = vadd.s32 %v6259_v25, %v6264_v49 }
 0x242   :  { %v781_v59 = vsel %vm779_vm15, %v780_v2, %v5167_v13  ;;  %v1028_v6 = vand.u32 2147483647, %v1027_v12  ;;  %v1041_v47 = vadd.s32 3, %v1037_v15  ;;  %vm1217_vm12 = vcmp.le.f32.partialorder %v1216_v51, 0.7853982 }
 0x243   :  { %v778_v53 = vsel %vm776_vm0, %v5165_v61, %v777_v55  ;;  %v1279_v31 = vshll.u32 %v6278_v7, 30  ;;  %vm1308_vm0 = vweird.f32 %v6148_v45 }
 0x244   :  { %v782_v4 = vsel %vm775_vm1, %v778_v53, %v781_v59  ;;  %v1031_v29 = vmul.f32 %v1030_v44, %v1028_v6  ;;  %v1042_v18 = vand.u32 3, %v1041_v47  ;;  %v1302_v44 = vsub.s32 4, %v6278_v7 }
 0x245   :  { %v783_v11 = vsel %vm772_vm3, nan, %v782_v4  ;;  %v1280_v43 = vsub.s32 %v1276_v0, %v1279_v31  ;;  %v1057_v4 = vpop.permute.xlu1 %1056 }
 0x246   :  { %v6280_v60 = vadd.f32 %v789_v36, %v783_v11  ;;  %v1032_v22 = vxor.u32 2147483648, %v1031_v29  ;;  %vm1047_vm7 = vcmp.eq.s32.totalorder %v1042_v18, 2  ;;  %vm1044_vm8 = vcmp.eq.s32.totalorder %v1042_v18, 0 }
 0x247   :  { %v1282_v3 = vsub.s32 0, %v1280_v43  ;;  %vm1043_vm9 = vcmp.lt.s32.totalorder %v1042_v18, 2  ;;  %v1303_v31 = vsel %vm1218_vm11, %v1302_v44, %v6278_v7  ;;  %v4612_v7 = vld [vmem:[%s8324_s6] ss:$0 sm:$0xff]  ;;  %v4658_v44 = vld [vmem:[%s8324_s6 + $0x6] ss:$0 sm:$0xff] }
 0x248   :  { %4876 = vmatmul.mubr.msk.f32.vlgmr.msra.gmra.mxu1 %vm260_vm2, %v6280_v60  ;;  %v1033_v48 = vsel %vm950_vm4, %v1032_v22, %v1031_v29 }
 0x249   :  { %4898 = vmatpush3.msra.mxu1 %v5992_v37  ;;  %4913 = vmatprep.mubr.msk.f32.mxu1 %vm260_vm2, %v6275_v33  ;;  %v1036_v37 = vsel %vm6292_vm5, %v6060_v16, %v1033_v48  ;;  %v4609_v8 = vmin.u32 %v1282_v3, %v1280_v43 }
 0x24a   :  { %4899 = vmatprep.subr.mxu1 %v2407_v40  ;;  %5168 = vcosq.f32 %v1036_v37 }
 0x24b   :  { %4900 = vmatpush3.msra.mxu1 %v2407_v40  ;;  %5170 = vsinq.f32 %v1036_v37  ;;  %v1284_v21 = vclz %v4609_v8  ;;  %v1305_v40 = vsel %vm1217_vm12, 0, %v1303_v31  ;;  %v1325_v8 = vpop.permute.xlu1 %1324 }
 0x24c   :  { %4901 = vmatprep.subr.mxu1 %v2406_v62  ;;  %v1309_v22 = vadd.s32 3, %v1305_v40 }
 0x24d   :  { %4902 = vmatpush3.msra.mxu1 %v2406_v62  ;;  %v4610_v56 = vadd.s32 4294967294, %v1284_v21 }
 0x24e   :  { %4903 = vmatprep.subr.mxu1 %v2405_v42 }
 0x24f   :  { %4904 = vmatpush3.msra.mxu1 %v2405_v42  ;;  %vm4611_vm6 = vcmp.lt.s32.totalorder %v4610_v56, 0 }
 0x250   :  { %4905 = vmatprep.subr.mxu1 %v2404_v26  ;;  %v1287_v63 = vsel %vm4611_vm6, 0, %v4610_v56 }
 0x251   :  { %4906 = vmatpush3.msra.mxu1 %v2404_v26  ;;  %v1288_v61 = vsub.s32 32, %v1287_v63  ;;  %v1292_v19 = vsub.s32 4294967266, %v1287_v63  ;;  %v1289_v28 = vshll.u32 %v1280_v43, %v1287_v63  ;;  %v1310_v43 = vand.u32 3, %v1309_v22 }
 0x252   :  { %4907 = vmatprep.subr.mxu1 %v2403_v57 }
 0x253   :  { %4908 = vmatpush3.msra.mxu1 %v2403_v57  ;;  %v1290_v52 = vshrl.u32 %v1272_v5, %v1288_v61  ;;  %v1293_v13 = vadd.s32 127, %v1292_v19  ;;  %vm1315_vm13 = vcmp.eq.s32.totalorder %v1310_v43, 2  ;;  %vm1312_vm14 = vcmp.eq.s32.totalorder %v1310_v43, 0  ;;  %v4626_v5 = vld [vmem:[%s8324_s6 + $0x2] ss:$0 sm:$0xff] }
 0x254   :  { %4909 = vmatprep.subr.mxu1 %v2402_v17  ;;  %vm1311_vm15 = vcmp.lt.s32.totalorder %v1310_v43, 2 }
 0x255   :  { %4910 = vmatpush3.msra.mxu1 %v2402_v17  ;;  %v1291_v2 = vor.u32 %v1290_v52, %v1289_v28  ;;  %v1294_v27 = vshll.u32 %v1293_v13, 23 }
 0x256   :  { %4911 = vmatprep.subr.mxu1 %v2401_v46 }
 0x257   :  { %4912 = vmatpush3.msra.mxu1 %v2401_v46  ;;  %v5169_v55 = vpop.eup %5168  ;;  %v1295_v0 = vor.u32 4788187, %v1294_v27  ;;  %v1298_v49 = vcvt.s32.f32 %v1291_v2 }
 0x258   :  { %v5171_v1 = vpop.eup %5170  ;;  %v1048_v54 = vxor.u32 2147483648, %v5169_v55 }
 0x259   :  { %v1045_v59 = vxor.u32 2147483648, %v5171_v1  ;;  %v1296_v25 = vand.u32 2147483647, %v1295_v0 }
 0x25a   :  { %v1049_v24 = vsel %vm1047_vm7, %v1048_v54, %v5171_v1  ;;  %v4642_v54 = vld [vmem:[%s8324_s6 + $0x4] ss:$0 sm:$0xff] }
 0x25b   :  { %v1046_v53 = vsel %vm1044_vm8, %v5169_v55, %v1045_v59  ;;  %v1299_v50 = vmul.f32 %v1298_v49, %v1296_v25 }
 0x25c   :  { %v1050_v12 = vsel %vm1043_vm9, %v1046_v53, %v1049_v24 }
 0x25d   :  { %v1051_v11 = vsel %vm1040_vm10, nan, %v1050_v12  ;;  %v1300_v6 = vxor.u32 2147483648, %v1299_v50 }
 0x25e   :  { %v6305_v36 = vadd.f32 %v1057_v4, %v1051_v11 }
 0x25f   :  { %v1301_v29 = vsel %vm1218_vm11, %v1300_v6, %v1299_v50 }
 0x260   :  { %4895 = vmatmul.mubr.msk.f32.vlgmr.msra.gmra.mxu0 %vm260_vm2, %v6305_v36  ;;  %v1304_v16 = vsel %vm1217_vm12, %v6148_v45, %v1301_v29 }
 0x261   :  { %5172 = vcosq.f32 %v1304_v16 }
 0x262   :  { %5174 = vsinq.f32 %v1304_v16 }
 0x26e   :  { %v5173_v62 = vpop.eup %5172 }
 0x26f   :  { %v5175_v30 = vpop.eup %5174  ;;  %v1316_v39 = vxor.u32 2147483648, %v5173_v62 }
 0x270   :  { %v1313_v48 = vxor.u32 2147483648, %v5175_v30 }
 0x271   :  { %v1317_v51 = vsel %vm1315_vm13, %v1316_v39, %v5175_v30 }
 0x272   :  { %v1314_v3 = vsel %vm1312_vm14, %v5173_v62, %v1313_v48 }
 0x273   :  { %v1318_v42 = vsel %vm1311_vm15, %v1314_v3, %v1317_v51 }
 0x274   :  { %v1319_v37 = vsel %vm1308_vm0, nan, %v1318_v42 }
 0x275   :  { %v6316_v26 = vadd.f32 %v1325_v8, %v1319_v37 }
 0x277   :  { %4914 = vmatmul.mubr.msk.f32.vlgmr.msra.gmra.mxu1 %vm260_vm2, %v6316_v26 }
 0x2a7   :  { %v4858_v58 = vpop.f32.mrf.mxu0 }
 0x2a8   :  { %v6323_v21 = vadd.f32 %v4858_v58, %v4612_v7 }
 0x2a9   :  { %v1417_v57 = vpop.f32.mrf.mxu0 }
 0x2aa   :  { %v6325_v15 = vadd.f32 %v4612_v7, %v1417_v57  ;;  %v1431_v45 = vsel %vm260_vm2, %v6323_v21, 0.0  ;;  %v1437_v17 = vmul.f32 %v6323_v21, %v6323_v21 }
 0x2ab   :  { %1432 = vadd.xlane.f32.xlu1 %v1431_v45 }
 0x2ac   :  { %v1428_v56 = vsel %vm260_vm2, %v6325_v15, 0.0  ;;  %v1441_v46 = vsel %vm260_vm2, %v1437_v17, 0.0  ;;  %v1436_v47 = vmul.f32 %v6325_v15, %v6325_v15 }
 0x2ad   :  { %1429 = vadd.xlane.f32.xlu0 %v1428_v56 }
 0x2ae   :  { %v1438_v63 = vsel %vm260_vm2, %v1436_v47, 0.0 }
 0x2b1   :  { %1442 = vadd.xlane.f32.xlu0 %v1441_v46 }
 0x2b5   :  { %1439 = vadd.xlane.f32.xlu0 %v1438_v63 }
 0x308   :  { %v4877_v61 = vpop.f32.mrf.mxu1 }
 0x309   :  { %v6340_v19 = vadd.f32 %v4877_v61, %v4626_v5  ;;  %v4615_v61 = vld [vmem:[%s8325_s7] ss:$0 sm:$0xff] }
 0x30a   :  { %v1773_v28 = vpop.f32.mrf.mxu1 }
 0x30b   :  { %v6342_v52 = vadd.f32 %v4626_v5, %v1773_v28  ;;  %v1789_v13 = vsel %vm260_vm2, %v6340_v19, 0.0  ;;  %v1795_v18 = vmul.f32 %v6340_v19, %v6340_v19 }
 0x30c   :  { %1790 = vadd.xlane.f32.xlu1 %v1789_v13  ;;  %v4616_v13 = vld [vmem:[%s8326_s8] ss:$0 sm:$0xff] }
 0x30d   :  { %v1786_v2 = vsel %vm260_vm2, %v6342_v52, 0.0  ;;  %v1794_v27 = vmul.f32 %v6342_v52, %v6342_v52  ;;  %v1799_v55 = vsel %vm260_vm2, %v1795_v18, 0.0 }
 0x30e   :  { %1787 = vadd.xlane.f32.xlu0 %v1786_v2 }
 0x30f   :  { %v1796_v1 = vsel %vm260_vm2, %v1794_v27, 0.0 }
 0x310   :  { %1800 = vadd.xlane.f32.xlu1 %v1799_v55 }
 0x312   :  { %1797 = vadd.xlane.f32.xlu0 %v1796_v1 }
 0x320   :  { %v4896_v0 = vpop.f32.mrf.mxu0 }
 0x321   :  { %v6357_v59 = vadd.f32 %v4896_v0, %v4642_v54 }
 0x322   :  { %v2131_v24 = vpop.f32.mrf.mxu0 }
 0x323   :  { %v6359_v25 = vadd.f32 %v4642_v54, %v2131_v24  ;;  %v2147_v49 = vsel %vm260_vm2, %v6357_v59, 0.0  ;;  %v2153_v12 = vmul.f32 %v6357_v59, %v6357_v59 }
 0x324   :  { %2148 = vadd.xlane.f32.xlu1 %v2147_v49 }
 0x325   :  { %v2144_v53 = vsel %vm260_vm2, %v6359_v25, 0.0  ;;  %v2157_v50 = vsel %vm260_vm2, %v2153_v12, 0.0  ;;  %v2152_v4 = vmul.f32 %v6359_v25, %v6359_v25 }
 0x326   :  { %2145 = vadd.xlane.f32.xlu0 %v2144_v53 }
 0x327   :  { %v2154_v11 = vsel %vm260_vm2, %v2152_v4, 0.0 }
 0x32a   :  { %2158 = vadd.xlane.f32.xlu0 %v2157_v50 }
 0x32e   :  { %2155 = vadd.xlane.f32.xlu0 %v2154_v11 }
 0x334   :  { %v1433_v6 = vpop.xlane.xlu1 %1432 }
 0x335   :  { %v1435_v31 = vmul.f32 0.015625, %v1433_v6 }
 0x336   :  { %v1430_v29 = vpop.xlane.xlu0 %1429 }
 0x337   :  { %v4915_v16 = vpop.f32.mrf.mxu1  ;;  %v1447_v39 = vmul.f32 %v1435_v31, %v1435_v31  ;;  %v1434_v48 = vmul.f32 0.015625, %v1430_v29  ;;  %v1451_v63 = vsub.f32 %v6323_v21, %v1435_v31 }
 0x338   :  { %v6374_v40 = vadd.f32 %v4915_v16, %v4658_v44 }
 0x339   :  { %v2489_v22 = vpop.f32.mrf.mxu1  ;;  %v1446_v57 = vmul.f32 %v1434_v48, %v1434_v48  ;;  %v1450_v18 = vsub.f32 %v6325_v15, %v1434_v48 }
 0x33a   :  { %v6376_v43 = vadd.f32 %v4658_v44, %v2489_v22  ;;  %v2505_v62 = vsel %vm260_vm2, %v6374_v40, 0.0  ;;  %v1443_v30 = vpop.xlane.xlu0 %1442  ;;  %v2511_v8 = vmul.f32 %v6374_v40, %v6374_v40 }
 0x33b   :  { %2506 = vadd.xlane.f32.xlu1 %v2505_v62  ;;  %v1445_v51 = vmul.f32 0.015625, %v1443_v30 }
 0x33c   :  { %v2510_v3 = vmul.f32 %v6376_v43, %v6376_v43  ;;  %v2502_v37 = vsel %vm260_vm2, %v6376_v43, 0.0  ;;  %v2515_v46 = vsel %vm260_vm2, %v2511_v8, 0.0 }
 0x33d   :  { %v1449_v42 = vsub.f32 %v1445_v51, %v1447_v39 }
 0x33e   :  { %v2512_v7 = vsel %vm260_vm2, %v2510_v3, 0.0  ;;  %v1440_v58 = vpop.xlane.xlu0 %1439 }
 0x33f   :  { %2503 = vadd.xlane.f32.xlu1 %v2502_v37  ;;  %2513 = vadd.xlane.f32.xlu0 %v2512_v7  ;;  %v1453_v45 = vadd.f32 1e-05, %v1449_v42  ;;  %v1444_v56 = vmul.f32 0.015625, %v1440_v58 }
 0x341   :  { %5176 = vrsqrt.f32 %v1453_v45  ;;  %v1448_v17 = vsub.f32 %v1444_v56, %v1446_v57 }
 0x343   :  { %2516 = vadd.xlane.f32.xlu1 %v2515_v46  ;;  %v1452_v47 = vadd.f32 1e-05, %v1448_v17 }
 0x345   :  { %5178 = vrsqrt.f32 %v1452_v47 }
 0x34e   :  { %v5177_v5 = vpop.eup %5176 }
 0x34f   :  { %v1457_v28 = vmul.f32 %v5177_v5, %v1451_v63 }
 0x351   :  { %v1465_v2 = vmul.f32 %v4615_v61, %v1457_v28 }
 0x352   :  { %v5179_v27 = vpop.eup %5178 }
 0x353   :  { %v6396_v55 = vadd.f32 %v4616_v13, %v1465_v2  ;;  %v1456_v1 = vmul.f32 %v5179_v27, %v1450_v18 }
 0x355   :  { %v1581_v54 = vand.u32 2139095040, %v6396_v55  ;;  %v1464_v21 = vmul.f32 %v4615_v61, %v1456_v1  ;;  %v1578_v12 = vand.u32 2147483647, %v6396_v55 }
 0x357   :  { %v1582_v0 = vshrl.u32 %v1581_v54, 23  ;;  %v6399_v24 = vadd.f32 %v4616_v13, %v1464_v21  ;;  %v6408_v44 = vand.u32 8388607, %v1578_v12 }
 0x359   :  { %v4621_v49 = vadd.s32 4294967169, %v1582_v0  ;;  %v1477_v53 = vand.u32 2139095040, %v6399_v24  ;;  %v1474_v50 = vand.u32 2147483647, %v6399_v24  ;;  %v1586_v39 = vor.u32 8388608, %v6408_v44 }
 0x35b   :  { %v1588_v4 = vadd.s32 1, %v4621_v49  ;;  %v1478_v15 = vshrl.u32 %v1477_v53, 23  ;;  %v1481_v11 = vand.u32 8388607, %v1474_v50  ;;  %vm6520_vm0 = vcmp.le.f32.partialorder %v1474_v50, 0.7853982 }
 0x35d   :  { %vm1589_vm1 = vcmp.gt.s32.totalorder %v1588_v4, 0  ;;  %v4617_v6 = vadd.s32 4294967169, %v1478_v15  ;;  %v1482_v16 = vor.u32 8388608, %v1481_v11 }
 0x35e   :  { %v1590_v29 = vsel %vm1589_vm1, %v1588_v4, 0  ;;  %vm1476_vm1 = vcmp.lt.s32.totalorder %v6399_v24, 0 }
 0x35f   :  { %v1592_v31 = vand.u32 31, %v1590_v29  ;;  %v1484_v22 = vadd.s32 1, %v4617_v6  ;;  %v6410_v62 = vshrl.u32 %v1590_v29, 5  ;;  %v6415_v51 = vshll.u32 %v1482_v16, 8 }
 0x361   :  { %v6412_v30 = vsub.s32 32, %v1592_v31  ;;  %vm1485_vm3 = vcmp.gt.s32.totalorder %v1484_v22, 0  ;;  %v1595_v3 = vshll.u32 %v8348_v23, %v1592_v31  ;;  %v1598_v42 = vshll.u32 %v8370_v34, %v1592_v31 }
 0x362   :  { %v1486_v48 = vsel %vm1485_vm3, %v1484_v22, 0  ;;  %v1601_v7 = vshll.u32 %v8371_v20, %v1592_v31  ;;  %v1604_v58 = vshll.u32 %v8362_v32, %v1592_v31  ;;  %v1607_v17 = vshll.u32 %v8351_v35, %v1592_v31 }
 0x363   :  { %v1488_v37 = vand.u32 31, %v1486_v48  ;;  %v1487_v8 = vshrl.u32 %v1486_v48, 5  ;;  %v1596_v57 = vshrl.u32 %v8370_v34, %v6412_v30  ;;  %v1599_v45 = vshrl.u32 %v8371_v20, %v6412_v30 }
 0x364   :  { %v1602_v56 = vshrl.u32 %v8362_v32, %v6412_v30  ;;  %v1605_v63 = vshrl.u32 %v8351_v35, %v6412_v30  ;;  %v1608_v5 = vshrl.u32 %v8342_v38, %v6412_v30  ;;  %vm1610_vm8 = vcmp.lt.s32.totalorder %v6410_v62, 1 }
 0x365   :  { %v1489_v46 = vsub.s32 32, %v1488_v37  ;;  %v1491_v47 = vshll.u32 %v8348_v23, %v1488_v37  ;;  %v1494_v61 = vshll.u32 %v8370_v34, %v1488_v37  ;;  %v1497_v28 = vshll.u32 %v8371_v20, %v1488_v37 }
 0x366   :  { %v1500_v13 = vshll.u32 %v8362_v32, %v1488_v37  ;;  %v1503_v18 = vshll.u32 %v8351_v35, %v1488_v37  ;;  %vm1506_vm4 = vcmp.lt.s32.totalorder %v1487_v8, 1  ;;  %vm1507_vm5 = vcmp.lt.s32.totalorder %v1487_v8, 2 }
 0x367   :  { %v1492_v2 = vshrl.u32 %v8370_v34, %v1489_v46  ;;  %v1495_v27 = vshrl.u32 %v8371_v20, %v1489_v46  ;;  %v1498_v1 = vshrl.u32 %v8362_v32, %v1489_v46  ;;  %v1490_v54 = vshrl.u32 %v8348_v23, %v1489_v46 }
 0x368   :  { %v1501_v21 = vshrl.u32 %v8351_v35, %v1489_v46  ;;  %v1504_v0 = vshrl.u32 %v8342_v38, %v1489_v46  ;;  %vm1508_vm6 = vcmp.lt.s32.totalorder %v1487_v8, 3  ;;  %vm1509_vm7 = vcmp.lt.s32.totalorder %v1487_v8, 4 }
 0x369   :  { %v1493_v49 = vor.u32 %v1492_v2, %v1491_v47  ;;  %v1496_v53 = vor.u32 %v1495_v27, %v1494_v61  ;;  %v1499_v4 = vor.u32 %v1498_v1, %v1497_v28  ;;  %v1597_v6 = vor.u32 %v1596_v57, %v1595_v3  ;;  %v2766_v1 = vld [vmem:[#allocation2 + $0x78] sm:$0xff] }
 0x36a   :  { %v1502_v15 = vor.u32 %v1501_v21, %v1500_v13  ;;  %v1505_v11 = vor.u32 %v1504_v0, %v1503_v18  ;;  %v1600_v31 = vor.u32 %v1599_v45, %v1598_v42  ;;  %v1603_v46 = vor.u32 %v1602_v56, %v1601_v7  ;;  %4916 = vmatprep.subr.mxu0 %v2766_v1 }
 0x36b   :  { %v1511_v44 = vsel %vm1509_vm7, %v1499_v4, 2102212464  ;;  %v1514_v29 = vsel %vm1506_vm4, %v1493_v49, %v1496_v53  ;;  %v1518_v16 = vsel %vm1506_vm4, %v1496_v53, %v1499_v4  ;;  %v1510_v22 = vsel %vm1506_vm4, %v1490_v54, %v1493_v49  ;;  %4917 = vmatpush3.msra.mxu0 %v2766_v1 }
 0x36c   :  { %v1515_v48 = vsel %vm1509_vm7, %v1502_v15, 920167782  ;;  %v1519_v37 = vsel %vm1509_vm7, %v1505_v11, 1326507024  ;;  %v1512_v38 = vsel %vm1508_vm6, %v1496_v53, %v1511_v44  ;;  %v1606_v28 = vor.u32 %v1605_v63, %v1604_v58 }
 0x36d   :  { %v1516_v47 = vsel %vm1508_vm6, %v1499_v4, %v1515_v48  ;;  %v1520_v61 = vsel %vm1508_vm6, %v1502_v15, %v1519_v37  ;;  %v1609_v3 = vor.u32 %v1608_v5, %v1607_v17  ;;  %v1513_v7 = vsel %vm1507_vm5, %v1510_v22, %v1512_v38  ;;  %v2764_v4 = vld [vmem:[#allocation2 + $0x68] sm:$0xff]  ;;  %v3123_v15 = vld [vmem:[#allocation2 + $0xf0] sm:$0xff]  ;;  %v2763_v37 = vld [vmem:[#allocation2 + $0x60] sm:$0xff] }
 0x36e   :  { %v1517_v13 = vsel %vm1507_vm5, %v1514_v29, %v1516_v47  ;;  %v1521_v18 = vsel %vm1507_vm5, %v1518_v16, %v1520_v61  ;;  %vm1613_vm9 = vcmp.lt.s32.totalorder %v6410_v62, 4  ;;  %v6460_v58 = vshll.u32 %v1586_v39, 8  ;;  %v2765_v39 = vld [vmem:[#allocation2 + $0x70] sm:$0xff]  ;;  %v3122_v16 = vld [vmem:[#allocation2 + $0xe8] sm:$0xff]  ;;  %v3121_v47 = vld [vmem:[#allocation2 + $0xe0] sm:$0xff] }
 0x36f   :  { %v6449_v57 = vmul.u32.u64.low %v6415_v51, %v1521_v18  ;;  %v6450_v2 = vmul.u32.u64.high %v6415_v51, %v1521_v18, %v6449_v57  ;;  %v6453_v42 = vmul.u32.u64.low %v6415_v51, %v1517_v13  ;;  %v6454_v45 = vmul.u32.u64.high %v6415_v51, %v1517_v13, %v6453_v42  ;;  %4918 = vmatprep.subr.mxu0 %v2765_v39 }
 0x370   :  { %vm1612_vm10 = vcmp.lt.s32.totalorder %v6410_v62, 3  ;;  %v1615_v56 = vsel %vm1613_vm9, %v1603_v46, 2102212464  ;;  %v1618_v17 = vsel %vm1610_vm8, %v1597_v6, %v1600_v31  ;;  %v1619_v63 = vsel %vm1613_vm9, %v1606_v28, 920167782  ;;  %4919 = vmatpush3.msra.mxu0 %v2765_v39  ;;  %v2761_v57 = vld [vmem:[#allocation2 + $0x50] sm:$0xff] }
 0x371   :  { %v1594_v5 = vshrl.u32 %v8348_v23, %v6412_v30  ;;  %v1620_v8 = vsel %vm1612_vm10, %v1603_v46, %v1619_v63  ;;  %v1622_v38 = vsel %vm1610_vm8, %v1600_v31, %v1603_v46  ;;  %v1623_v27 = vsel %vm1613_vm9, %v1609_v3, 1326507024  ;;  %v3124_v30 = vld [vmem:[#allocation2 + $0xf8] sm:$0xff]  ;;  %4920 = vmatprep.subr.mxu0 %v2764_v4  ;;  %v2760_v63 = vld [vmem:[#allocation2 + $0x48] sm:$0xff]  ;;  %v3117_v39 = vld [vmem:[#allocation2 + $0xc0] sm:$0xff] }
 0x372   :  { %v1529_v54 = vmul.u32 %v6415_v51, %v1513_v7  ;;  %vm1531_vm11 = vc.u32 %v6450_v2, %v6453_v42  ;;  %v1532_v21 = vadd.s32 1, %v6454_v45  ;;  %vm1611_vm12 = vcmp.lt.s32.totalorder %v6410_v62, 2  ;;  %4935 = vmatprep.subr.mxu1 %v3124_v30  ;;  %4921 = vmatpush3.msra.mxu0 %v2764_v4  ;;  %v3120_v62 = vld [vmem:[#allocation2 + $0xd8] sm:$0xff] }
 0x373   :  { %v1614_v0 = vsel %vm1610_vm8, %v1594_v5, %v1597_v6  ;;  %v1616_v49 = vsel %vm1612_vm10, %v1600_v31, %v1615_v56  ;;  %v1621_v53 = vsel %vm1611_vm12, %v1618_v17, %v1620_v8  ;;  %v1624_v51 = vsel %vm1612_vm10, %v1606_v28, %v1623_v27  ;;  %4936 = vmatpush3.msra.mxu1 %v3124_v30  ;;  %v2762_v28 = vld [vmem:[#allocation2 + $0x58] sm:$0xff]  ;;  %v3119_v17 = vld [vmem:[#allocation2 + $0xd0] sm:$0xff]  ;;  %v3118_v8 = vld [vmem:[#allocation2 + $0xc8] sm:$0xff] }
 0x374   :  { %v1533_v11 = vsel %vm1531_vm11, %v1532_v21, %v6454_v45  ;;  %v1625_v44 = vsel %vm1611_vm12, %v1622_v38, %v1624_v51  ;;  %v6488_v6 = vmul.u32.u64.low %v6460_v58, %v1621_v53  ;;  %v6489_v29 = vmul.u32.u64.high %v6460_v58, %v1621_v53, %v6488_v6  ;;  %4937 = vmatprep.subr.mxu1 %v3123_v15  ;;  %4922 = vmatprep.subr.mxu0 %v2763_v37  ;;  %v2759_v38 = vld [vmem:[#allocation2 + $0x40] sm:$0xff] }
 0x375   :  { %v1534_v31 = vadd.s32 %v1533_v11, %v1529_v54  ;;  %v6493_v22 = vmul.u32.u64.low %v6460_v58, %v1625_v44  ;;  %v6494_v48 = vmul.u32.u64.high %v6460_v58, %v1625_v44, %v6493_v22  ;;  %v1617_v46 = vsel %vm1611_vm12, %v1614_v0, %v1616_v49  ;;  %4938 = vmatpush3.msra.mxu1 %v3123_v15  ;;  %4923 = vmatpush3.msra.mxu0 %v2763_v37  ;;  %v6508_v54 = vld [vmem:[#allocation2 + $0x178] sm:$0xff] }
 0x376   :  { %4939 = vmatprep.subr.mxu1 %v3122_v16  ;;  %v1636_v13 = vadd.s32 1, %v6489_v29  ;;  %v1633_v3 = vmul.u32 %v6460_v58, %v1617_v46  ;;  %4924 = vmatprep.subr.mxu0 %v2762_v28  ;;  %v1530_v11 = vadd.s32 %v6453_v42, %v6450_v2  ;;  %vm1580_vm3 = vcmp.lt.s32.totalorder %v6396_v55, 0 }
 0x377   :  { %v1535_v61 = vadd.s32 536870912, %v1534_v31  ;;  %4940 = vmatpush3.msra.mxu1 %v3122_v16  ;;  %vm1635_vm13 = vc.u32 %v6494_v48, %v6488_v6  ;;  %4925 = vmatpush3.msra.mxu0 %v2762_v28  ;;  %vm1579_vm4 = vcmp.le.f32.partialorder %v1578_v12, 0.7853982  ;;  %v4631_v12 = vld [vmem:[%s8325_s7 + $0x2] ss:$0 sm:$0xff]  ;;  %vm1566_vm7 = vweird.f32 %v6399_v24 }
 0x378   :  { %4941 = vmatprep.subr.mxu1 %v3121_v47  ;;  %v1637_v45 = vsel %vm1635_vm13, %v1636_v13, %v6489_v29  ;;  %4926 = vmatprep.subr.mxu0 %v2761_v57  ;;  %vm1670_vm10 = vweird.f32 %v6396_v55 }
 0x379   :  { %v6499_v18 = vshrl.u32 %v1535_v61, 30  ;;  %4942 = vmatpush3.msra.mxu1 %v3121_v47  ;;  %v1638_v56 = vadd.s32 %v1637_v45, %v1633_v3  ;;  %4927 = vmatpush3.msra.mxu0 %v2761_v57 }
 0x37a   :  { %4943 = vmatprep.subr.mxu1 %v3120_v62  ;;  %4928 = vmatprep.subr.mxu0 %v2760_v63 }
 0x37b   :  { %v1537_v7 = vshll.u32 %v6499_v18, 30  ;;  %v1639_v5 = vadd.s32 536870912, %v1638_v56  ;;  %4944 = vmatpush3.msra.mxu1 %v3120_v62  ;;  %4929 = vmatpush3.msra.mxu0 %v2760_v63  ;;  %v1634_v62 = vadd.s32 %v6488_v6, %v6494_v48  ;;  %v1560_v48 = vsub.s32 4, %v6499_v18 }
 0x37c   :  { %4945 = vmatprep.subr.mxu1 %v3119_v17  ;;  %4930 = vmatprep.subr.mxu0 %v2759_v38 }
 0x37d   :  { %v1538_v58 = vsub.s32 %v1534_v31, %v1537_v7  ;;  %v6506_v1 = vshrl.u32 %v1639_v5, 30  ;;  %4946 = vmatpush3.msra.mxu1 %v3119_v17  ;;  %4931 = vmatpush3.msra.mxu0 %v2759_v38 }
 0x37e   :  { %4947 = vmatprep.subr.mxu1 %v3118_v8  ;;  %4954 = vmatprep.subr.mxu0 %v6508_v54 }
 0x37f   :  { %v1540_v27 = vsub.s32 0, %v1538_v58  ;;  %v1641_v30 = vshll.u32 %v6506_v1, 30  ;;  %4948 = vmatpush3.msra.mxu1 %v3118_v8 }
 0x380   :  { %4949 = vmatprep.subr.mxu1 %v3117_v39 }
 0x381   :  { %v4618_v21 = vmin.u32 %v1540_v27, %v1538_v58  ;;  %4950 = vmatpush3.msra.mxu1 %v3117_v39  ;;  %v1642_v49 = vsub.s32 %v1638_v56, %v1641_v30 }
 0x383   :  { %v1542_v0 = vclz %v4618_v21  ;;  %v1644_v51 = vsub.s32 0, %v1642_v49 }
 0x385   :  { %v4619_v53 = vadd.s32 4294967294, %v1542_v0  ;;  %v4622_v15 = vmin.u32 %v1644_v51, %v1642_v49 }
 0x387   :  { %vm4620_vm14 = vcmp.lt.s32.totalorder %v4619_v53, 0  ;;  %v1646_v16 = vclz %v4622_v15 }
 0x388   :  { %v1545_v4 = vsel %vm4620_vm14, 0, %v4619_v53 }
 0x389   :  { %v1546_v44 = vsub.s32 32, %v1545_v4  ;;  %v1550_v29 = vsub.s32 4294967266, %v1545_v4  ;;  %v1547_v31 = vshll.u32 %v1538_v58, %v1545_v4  ;;  %v4623_v46 = vadd.s32 4294967294, %v1646_v16 }
 0x38b   :  { %v1548_v22 = vshrl.u32 %v1530_v11, %v1546_v44  ;;  %v1551_v37 = vadd.s32 127, %v1550_v29  ;;  %vm4624_vm15 = vcmp.lt.s32.totalorder %v4623_v46, 0 }
 0x38c   :  { %v1649_v13 = vsel %vm4624_vm15, 0, %v4623_v46 }
 0x38d   :  { %v1549_v47 = vor.u32 %v1548_v22, %v1547_v31  ;;  %v1552_v61 = vshll.u32 %v1551_v37, 23  ;;  %v1650_v57 = vsub.s32 32, %v1649_v13  ;;  %v1654_v45 = vsub.s32 4294967266, %v1649_v13 }
 0x38e   :  { %v1651_v17 = vshll.u32 %v1642_v49, %v1649_v13  ;;  %v1561_v22 = vsel %vm1476_vm1, %v1560_v48, %v6499_v18  ;;  %v1664_v13 = vsub.s32 4, %v6506_v1 }
 0x38f   :  { %v1553_v28 = vor.u32 4788187, %v1552_v61  ;;  %v1556_v42 = vcvt.s32.f32 %v1549_v47  ;;  %v1652_v63 = vshrl.u32 %v1634_v62, %v1650_v57  ;;  %v1655_v58 = vadd.s32 127, %v1654_v45  ;;  %v6532_v47 = vld [vmem:[#allocation2 + $0x1f8] sm:$0xff] }
 0x390   :  { %4973 = vmatprep.subr.mxu1 %v6532_v47  ;;  %v1665_v57 = vsel %vm1580_vm3, %v1664_v13, %v6506_v1 }
 0x391   :  { %v1554_v2 = vand.u32 2147483647, %v1553_v28  ;;  %v1653_v27 = vor.u32 %v1652_v63, %v1651_v17  ;;  %v1656_v39 = vshll.u32 %v1655_v58, 23  ;;  %v1563_v28 = vsel %vm6520_vm0, 0, %v1561_v22 }
 0x392   :  { %v1567_v62 = vadd.s32 3, %v1563_v28 }
 0x393   :  { %v1557_v8 = vmul.f32 %v1556_v42, %v1554_v2  ;;  %v1657_v49 = vor.u32 4788187, %v1656_v39  ;;  %v1660_v50 = vcvt.s32.f32 %v1653_v27  ;;  %v1667_v2 = vsel %vm1579_vm4, 0, %v1665_v57 }
 0x394   :  { %v1568_v45 = vand.u32 3, %v1567_v62  ;;  %v1671_v58 = vadd.s32 3, %v1667_v2 }
 0x395   :  { %v1791_v3 = vpop.xlane.xlu1 %1790  ;;  %v1558_v0 = vxor.u32 2147483648, %v1557_v8  ;;  %v1658_v29 = vand.u32 2147483647, %v1657_v49 }
 0x396   :  { %v1793_v7 = vmul.f32 0.015625, %v1791_v3  ;;  %vm1573_vm5 = vcmp.eq.s32.totalorder %v1568_v45, 2  ;;  %vm1570_vm6 = vcmp.eq.s32.totalorder %v1568_v45, 0  ;;  %vm1569_vm8 = vcmp.lt.s32.totalorder %v1568_v45, 2 }
 0x397   :  { %v1788_v56 = vpop.xlane.xlu0 %1787  ;;  %v1559_v11 = vsel %vm1476_vm1, %v1558_v0, %v1557_v8  ;;  %v1661_v37 = vmul.f32 %v1660_v50, %v1658_v29  ;;  %v1672_v48 = vand.u32 3, %v1671_v58 }
 0x398   :  { %v6516_v5 = vmul.f32 0.015625, %v1788_v56  ;;  %v1805_v21 = vmul.f32 %v1793_v7, %v1793_v7  ;;  %v1562_v44 = vsel %vm6520_vm0, %v6399_v24, %v1559_v11  ;;  %v1809_v17 = vsub.f32 %v6340_v19, %v1793_v7  ;;  %v4632_v19 = vld [vmem:[%s8326_s8 + $0x2] ss:$0 sm:$0xff] }
 0x399   :  { %v1801_v38 = vpop.xlane.xlu1 %1800  ;;  %5180 = vcosq.f32 %v1562_v44  ;;  %v1662_v61 = vxor.u32 2147483648, %v1661_v37  ;;  %vm1677_vm9 = vcmp.eq.s32.totalorder %v1672_v48, 2  ;;  %vm1673_vm11 = vcmp.lt.s32.totalorder %v1672_v48, 2 }
 0x39a   :  { %v1803_v30 = vmul.f32 0.015625, %v1801_v38  ;;  %v1804_v4 = vmul.f32 %v6516_v5, %v6516_v5  ;;  %5182 = vsinq.f32 %v1562_v44  ;;  %v1808_v1 = vsub.f32 %v6342_v52, %v6516_v5 }
 0x39b   :  { %v1798_v53 = vpop.xlane.xlu0 %1797  ;;  %v1663_v18 = vsel %vm1580_vm3, %v1662_v61, %v1661_v37  ;;  %vm1674_vm12 = vcmp.eq.s32.totalorder %v1672_v48, 0  ;;  %v3478_v48 = vld [vmem:[#allocation2 + $0x158] sm:$0xff] }
 0x39c   :  { %v1807_v51 = vsub.f32 %v1803_v30, %v1805_v21  ;;  %v1802_v15 = vmul.f32 0.015625, %v1798_v53  ;;  %v1666_v3 = vsel %vm1579_vm4, %v6396_v55, %v1663_v18 }
 0x39e   :  { %v1811_v16 = vadd.f32 1e-05, %v1807_v51  ;;  %v1806_v31 = vsub.f32 %v1802_v15, %v1804_v4 }
 0x3a0   :  { %5184 = vrsqrt.f32 %v1811_v16  ;;  %v1810_v46 = vadd.f32 1e-05, %v1806_v31 }
 0x3a2   :  { %5186 = vrsqrt.f32 %v1810_v46 }
 0x3a3   :  { %5188 = vcosq.f32 %v1666_v3 }
 0x3a4   :  { %5190 = vsinq.f32 %v1666_v3 }
 0x3a6   :  { %v5181_v42 = vpop.eup %5180 }
 0x3a7   :  { %v5183_v56 = vpop.eup %5182  ;;  %v1574_v63 = vxor.u32 2147483648, %v5181_v42 }
 0x3a8   :  { %v1571_v38 = vxor.u32 2147483648, %v5183_v56 }
 0x3a9   :  { %v1575_v39 = vsel %vm1573_vm5, %v1574_v63, %v5183_v56  ;;  %v3481_v63 = vld [vmem:[#allocation2 + $0x170] sm:$0xff] }
 0x3aa   :  { %v1572_v7 = vsel %vm1570_vm6, %v5181_v42, %v1571_v38 }
 0x3ab   :  { %v1576_v6 = vsel %vm1569_vm8, %v1572_v7, %v1575_v39  ;;  %v3479_v7 = vld [vmem:[#allocation2 + $0x160] sm:$0xff] }
 0x3ac   :  { %v1577_v49 = vsel %vm1566_vm7, nan, %v1576_v6 }
 0x3ad   :  { %v5185_v8 = vpop.eup %5184  ;;  %v2149_v0 = vpop.xlane.xlu1 %2148  ;;  %v6556_v15 = vadd.f32 %v1577_v49, %v5872_v9 }
 0x3ae   :  { %v1815_v27 = vmul.f32 %v5185_v8, %v1809_v17  ;;  %v6558_v44 = vmul.f32 0.015625, %v2149_v0 }
 0x3af   :  { %v5187_v21 = vpop.eup %5186  ;;  %v2146_v5 = vpop.xlane.xlu0 %2145  ;;  %4932 = vmatprep.mubr.msk.f32.mxu0 %vm260_vm2, %v6556_v15 }
 0x3b0   :  { %v1823_v30 = vmul.f32 %v4631_v12, %v1815_v27  ;;  %v1814_v53 = vmul.f32 %v5187_v21, %v1808_v1  ;;  %v5189_v51 = vpop.eup %5188  ;;  %v2163_v28 = vmul.f32 %v6558_v44, %v6558_v44  ;;  %v6570_v13 = vmul.f32 0.015625, %v2146_v5 }
 0x3b1   :  { %v5191_v11 = vpop.eup %5190  ;;  %v1678_v24 = vxor.u32 2147483648, %v5189_v51 }
 0x3b2   :  { %v6553_v4 = vadd.f32 %v4632_v19, %v1823_v30  ;;  %v1822_v52 = vmul.f32 %v4631_v12, %v1814_v53  ;;  %v1675_v16 = vxor.u32 2147483648, %v5191_v11  ;;  %v2162_v8 = vmul.f32 %v6570_v13, %v6570_v13 }
 0x3b3   :  { %v1679_v31 = vsel %vm1677_vm9, %v1678_v24, %v5191_v11  ;;  %v2159_v37 = vpop.xlane.xlu0 %2158  ;;  %v2166_v49 = vsub.f32 %v6359_v25, %v6570_v13  ;;  %v3477_v24 = vld [vmem:[#allocation2 + $0x150] sm:$0xff] }
 0x3b4   :  { %v1939_v29 = vand.u32 2139095040, %v6553_v4  ;;  %v6561_v50 = vadd.f32 %v4632_v19, %v1822_v52  ;;  %v1676_v46 = vsel %vm1674_vm12, %v5189_v51, %v1675_v16  ;;  %v2161_v18 = vmul.f32 0.015625, %v2159_v37 }
 0x3b5   :  { %v1680_v3 = vsel %vm1673_vm11, %v1676_v46, %v1679_v31  ;;  %v1936_v19 = vand.u32 2147483647, %v6553_v4  ;;  %v3476_v46 = vld [vmem:[#allocation2 + $0x148] sm:$0xff] }
 0x3b6   :  { %v1940_v9 = vshrl.u32 %v1939_v29, 23  ;;  %v1835_v22 = vand.u32 2139095040, %v6561_v50  ;;  %v1832_v61 = vand.u32 2147483647, %v6561_v50  ;;  %v1681_v55 = vsel %vm1670_vm10, nan, %v1680_v3 }
 0x3b7   :  { %v2165_v45 = vsub.f32 %v2161_v18, %v2163_v28  ;;  %v6573_v2 = vadd.f32 %v1681_v55, %v5970_v10  ;;  %v2156_v17 = vpop.xlane.xlu0 %2155  ;;  %v3480_v10 = vld [vmem:[#allocation2 + $0x168] sm:$0xff]  ;;  %v6595_v11 = vand.u32 8388607, %v1936_v19  ;;  %vm1834_vm11 = vcmp.lt.s32.totalorder %v6561_v50, 0 }
 0x3b8   :  { %v4637_v62 = vadd.s32 4294967169, %v1940_v9  ;;  %v1836_v57 = vshrl.u32 %v1835_v22, 23  ;;  %v1839_v58 = vand.u32 8388607, %v1832_v61  ;;  %v2160_v38 = vmul.f32 0.015625, %v2156_v17  ;;  %v3475_v17 = vld [vmem:[#allocation2 + $0x140] sm:$0xff] }
 0x3b9   :  { %8385 = vst [vmem:[#allocation5_spill] sm:$0xff] %v6573_v2  ;;  %v2169_v12 = vadd.f32 1e-05, %v2165_v45  ;;  %4933 = vmatmul.mubr.msk.f32.vlgmr.msra.gmra.mxu0 %vm260_vm2, %v6573_v2 }
 0x3ba   :  { %v1946_v42 = vadd.s32 1, %v4637_v62  ;;  %v4633_v56 = vadd.s32 4294967169, %v1836_v57  ;;  %4955 = vmatpush3.msra.mxu0 %v6508_v54  ;;  %v2164_v39 = vsub.f32 %v2160_v38, %v2162_v8  ;;  %v1840_v21 = vor.u32 8388608, %v1839_v58 }
 0x3bb   :  { %5192 = vrsqrt.f32 %v2169_v12  ;;  %4956 = vmatprep.subr.mxu0 %v3481_v63  ;;  %v2167_v54 = vsub.f32 %v6357_v59, %v6558_v44  ;;  %v8386_v62 = vmov 1326507024  }
 0x3bc   :  { %vm1947_vm13 = vcmp.gt.s32.totalorder %v1946_v42, 0  ;;  %v1842_v27 = vadd.s32 1, %v4633_v56  ;;  %4957 = vmatpush3.msra.mxu0 %v3481_v63  ;;  %v2168_v53 = vadd.f32 1e-05, %v2164_v39  ;;  %v6591_v5 = vshll.u32 %v1840_v21, 8 }
 0x3bd   :  { %v1948_v1 = vsel %vm1947_vm13, %v1946_v42, 0  ;;  %4958 = vmatprep.subr.mxu0 %v3480_v10  ;;  %vm6755_vm13 = vcmp.le.f32.partialorder %v1832_v61, 0.7853982 }
 0x3be   :  { %vm1843_vm14 = vcmp.gt.s32.totalorder %v1842_v27, 0  ;;  %v6583_v30 = vand.u32 31, %v1948_v1  ;;  %4959 = vmatpush3.msra.mxu0 %v3480_v10  ;;  %5194 = vrsqrt.f32 %v2168_v53  ;;  %v6589_v51 = vshrl.u32 %v1948_v1, 5 }
 0x3bf   :  { %v1844_v0 = vsel %vm1843_vm14, %v1842_v27, 0  ;;  %4960 = vmatprep.subr.mxu0 %v3479_v7 }
 0x3c0   :  { %v1846_v6 = vand.u32 31, %v1844_v0  ;;  %4961 = vmatpush3.msra.mxu0 %v3479_v7  ;;  %v6598_v29 = vsub.s32 32, %v6583_v30  ;;  %v6600_v59 = vshrl.u32 %v1844_v0, 5  ;;  %v1953_v56 = vshll.u32 %v8348_v23, %v6583_v30  ;;  %v4647_v0 = vld [vmem:[%s8325_s7 + $0x4] ss:$0 sm:$0xff] }
 0x3c1   :  { %4962 = vmatprep.subr.mxu0 %v3478_v48  ;;  %v6617_v8 = vshll.u32 %v8370_v34, %v6583_v30  ;;  %vm1971_vm5 = vcmp.lt.s32.totalorder %v6589_v51, 4  ;;  %vm1968_vm6 = vcmp.lt.s32.totalorder %v6589_v51, 1  ;;  %vm1970_vm7 = vcmp.lt.s32.totalorder %v6589_v51, 3 }
 0x3c2   :  { %v1847_v52 = vsub.s32 32, %v1846_v6  ;;  %v1849_v44 = vshll.u32 %v8348_v23, %v1846_v6  ;;  %v1852_v16 = vshll.u32 %v8370_v34, %v1846_v6  ;;  %v1855_v22 = vshll.u32 %v8371_v20, %v1846_v6  ;;  %4963 = vmatpush3.msra.mxu0 %v3478_v48 }
 0x3c3   :  { %v1858_v28 = vshll.u32 %v8362_v32, %v1846_v6  ;;  %v1861_v3 = vshll.u32 %v8351_v35, %v1846_v6  ;;  %4964 = vmatprep.subr.mxu0 %v3477_v24  ;;  %vm1864_vm15 = vcmp.lt.s32.totalorder %v6600_v59, 1  ;;  %vm1866_vm0 = vcmp.lt.s32.totalorder %v6600_v59, 3 }
 0x3c4   :  { %v1850_v31 = vshrl.u32 %v8370_v34, %v1847_v52  ;;  %v1853_v9 = vshrl.u32 %v8371_v20, %v1847_v52  ;;  %v1856_v37 = vshrl.u32 %v8362_v32, %v1847_v52  ;;  %v1859_v18 = vshrl.u32 %v8351_v35, %v1847_v52  ;;  %4965 = vmatpush3.msra.mxu0 %v3477_v24  ;;  %v2507_v12 = vpop.xlane.xlu1 %2506 }
 0x3c5   :  { %v1862_v57 = vshrl.u32 %v8386_v62, %v1847_v52  ;;  %4966 = vmatprep.subr.mxu0 %v3476_v46  ;;  %v1848_v38 = vshrl.u32 %v8348_v23, %v1847_v52  ;;  %vm1867_vm1 = vcmp.lt.s32.totalorder %v6600_v59, 4  ;;  %vm1865_vm3 = vcmp.lt.s32.totalorder %v6600_v59, 2 }
 0x3c6   :  { %v1851_v55 = vor.u32 %v1850_v31, %v1849_v44  ;;  %v1854_v45 = vor.u32 %v1853_v9, %v1852_v16  ;;  %v1857_v42 = vor.u32 %v1856_v37, %v1855_v22  ;;  %v1860_v63 = vor.u32 %v1859_v18, %v1858_v28  ;;  %4967 = vmatpush3.msra.mxu0 %v3476_v46  ;;  %v4648_v9 = vld [vmem:[%s8326_s8 + $0x4] ss:$0 sm:$0xff] }
 0x3c7   :  { %v1863_v58 = vor.u32 %v1862_v57, %v1861_v3  ;;  %4968 = vmatprep.subr.mxu0 %v3475_v17  ;;  %v1959_v48 = vshll.u32 %v8371_v20, %v6583_v30  ;;  %v6636_v52 = vmul.f32 0.015625, %v2507_v12  ;;  %vm1969_vm8 = vcmp.lt.s32.totalorder %v6589_v51, 2  ;;  %v4663_v51 = vld [vmem:[%s8325_s7 + $0x6] ss:$0 sm:$0xff] }
 0x3c8   :  { %v1872_v27 = vsel %vm1864_vm15, %v1851_v55, %v1854_v45  ;;  %v1869_v10 = vsel %vm1867_vm1, %v1857_v42, 2102212464  ;;  %v1873_v1 = vsel %vm1867_vm1, %v1860_v63, 920167782  ;;  %v1876_v39 = vsel %vm1864_vm15, %v1854_v45, %v1857_v42  ;;  %v5193_v7 = vpop.eup %5192  ;;  %4969 = vmatpush3.msra.mxu0 %v3475_v17  ;;  %v2504_v31 = vpop.xlane.xlu1 %2503 }
 0x3c9   :  { %v1877_v21 = vsel %vm1867_vm1, %v1863_v58, 1326507024  ;;  %v1874_v53 = vsel %vm1866_vm0, %v1857_v42, %v1873_v1  ;;  %v2173_v24 = vmul.f32 %v5193_v7, %v2167_v54  ;;  %v1868_v44 = vsel %vm1864_vm15, %v1848_v38, %v1851_v55  ;;  %v2514_v22 = vpop.xlane.xlu0 %2513 }
 0x3ca   :  { %v1878_v6 = vsel %vm1866_vm0, %v1860_v63, %v1877_v21  ;;  %v1875_v16 = vsel %vm1865_vm3, %v1872_v27, %v1874_v53  ;;  %v1870_v37 = vsel %vm1866_vm0, %v1854_v45, %v1869_v10  ;;  %v6654_v18 = vmul.f32 0.015625, %v2504_v31 }
 0x3cb   :  { %v1879_v46 = vsel %vm1865_vm3, %v1876_v39, %v1878_v6  ;;  %v6650_v54 = vmul.u32.u64.low %v6591_v5, %v1875_v16  ;;  %v6651_v28 = vmul.u32.u64.high %v6591_v5, %v1875_v16, %v6650_v54  ;;  %v2181_v3 = vmul.f32 %v4647_v0, %v2173_v24  ;;  %v5195_v42 = vpop.eup %5194 }
 0x3cc   :  { %v2518_v57 = vmul.f32 0.015625, %v2514_v22  ;;  %v1962_v55 = vshll.u32 %v8362_v32, %v6583_v30  ;;  %v6659_v17 = vmul.u32.u64.low %v6591_v5, %v1879_v46  ;;  %v6660_v63 = vmul.u32.u64.high %v6591_v5, %v1879_v46, %v6659_v17  ;;  %v2517_v39 = vpop.xlane.xlu1 %2516 }
 0x3cd   :  { %v1954_v45 = vshrl.u32 %v8370_v34, %v6598_v29  ;;  %v1957_v58 = vshrl.u32 %v8371_v20, %v6598_v29  ;;  %v2520_v12 = vmul.f32 %v6654_v18, %v6654_v18  ;;  %v6668_v38 = vadd.f32 %v4648_v9, %v2181_v3 }
 0x3ce   :  { %v2172_v27 = vmul.f32 %v5195_v42, %v2166_v49  ;;  %v1871_v10 = vsel %vm1865_vm3, %v1868_v44, %v1870_v37  ;;  %v2521_v1 = vmul.f32 %v6636_v52, %v6636_v52  ;;  %v1890_v21 = vadd.s32 1, %v6651_v28 }
 0x3cf   :  { %v1960_v7 = vshrl.u32 %v8362_v32, %v6598_v29  ;;  %v1963_v53 = vshrl.u32 %v8351_v35, %v6598_v29  ;;  %v2297_v6 = vand.u32 2139095040, %v6668_v38  ;;  %v2519_v24 = vmul.f32 0.015625, %v2517_v39 }
 0x3d0   :  { %v2180_v25 = vmul.f32 %v4647_v0, %v2172_v27  ;;  %v2522_v13 = vsub.f32 %v2518_v57, %v2520_v12  ;;  %v1887_v49 = vmul.u32 %v6591_v5, %v1871_v10  ;;  %vm1889_vm4 = vc.u32 %v6660_v63, %v6650_v54 }
 0x3d1   :  { %v1955_v59 = vor.u32 %v1954_v45, %v1953_v56  ;;  %v1966_v44 = vshrl.u32 %v8386_v62, %v6598_v29  ;;  %v2298_v16 = vshrl.u32 %v2297_v6, 23  ;;  %v2523_v31 = vsub.f32 %v2519_v24, %v2521_v1 }
 0x3d2   :  { %v6688_v22 = vadd.f32 %v4648_v9, %v2180_v25  ;;  %v2526_v37 = vadd.f32 1e-05, %v2522_v13  ;;  %v1891_v46 = vsel %vm1889_vm4, %v1890_v21, %v6651_v28  ;;  %v1958_v3 = vor.u32 %v1957_v58, %v6617_v8 }
 0x3d3   :  { %v1964_v0 = vor.u32 %v1963_v53, %v1962_v55  ;;  %v1965_v5 = vshll.u32 %v8351_v35, %v6583_v30  ;;  %v2527_v57 = vadd.f32 1e-05, %v2523_v31  ;;  %v1961_v56 = vor.u32 %v1960_v7, %v1959_v48 }
 0x3d4   :  { %v2193_v42 = vand.u32 2139095040, %v6688_v22  ;;  %5196 = vrsqrt.f32 %v2526_v37  ;;  %v1892_v17 = vadd.s32 %v1891_v46, %v1887_v49  ;;  %v1944_v45 = vor.u32 8388608, %v6595_v11 }
 0x3d5   :  { %v1967_v12 = vor.u32 %v1966_v44, %v1965_v5  ;;  %v4653_v9 = vadd.s32 4294967169, %v2298_v16  ;;  %5198 = vrsqrt.f32 %v2527_v57  ;;  %v1977_v30 = vsel %vm1971_vm5, %v1964_v0, 920167782 }
 0x3d6   :  { %v2194_v27 = vshrl.u32 %v2193_v42, 23  ;;  %v1893_v28 = vadd.s32 536870912, %v1892_v17  ;;  %v1976_v55 = vsel %vm1968_vm6, %v1955_v59, %v1958_v3  ;;  %v1978_v48 = vsel %vm1970_vm7, %v1961_v56, %v1977_v30 }
 0x3d7   :  { %v1980_v11 = vsel %vm1968_vm6, %v1958_v3, %v1961_v56  ;;  %v1981_v10 = vsel %vm1971_vm5, %v1967_v12, 1326507024  ;;  %v1984_v1 = vshll.u32 %v1944_v45, 8  ;;  %v2304_v39 = vadd.s32 1, %v4653_v9 }
 0x3d8   :  { %v4649_v8 = vadd.s32 4294967169, %v2194_v27  ;;  %v1894_v58 = vshrl.u32 %v1893_v28, 30  ;;  %v1973_v7 = vsel %vm1971_vm5, %v1961_v56, 2102212464  ;;  %v1982_v53 = vsel %vm1970_vm7, %v1964_v0, %v1981_v10 }
 0x3d9   :  { %v1952_v24 = vshrl.u32 %v8348_v23, %v6598_v29  ;;  %v1979_v25 = vsel %vm1969_vm8, %v1976_v55, %v1978_v48  ;;  %v1983_v13 = vsel %vm1969_vm8, %v1980_v11, %v1982_v53  ;;  %v1974_v37 = vsel %vm1970_vm7, %v1958_v3, %v1973_v7 }
 0x3da   :  { %v2200_v21 = vadd.s32 1, %v4649_v8  ;;  %v1895_v6 = vshll.u32 %v1894_v58, 30  ;;  %v6714_v49 = vmul.u32.u64.low %v1984_v1, %v1983_v13  ;;  %v6715_v44 = vmul.u32.u64.high %v1984_v1, %v1983_v13, %v6714_v49 }
 0x3db   :  { %v1972_v31 = vsel %vm1968_vm6, %v1952_v24, %v1955_v59  ;;  %vm2305_vm10 = vcmp.gt.s32.totalorder %v2304_v39, 0  ;;  %v6723_v29 = vmul.u32.u64.low %v1984_v1, %v1979_v25  ;;  %v6724_v46 = vmul.u32.u64.high %v1984_v1, %v1979_v25, %v6723_v29 }
 0x3dc   :  { %vm2201_vm9 = vcmp.gt.s32.totalorder %v2200_v21, 0  ;;  %v6717_v16 = vsub.s32 %v1892_v17, %v1895_v6  ;;  %v1918_v57 = vsub.s32 4, %v1894_v58  ;;  %v2524_v42 = vsub.f32 %v6376_v43, %v6654_v18 }
 0x3dd   :  { %v2202_v0 = vsel %vm2201_vm9, %v2200_v21, 0  ;;  %v1975_v56 = vsel %vm1969_vm8, %v1972_v31, %v1974_v37  ;;  %v6731_v45 = vsel %vm2305_vm10, %v2304_v39, 0  ;;  %vm1993_vm12 = vc.u32 %v6715_v44, %v6723_v29 }
 0x3de   :  { %v1898_v5 = vsub.s32 0, %v6717_v16  ;;  %v2525_v3 = vsub.f32 %v6374_v40, %v6636_v52  ;;  %v6738_v12 = vand.u32 31, %v2202_v0  ;;  %v1994_v43 = vadd.s32 1, %v6724_v46  ;;  %v4664_v40 = vld [vmem:[%s8326_s8 + $0x6] ss:$0 sm:$0xff] }
 0x3df   :  { %v1919_v28 = vsel %vm1834_vm11, %v1918_v57, %v1894_v58  ;;  %v1991_v30 = vmul.u32 %v1984_v1, %v1975_v56  ;;  %v6747_v8 = vand.u32 31, %v6731_v45  ;;  %v2190_v1 = vand.u32 2147483647, %v6688_v22 }
 0x3e0   :  { %v4634_v59 = vmin.u32 %v1898_v5, %v6717_v16  ;;  %v1995_v48 = vsel %vm1993_vm12, %v1994_v43, %v6724_v46  ;;  %v1921_v7 = vsel %vm6755_vm13, 0, %v1919_v28  ;;  %v2205_v53 = vsub.s32 32, %v6738_v12 }
 0x3e1   :  { %v5197_v17 = vpop.eup %5196  ;;  %v1996_v58 = vadd.s32 %v1995_v48, %v1991_v30  ;;  %v1888_v6 = vadd.s32 %v6650_v54, %v6660_v63  ;;  %vm1938_vm15 = vcmp.lt.s32.totalorder %v6553_v4, 0  ;;  %v6769_v24 = vsub.s32 32, %v6747_v8 }
 0x3e2   :  { %v2530_v9 = vmul.f32 %v5197_v17, %v2524_v42  ;;  %v5199_v18 = vpop.eup %5198  ;;  %v1900_v27 = vclz %v4634_v59  ;;  %v1925_v46 = vadd.s32 3, %v1921_v7  ;;  %v6775_v42 = vadd.s32 %v6723_v29, %v6715_v44 }
 0x3e3   :  { %v2531_v52 = vmul.f32 %v5199_v18, %v2525_v3  ;;  %v1997_v61 = vadd.s32 536870912, %v1996_v58  ;;  %v6779_v54 = vand.u32 8388607, %v2190_v1  ;;  %v2208_v63 = vshrl.u32 %v8370_v34, %v2205_v53 }
 0x3e4   :  { %v2538_v55 = vmul.f32 %v4663_v51, %v2530_v9  ;;  %v4635_v10 = vadd.s32 4294967294, %v1900_v27  ;;  %vm6785_vm0 = vcmp.le.f32.partialorder %v1936_v19, 0.7853982  ;;  %v6790_v43 = vshrl.u32 %v2202_v0, 5 }
 0x3e5   :  { %v2539_v39 = vmul.f32 %v4663_v51, %v2531_v52  ;;  %v1998_v5 = vshrl.u32 %v1997_v61, 30  ;;  %v2207_v18 = vshll.u32 %v8348_v23, %v6738_v12  ;;  %v2210_v30 = vshll.u32 %v8370_v34, %v6738_v12 }
 0x3e6   :  { %v6760_v21 = vadd.f32 %v4664_v40, %v2538_v55  ;;  %vm4636_vm14 = vcmp.lt.s32.totalorder %v4635_v10, 0  ;;  %v2211_v19 = vshrl.u32 %v8371_v20, %v2205_v53  ;;  %v2217_v52 = vshrl.u32 %v8351_v35, %v2205_v53 }
 0x3e7   :  { %v6771_v25 = vadd.f32 %v4664_v40, %v2539_v39  ;;  %v1903_v49 = vsel %vm4636_vm14, 0, %v4635_v10  ;;  %v1999_v9 = vshll.u32 %v1998_v5, 30  ;;  %v2022_v29 = vsub.s32 4, %v1998_v5 }
 0x3e8   :  { %v2551_v13 = vand.u32 2139095040, %v6760_v21  ;;  %v1904_v31 = vsub.s32 32, %v1903_v49  ;;  %v1908_v37 = vsub.s32 4294967266, %v1903_v49  ;;  %v1905_v56 = vshll.u32 %v6717_v16, %v1903_v49 }
 0x3e9   :  { %v2655_v44 = vand.u32 2139095040, %v6771_v25  ;;  %v2000_v28 = vsub.s32 %v1996_v58, %v1999_v9  ;;  %v2214_v40 = vshrl.u32 %v8362_v32, %v2205_v53  ;;  %v2209_v0 = vor.u32 %v2208_v63, %v2207_v18 }
 0x3ea   :  { %v2552_v57 = vshrl.u32 %v2551_v13, 23  ;;  %v1906_v17 = vshrl.u32 %v1888_v6, %v1904_v31  ;;  %v1909_v59 = vadd.s32 127, %v1908_v37  ;;  %v2213_v10 = vshll.u32 %v8371_v20, %v6738_v12 }
 0x3eb   :  { %v2002_v48 = vsub.s32 0, %v2000_v28  ;;  %v2656_v39 = vshrl.u32 %v2655_v44, 23  ;;  %v2023_v7 = vsel %vm1938_vm15, %v2022_v29, %v1998_v5  ;;  %v2216_v58 = vshll.u32 %v8362_v32, %v6738_v12 }
 0x3ec   :  { %v4665_v51 = vadd.s32 4294967169, %v2552_v57  ;;  %v1907_v27 = vor.u32 %v1906_v17, %v1905_v56  ;;  %v1910_v16 = vshll.u32 %v1909_v59, 23  ;;  %v2220_v6 = vshrl.u32 %v8386_v62, %v2205_v53 }
 0x3ed   :  { %v4638_v31 = vmin.u32 %v2002_v48, %v2000_v28  ;;  %v2212_v37 = vor.u32 %v2211_v19, %v2210_v30  ;;  %v2215_v57 = vor.u32 %v2214_v40, %v2213_v10  ;;  %v2218_v56 = vor.u32 %v2217_v52, %v2216_v58 }
 0x3ee   :  { %v1911_v55 = vor.u32 4788187, %v1910_v16  ;;  %v2558_v61 = vadd.s32 1, %v4665_v51  ;;  %v1914_v49 = vcvt.s32.f32 %v1907_v27  ;;  %v2219_v63 = vshll.u32 %v8351_v35, %v6738_v12 }
 0x3ef   :  { %v6808_v59 = vand.u32 3, %v1925_v46  ;;  %v2004_v9 = vclz %v4638_v31  ;;  %v2198_v5 = vor.u32 8388608, %v6779_v54  ;;  %v4669_v44 = vadd.s32 4294967169, %v2656_v39 }
 0x3f0   :  { %v1912_v13 = vand.u32 2147483647, %v1911_v55  ;;  %v2025_v29 = vsel %vm6785_vm0, 0, %v2023_v7  ;;  %v2206_v18 = vshrl.u32 %v8348_v23, %v2205_v53  ;;  %v2221_v51 = vor.u32 %v2220_v6, %v2219_v63 }
 0x3f1   :  { %vm2559_vm1 = vcmp.gt.s32.totalorder %v2558_v61, 0  ;;  %v4639_v16 = vadd.s32 4294967294, %v2004_v9  ;;  %vm2222_vm3 = vcmp.lt.s32.totalorder %v6790_v43, 1  ;;  %vm2225_vm4 = vcmp.lt.s32.totalorder %v6790_v43, 4 }
 0x3f2   :  { %v1915_v17 = vmul.f32 %v1914_v49, %v1912_v13  ;;  %vm2224_vm5 = vcmp.lt.s32.totalorder %v6790_v43, 3  ;;  %v2227_v12 = vsel %vm2225_vm4, %v2215_v57, 2102212464  ;;  %v2230_v46 = vsel %vm2222_vm3, %v2209_v0, %v2212_v37 }
 0x3f3   :  { %v2231_v54 = vsel %vm2225_vm4, %v2218_v56, 920167782  ;;  %vm4640_vm6 = vcmp.lt.s32.totalorder %v4639_v16, 0  ;;  %vm2223_vm7 = vcmp.lt.s32.totalorder %v6790_v43, 2  ;;  %v2226_v52 = vsel %vm2222_vm3, %v2206_v18, %v2209_v0 }
 0x3f4   :  { %v1916_v27 = vxor.u32 2147483648, %v1915_v17  ;;  %v2232_v30 = vsel %vm2224_vm5, %v2215_v57, %v2231_v54  ;;  %v2007_v40 = vsel %vm4640_vm6, 0, %v4639_v16  ;;  %v2228_v55 = vsel %vm2224_vm5, %v2212_v37, %v2227_v12 }
 0x3f5   :  { %v2008_v48 = vsub.s32 32, %v2007_v40  ;;  %v2012_v10 = vsub.s32 4294967266, %v2007_v40  ;;  %v2233_v39 = vsel %vm2223_vm7, %v2230_v46, %v2232_v30  ;;  %v2234_v7 = vsel %vm2222_vm3, %v2212_v37, %v2215_v57 }
 0x3f6   :  { %v1917_v53 = vsel %vm1834_vm11, %v1916_v27, %v1915_v17  ;;  %v2235_v11 = vsel %vm2225_vm4, %v2221_v51, 1326507024  ;;  %v2238_v58 = vshll.u32 %v2198_v5, 8  ;;  %v2009_v6 = vshll.u32 %v2000_v28, %v2007_v40 }
 0x3f7   :  { %v1920_v19 = vsel %vm6755_vm13, %v6561_v50, %v1917_v53  ;;  %v2010_v0 = vshrl.u32 %v6775_v42, %v2008_v48  ;;  %v2013_v13 = vadd.s32 127, %v2012_v10  ;;  %v2236_v49 = vsel %vm2224_vm5, %v2218_v56, %v2235_v11 }
 0x3f8   :  { %5200 = vcosq.f32 %v1920_v19  ;;  %v2229_v31 = vsel %vm2223_vm7, %v2226_v52, %v2228_v55  ;;  %v2237_v63 = vsel %vm2223_vm7, %v2234_v7, %v2236_v49  ;;  %v2029_v42 = vadd.s32 3, %v2025_v29 }
 0x3f9   :  { %5202 = vsinq.f32 %v1920_v19  ;;  %v6848_v17 = vmul.u32.u64.low %v2238_v58, %v2233_v39  ;;  %v6849_v9 = vmul.u32.u64.high %v2238_v58, %v2233_v39, %v6848_v17  ;;  %v2011_v37 = vor.u32 %v2010_v0, %v2009_v6 }
 0x3fa   :  { %v2014_v57 = vshll.u32 %v2013_v13, 23  ;;  %v6852_v5 = vmul.u32.u64.low %v2238_v58, %v2237_v63  ;;  %v6853_v28 = vmul.u32.u64.high %v2238_v58, %v2237_v63, %v6852_v5  ;;  %v2294_v18 = vand.u32 2147483647, %v6668_v38 }
 0x3fb   :  { %v6857_v56 = vshrl.u32 %v6731_v45, 5  ;;  %v6859_v27 = vadd.s32 1, %v4669_v44  ;;  %v6862_v43 = vsel %vm2559_vm1, %v2558_v61, 0  ;;  %vm1931_vm8 = vcmp.eq.s32.totalorder %v6808_v59, 2 }
 0x3fc   :  { %v2015_v51 = vor.u32 4788187, %v2014_v57  ;;  %v2245_v16 = vmul.u32 %v2238_v58, %v2229_v31  ;;  %v2248_v12 = vadd.s32 1, %v6849_v9  ;;  %vm1928_vm9 = vcmp.eq.s32.totalorder %v6808_v59, 0 }
 0x3fd   :  { %v2018_v29 = vcvt.s32.f32 %v2011_v37  ;;  %vm2247_vm10 = vc.u32 %v6853_v28, %v6848_v17  ;;  %v2312_v45 = vshrl.u32 %v8370_v34, %v6769_v24  ;;  %vm1927_vm11 = vcmp.lt.s32.totalorder %v6808_v59, 2 }
 0x3fe   :  { %v2016_v46 = vand.u32 2147483647, %v2015_v51  ;;  %v6872_v44 = vand.u32 3, %v2029_v42  ;;  %v2249_v61 = vsel %vm2247_vm10, %v2248_v12, %v6849_v9  ;;  %v2301_v54 = vand.u32 8388607, %v2294_v18 }
 0x3ff   :  { %v2315_v53 = vshrl.u32 %v8371_v20, %v6769_v24  ;;  %vm1924_vm12 = vweird.f32 %v6561_v50  ;;  %v2250_v19 = vadd.s32 %v2249_v61, %v2245_v16  ;;  %v2311_v40 = vshll.u32 %v8348_v23, %v6747_v8 }
 0x400   :  { %v2019_v30 = vmul.f32 %v2018_v29, %v2016_v46  ;;  %v2318_v52 = vshrl.u32 %v8362_v32, %v6769_v24  ;;  %v2314_v55 = vshll.u32 %v8370_v34, %v6747_v8  ;;  %v2320_v48 = vshll.u32 %v8362_v32, %v6747_v8 }
 0x401   :  { %v2321_v10 = vshrl.u32 %v8351_v35, %v6769_v24  ;;  %v2324_v39 = vshrl.u32 %v8386_v62, %v6769_v24  ;;  %v2251_v11 = vadd.s32 536870912, %v2250_v19  ;;  %v2313_v58 = vor.u32 %v2312_v45, %v2311_v40 }
 0x402   :  { %v2020_v7 = vxor.u32 2147483648, %v2019_v30  ;;  %v2317_v6 = vshll.u32 %v8371_v20, %v6747_v8  ;;  %v2302_v13 = vor.u32 8388608, %v2301_v54  ;;  %v2316_v49 = vor.u32 %v2315_v53, %v2314_v55 }
 0x403   :  { %v2322_v31 = vor.u32 %v2321_v10, %v2320_v48  ;;  %v2323_v63 = vshll.u32 %v8351_v35, %v6747_v8  ;;  %v6898_v5 = vshrl.u32 %v2251_v11, 30  ;;  %vm2326_vm13 = vcmp.lt.s32.totalorder %v6857_v56, 1 }
 0x404   :  { %v2021_v57 = vsel %vm1938_vm15, %v2020_v7, %v2019_v30  ;;  %v2319_v42 = vor.u32 %v2318_v52, %v2317_v6  ;;  %vm2329_vm14 = vcmp.lt.s32.totalorder %v6857_v56, 4  ;;  %v2334_v45 = vsel %vm2326_vm13, %v2313_v58, %v2316_v49 }
 0x405   :  { %v5201_v0 = vpop.eup %5200  ;;  %v2024_v16 = vsel %vm6785_vm0, %v6553_v4, %v2021_v57  ;;  %v2325_v12 = vor.u32 %v2324_v39, %v2323_v63  ;;  %v2253_v8 = vshll.u32 %v6898_v5, 30  ;;  %v2335_v3 = vsel %vm2329_vm14, %v2322_v31, 920167782 }
 0x406   :  { %v5203_v9 = vpop.eup %5202  ;;  %v1932_v37 = vxor.u32 2147483648, %v5201_v0  ;;  %5204 = vcosq.f32 %v2024_v16  ;;  %vm2328_vm15 = vcmp.lt.s32.totalorder %v6857_v56, 3  ;;  %v2331_v53 = vsel %vm2329_vm14, %v2319_v42, 2102212464 }
 0x407   :  { %v1929_v51 = vxor.u32 2147483648, %v5203_v9  ;;  %5206 = vsinq.f32 %v2024_v16  ;;  %v6916_v54 = vsub.s32 %v2250_v19, %v2253_v8  ;;  %v2310_v40 = vshrl.u32 %v8348_v23, %v6769_v24 }
 0x408   :  { %v1933_v46 = vsel %vm1931_vm8, %v1932_v37, %v5203_v9  ;;  %vm2327_vm0 = vcmp.lt.s32.totalorder %v6857_v56, 2  ;;  %v2336_v52 = vsel %vm2328_vm15, %v2319_v42, %v2335_v3  ;;  %v2338_v50 = vsel %vm2326_vm13, %v2316_v49, %v2319_v42 }
 0x409   :  { %v1930_v29 = vsel %vm1928_vm9, %v5201_v0, %v1929_v51  ;;  %v2256_v19 = vsub.s32 0, %v6916_v54  ;;  %v2337_v55 = vsel %vm2327_vm0, %v2334_v45, %v2336_v52  ;;  %v2330_v48 = vsel %vm2326_vm13, %v2310_v40, %v2313_v58 }
 0x40a   :  { %v1934_v61 = vsel %vm1927_vm11, %v1930_v29, %v1933_v46  ;;  %v2332_v24 = vsel %vm2328_vm15, %v2316_v49, %v2331_v53  ;;  %v2339_v10 = vsel %vm2329_vm14, %v2325_v12, 1326507024  ;;  %v2342_v39 = vshll.u32 %v2302_v13, 8 }
 0x40b   :  { %v1935_v30 = vsel %vm1924_vm12, nan, %v1934_v61  ;;  %v4650_v7 = vmin.u32 %v2256_v19, %v6916_v54  ;;  %v2340_v11 = vsel %vm2328_vm15, %v2322_v31, %v2339_v10  ;;  %v2548_v13 = vand.u32 2147483647, %v6760_v21 }
 0x40c   :  { %v6929_v59 = vadd.f32 %v1935_v30, %v6126_v41  ;;  %v6943_v41 = vand.u32 31, %v6862_v43  ;;  %v2341_v58 = vsel %vm2327_vm0, %v2338_v50, %v2340_v11  ;;  %v2333_v63 = vsel %vm2327_vm0, %v2330_v48, %v2332_v24 }
 0x40d   :  { %v6952_v6 = vmul.u32.u64.low %v2342_v39, %v2337_v55  ;;  %v6953_v0 = vmul.u32.u64.high %v2342_v39, %v2337_v55, %v6952_v6  ;;  %v2258_v49 = vclz %v4650_v7  ;;  %vm2663_vm1 = vcmp.gt.s32.totalorder %v6859_v27, 0 }
 0x40e   :  { %4951 = vmatprep.mubr.msk.f32.mxu1 %vm260_vm2, %v6929_v59  ;;  %vm2031_vm3 = vcmp.lt.s32.totalorder %v6872_v44, 2  ;;  %vm2032_vm4 = vcmp.eq.s32.totalorder %v6872_v44, 0  ;;  %v6962_v31 = vmul.u32.u64.low %v2342_v39, %v2341_v58  ;;  %v6963_v9 = vmul.u32.u64.high %v2342_v39, %v2341_v58, %v6962_v31 }
 0x40f   :  { %vm2028_vm5 = vweird.f32 %v6553_v4  ;;  %vm2035_vm6 = vcmp.eq.s32.totalorder %v6872_v44, 2  ;;  %v2246_v37 = vadd.s32 %v6848_v17, %v6853_v28  ;;  %v4651_v57 = vadd.s32 4294967294, %v2258_v49 }
 0x410   :  { %v6970_v56 = vsub.s32 32, %v6943_v41  ;;  %v2276_v42 = vsub.s32 4, %v6898_v5  ;;  %v2349_v51 = vmul.u32 %v2342_v39, %v2333_v63  ;;  %v2352_v16 = vadd.s32 1, %v6953_v0 }
 0x411   :  { %v6976_v12 = vand.u32 8388607, %v2548_v13  ;;  %vm2192_vm7 = vcmp.lt.s32.totalorder %v6688_v22, 0  ;;  %vm4652_vm8 = vcmp.lt.s32.totalorder %v4651_v57, 0  ;;  %v6980_v46 = vshrl.u32 %v6862_v43, 5 }
 0x412   :  { %v2565_v17 = vshll.u32 %v8348_v23, %v6943_v41  ;;  %v2568_v28 = vshll.u32 %v8370_v34, %v6943_v41  ;;  %v2261_v29 = vsel %vm4652_vm8, 0, %v4651_v57  ;;  %vm2351_vm9 = vc.u32 %v6963_v9, %v6952_v6 }
 0x413   :  { %v5205_v8 = vpop.eup %5204  ;;  %v2566_v45 = vshrl.u32 %v8370_v34, %v6970_v56  ;;  %v2571_v3 = vshll.u32 %v8371_v20, %v6943_v41  ;;  %v2262_v53 = vsub.s32 32, %v2261_v29  ;;  %v2266_v30 = vsub.s32 4294967266, %v2261_v29 }
 0x414   :  { %v5207_v61 = vpop.eup %5206  ;;  %v2036_v43 = vxor.u32 2147483648, %v5205_v8  ;;  %v2569_v40 = vshrl.u32 %v8371_v20, %v6970_v56  ;;  %vm6996_vm10 = vcmp.le.f32.partialorder %v2190_v1, 0.7853982  ;;  %v2263_v55 = vshll.u32 %v6916_v54, %v2261_v29 }
 0x415   :  { %v2033_v52 = vxor.u32 2147483648, %v5207_v61  ;;  %v2353_v50 = vsel %vm2351_vm9, %v2352_v16, %v6953_v0  ;;  %v2572_v48 = vshrl.u32 %v8362_v32, %v6970_v56  ;;  %v2264_v10 = vshrl.u32 %v2246_v37, %v2262_v53  ;;  %v3838_v53 = vld [vmem:[#allocation2 + $0x1e8] sm:$0xff] }
 0x416   :  { %v2037_v24 = vsel %vm2035_vm6, %v2036_v43, %v5207_v61  ;;  %v2267_v39 = vadd.s32 127, %v2266_v30  ;;  %v2354_v7 = vadd.s32 %v2353_v50, %v2349_v51  ;;  %v2567_v1 = vor.u32 %v2566_v45, %v2565_v17  ;;  %v3839_v45 = vld [vmem:[#allocation2 + $0x1f0] sm:$0xff] }
 0x417   :  { %v2034_v11 = vsel %vm2032_vm4, %v5205_v8, %v2033_v52  ;;  %v2574_v58 = vshll.u32 %v8362_v32, %v6943_v41  ;;  %v2575_v54 = vshrl.u32 %v8351_v35, %v6970_v56  ;;  %v2265_v49 = vor.u32 %v2264_v10, %v2263_v55 }
 0x418   :  { %v2038_v0 = vsel %vm2031_vm3, %v2034_v11, %v2037_v24  ;;  %v2268_v63 = vshll.u32 %v2267_v39, 23  ;;  %v2355_v31 = vadd.s32 536870912, %v2354_v7  ;;  %v2570_v57 = vor.u32 %v2569_v40, %v2568_v28 }
 0x419   :  { %v2039_v37 = vsel %vm2028_vm5, nan, %v2038_v0  ;;  %v2576_v51 = vor.u32 %v2575_v54, %v2574_v58  ;;  %v2578_v16 = vshrl.u32 %v8386_v62, %v6970_v56  ;;  %v7021_v17 = vsel %vm2663_vm1, %v6859_v27, 0 }
 0x41a   :  { %v7024_v8 = vadd.f32 %v2039_v37, %v6280_v60  ;;  %v2269_v44 = vor.u32 4788187, %v2268_v63  ;;  %v7026_v29 = vshrl.u32 %v2355_v31, 30  ;;  %v2272_v61 = vcvt.s32.f32 %v2265_v49  ;;  %v3835_v37 = vld [vmem:[#allocation2 + $0x1d0] sm:$0xff] }
 0x41b   :  { %v2277_v4 = vsel %vm2192_vm7, %v2276_v42, %v6898_v5  ;;  %v2573_v28 = vor.u32 %v2572_v48, %v2571_v3  ;;  %v2577_v43 = vshll.u32 %v8351_v35, %v6943_v41  ;;  %vm2580_vm11 = vcmp.lt.s32.totalorder %v6980_v46, 1 }
 0x41c   :  { %8393 = vst [vmem:[#allocation6_spill] sm:$0xff] %v7024_v8  ;;  %4952 = vmatmul.mubr.msk.f32.vlgmr.msra.gmra.mxu1 %vm260_vm2, %v7024_v8  ;;  %v2270_v27 = vand.u32 2147483647, %v2269_v44  ;;  %v2357_v60 = vshll.u32 %v7026_v29, 30  ;;  %vm2583_vm12 = vcmp.lt.s32.totalorder %v6980_v46, 4  ;;  %v2556_v30 = vor.u32 8388608, %v6976_v12 }
 0x41d   :  { %4974 = vmatpush3.msra.mxu1 %v6532_v47  ;;  %v2579_v5 = vor.u32 %v2578_v16, %v2577_v43  ;;  %v2588_v42 = vsel %vm2580_vm11, %v2567_v1, %v2570_v57  ;;  %v2589_v41 = vsel %vm2583_vm12, %v2576_v51, 920167782  ;;  %v2279_v40 = vsel %vm6996_vm10, 0, %v2277_v4  ;;  %v3837_v47 = vld [vmem:[#allocation2 + $0x1e0] sm:$0xff] }
 0x41e   :  { %4975 = vmatprep.subr.mxu1 %v3839_v45  ;;  %v2273_v3 = vmul.f32 %v2272_v61, %v2270_v27  ;;  %v7046_v52 = vsub.s32 %v2354_v7, %v2357_v60  ;;  %vm2582_vm13 = vcmp.lt.s32.totalorder %v6980_v46, 3  ;;  %v2564_v12 = vshrl.u32 %v8348_v23, %v6970_v56  ;;  %v3836_v56 = vld [vmem:[#allocation2 + $0x1d8] sm:$0xff] }
 0x41f   :  { %4976 = vmatpush3.msra.mxu1 %v3839_v45  ;;  %vm2581_vm14 = vcmp.lt.s32.totalorder %v6980_v46, 2  ;;  %v2585_v55 = vsel %vm2583_vm12, %v2573_v28, 2102212464  ;;  %v2590_v50 = vsel %vm2582_vm13, %v2573_v28, %v2589_v41  ;;  %v2592_v39 = vsel %vm2580_vm11, %v2570_v57, %v2573_v28 }
 0x420   :  { %4977 = vmatprep.subr.mxu1 %v3838_v53  ;;  %v2274_v48 = vxor.u32 2147483648, %v2273_v3  ;;  %v2360_v24 = vsub.s32 0, %v7046_v52  ;;  %v2591_v10 = vsel %vm2581_vm14, %v2588_v42, %v2590_v50  ;;  %v2283_v7 = vadd.s32 3, %v2279_v40 }
 0x421   :  { %4978 = vmatpush3.msra.mxu1 %v3838_v53  ;;  %v2584_v11 = vsel %vm2580_vm11, %v2564_v12, %v2567_v1  ;;  %v2593_v58 = vsel %vm2583_vm12, %v2579_v5, 1326507024  ;;  %v2596_v54 = vshll.u32 %v2556_v30, 8  ;;  %v2586_v63 = vsel %vm2582_vm13, %v2570_v57, %v2585_v55  ;;  %v3833_v53 = vld [vmem:[#allocation2 + $0x1c0] sm:$0xff] }
 0x422   :  { %4979 = vmatprep.subr.mxu1 %v3837_v47  ;;  %v2275_v0 = vsel %vm2192_vm7, %v2274_v48, %v2273_v3  ;;  %v4654_v49 = vmin.u32 %v2360_v24, %v7046_v52  ;;  %v2594_v31 = vsel %vm2582_vm13, %v2576_v51, %v2593_v58  ;;  %v7082_v61 = vand.u32 31, %v7021_v17  ;;  %v3834_v51 = vld [vmem:[#allocation2 + $0x1c8] sm:$0xff] }
 0x423   :  { %4980 = vmatpush3.msra.mxu1 %v3837_v47  ;;  %v2278_v1 = vsel %vm6996_vm10, %v6688_v22, %v2275_v0  ;;  %v2595_v16 = vsel %vm2581_vm14, %v2592_v39, %v2594_v31  ;;  %v7077_v44 = vmul.u32.u64.low %v2596_v54, %v2591_v10  ;;  %v7078_v45 = vmul.u32.u64.high %v2596_v54, %v2591_v10, %v7077_v44 }
 0x424   :  { %4981 = vmatprep.subr.mxu1 %v3836_v56  ;;  %5208 = vcosq.f32 %v2278_v1  ;;  %v2362_v57 = vclz %v4654_v49  ;;  %v7084_v4 = vmul.u32.u64.low %v2596_v54, %v2595_v16  ;;  %v7085_v28 = vmul.u32.u64.high %v2596_v54, %v2595_v16, %v7084_v4 }
 0x425   :  { %4982 = vmatpush3.msra.mxu1 %v3836_v56  ;;  %5210 = vsinq.f32 %v2278_v1  ;;  %v2587_v43 = vsel %vm2581_vm14, %v2584_v11, %v2586_v63  ;;  %v7089_v27 = vand.u32 3, %v2283_v7  ;;  %v2380_v60 = vsub.s32 4, %v7026_v29 }
 0x426   :  { %4983 = vmatprep.subr.mxu1 %v3835_v37  ;;  %v4655_v19 = vadd.s32 4294967294, %v2362_v57  ;;  %v2606_v30 = vadd.s32 1, %v7078_v45  ;;  %v2652_v5 = vand.u32 2147483647, %v6771_v25  ;;  %v7095_v42 = vshrl.u32 %v7021_v17, 5 }
 0x427   :  { %4984 = vmatpush3.msra.mxu1 %v3835_v37  ;;  %v2667_v41 = vsub.s32 32, %v7082_v61  ;;  %vm2296_vm0 = vcmp.lt.s32.totalorder %v6668_v38, 0  ;;  %v2603_v3 = vmul.u32 %v2596_v54, %v2587_v43  ;;  %vm2605_vm1 = vc.u32 %v7085_v28, %v7077_v44 }
 0x428   :  { %vm4656_vm15 = vcmp.lt.s32.totalorder %v4655_v19, 0  ;;  %4985 = vmatprep.subr.mxu1 %v3834_v51  ;;  %v2350_v40 = vadd.s32 %v6952_v6, %v6963_v9  ;;  %v2607_v17 = vsel %vm2605_vm1, %v2606_v30, %v7078_v45  ;;  %vm2289_vm3 = vcmp.eq.s32.totalorder %v7089_v27, 2 }
 0x429   :  { %v2365_v46 = vsel %vm4656_vm15, 0, %v4655_v19  ;;  %4986 = vmatpush3.msra.mxu1 %v3834_v51  ;;  %v7108_v55 = vsel %vm2296_vm0, %v2380_v60, %v7026_v29  ;;  %v2608_v50 = vadd.s32 %v2607_v17, %v2603_v3  ;;  %v7112_v48 = vand.u32 8388607, %v2652_v5 }
 0x42a   :  { %v2366_v47 = vsub.s32 32, %v2365_v46  ;;  %v2370_v12 = vsub.s32 4294967266, %v2365_v46  ;;  %4987 = vmatprep.subr.mxu1 %v3833_v53  ;;  %vm2286_vm4 = vcmp.eq.s32.totalorder %v7089_v27, 0  ;;  %v2367_v6 = vshll.u32 %v7046_v52, %v2365_v46 }
 0x42b   :  { %4988 = vmatpush3.msra.mxu1 %v3833_v53  ;;  %v2668_v10 = vshrl.u32 %v8348_v23, %v2667_v41  ;;  %vm2285_vm5 = vcmp.lt.s32.totalorder %v7089_v27, 2  ;;  %v2609_v39 = vadd.s32 536870912, %v2608_v50  ;;  %v2670_v29 = vshrl.u32 %v8370_v34, %v2667_v41 }
 0x42c   :  { %v2368_v9 = vshrl.u32 %v2350_v40, %v2366_v47  ;;  %v2371_v24 = vadd.s32 127, %v2370_v12  ;;  %v2676_v56 = vshrl.u32 %v8362_v32, %v2667_v41  ;;  %v2679_v7 = vshrl.u32 %v8351_v35, %v2667_v41 }
 0x42d   :  { %vm2282_vm6 = vweird.f32 %v6688_v22  ;;  %v2673_v54 = vshrl.u32 %v8371_v20, %v2667_v41  ;;  %v2678_v52 = vshll.u32 %v8362_v32, %v7082_v61  ;;  %v7125_v0 = vshrl.u32 %v2609_v39, 30 }
 0x42e   :  { %v2369_v11 = vor.u32 %v2368_v9, %v2367_v6  ;;  %v2372_v58 = vshll.u32 %v2371_v24, 23  ;;  %v2669_v49 = vshll.u32 %v8348_v23, %v7082_v61  ;;  %v2675_v63 = vshll.u32 %v8371_v20, %v7082_v61 }
 0x42f   :  { %v2682_v31 = vshrl.u32 %v8386_v62, %v2667_v41  ;;  %vm7134_vm7 = vcmp.le.f32.partialorder %v2294_v18, 0.7853982  ;;  %v2660_v16 = vor.u32 8388608, %v7112_v48  ;;  %v2672_v45 = vshll.u32 %v8370_v34, %v7082_v61 }
 0x430   :  { %v2373_v1 = vor.u32 4788187, %v2372_v58  ;;  %v2680_v57 = vor.u32 %v2679_v7, %v2678_v52  ;;  %v2611_v4 = vshll.u32 %v7125_v0, 30  ;;  %v2671_v19 = vor.u32 %v2670_v29, %v2669_v49 }
 0x431   :  { %v5209_v51 = vpop.eup %5208  ;;  %v2677_v43 = vor.u32 %v2676_v56, %v2675_v63  ;;  %v2681_v60 = vshll.u32 %v8351_v35, %v7082_v61  ;;  %v2376_v41 = vcvt.s32.f32 %v2369_v11  ;;  %v2674_v46 = vor.u32 %v2673_v54, %v2672_v45 }
 0x432   :  { %v5211_v53 = vpop.eup %5210  ;;  %v2290_v18 = vxor.u32 2147483648, %v5209_v51  ;;  %v2374_v30 = vand.u32 2147483647, %v2373_v1  ;;  %v2612_v40 = vsub.s32 %v2608_v50, %v2611_v4  ;;  %vm2687_vm8 = vcmp.lt.s32.totalorder %v7095_v42, 4 }
 0x433   :  { %v2287_v3 = vxor.u32 2147483648, %v5211_v53  ;;  %v2683_v47 = vor.u32 %v2682_v31, %v2681_v60  ;;  %vm2684_vm9 = vcmp.lt.s32.totalorder %v7095_v42, 1  ;;  %v2693_v48 = vsel %vm2687_vm8, %v2680_v57, 920167782 }
 0x434   :  { %v2291_v12 = vsel %vm2289_vm3, %v2290_v18, %v5211_v53  ;;  %v2377_v17 = vmul.f32 %v2376_v41, %v2374_v30  ;;  %v2614_v6 = vsub.s32 0, %v2612_v40  ;;  %vm2686_vm10 = vcmp.lt.s32.totalorder %v7095_v42, 3 }
 0x435   :  { %v2288_v61 = vsel %vm2286_vm4, %v5209_v51, %v2287_v3  ;;  %v2689_v50 = vsel %vm2687_vm8, %v2677_v43, 2102212464  ;;  %v2692_v39 = vsel %vm2684_vm9, %v2671_v19, %v2674_v46  ;;  %v2694_v29 = vsel %vm2686_vm10, %v2677_v43, %v2693_v48 }
 0x436   :  { %v2292_v9 = vsel %vm2285_vm5, %v2288_v61, %v2291_v12  ;;  %v2378_v24 = vxor.u32 2147483648, %v2377_v17  ;;  %v4666_v7 = vmin.u32 %v2614_v6, %v2612_v40  ;;  %v2696_v11 = vsel %vm2684_vm9, %v2674_v46, %v2677_v43 }
 0x437   :  { %v2293_v56 = vsel %vm2282_vm6, nan, %v2292_v9  ;;  %v2697_v58 = vsel %vm2687_vm8, %v2683_v47, 1326507024  ;;  %vm2685_vm11 = vcmp.lt.s32.totalorder %v7095_v42, 2  ;;  %v2700_v31 = vshll.u32 %v2660_v16, 8 }
 0x438   :  { %v7168_v27 = vadd.f32 %v2293_v56, %v6101_v14  ;;  %v2379_v54 = vsel %vm2296_vm0, %v2378_v24, %v2377_v17  ;;  %v2698_v52 = vsel %vm2686_vm10, %v2680_v57, %v2697_v58  ;;  %v2616_v49 = vclz %v4666_v7 }
 0x439   :  { %v2382_v22 = vsel %vm7134_vm7, %v6668_v38, %v2379_v54  ;;  %v2695_v63 = vsel %vm2685_vm11, %v2692_v39, %v2694_v29  ;;  %v2688_v14 = vsel %vm2684_vm9, %v2668_v10, %v2671_v19  ;;  %v2690_v1 = vsel %vm2686_vm10, %v2674_v46, %v2689_v50 }
 0x43a   :  { %4970 = vmatprep.mubr.msk.f32.mxu0 %vm260_vm2, %v7168_v27  ;;  %5212 = vcosq.f32 %v2382_v22  ;;  %v2699_v45 = vsel %vm2685_vm11, %v2696_v11, %v2698_v52  ;;  %v4667_v57 = vadd.s32 4294967294, %v2616_v49  ;;  %v2383_v60 = vsel %vm7134_vm7, 0, %v7108_v55 }
 0x43b   :  { %5214 = vsinq.f32 %v2382_v22  ;;  %v7188_v51 = vmul.u32.u64.low %v2700_v31, %v2699_v45  ;;  %v7189_v4 = vmul.u32.u64.high %v2700_v31, %v2699_v45, %v7188_v51  ;;  %v2691_v19 = vsel %vm2685_vm11, %v2688_v14, %v2690_v1 }
 0x43c   :  { %v7191_v43 = vmul.u32.u64.low %v2700_v31, %v2695_v63  ;;  %v7192_v16 = vmul.u32.u64.high %v2700_v31, %v2695_v63, %v7191_v43  ;;  %vm4668_vm12 = vcmp.lt.s32.totalorder %v4667_v57, 0  ;;  %v2604_v53 = vadd.s32 %v7077_v44, %v7085_v28 }
 0x43d   :  { %v2619_v10 = vsel %vm4668_vm12, 0, %v4667_v57  ;;  %v2387_v41 = vadd.s32 3, %v2383_v60  ;;  %v2707_v37 = vmul.u32 %v2700_v31, %v2691_v19  ;;  %vm2386_vm1 = vweird.f32 %v6668_v38 }
 0x43e   :  { %v2620_v18 = vsub.s32 32, %v2619_v10  ;;  %v2624_v30 = vsub.s32 4294967266, %v2619_v10  ;;  %vm2709_vm13 = vc.u32 %v7189_v4, %v7191_v43  ;;  %v2710_v46 = vadd.s32 1, %v7192_v16 }
 0x43f   :  { %v2621_v3 = vshll.u32 %v2612_v40, %v2619_v10  ;;  %v2388_v61 = vand.u32 3, %v2387_v41  ;;  %vm2550_vm3 = vcmp.lt.s32.totalorder %v6760_v21, 0  ;;  %v2634_v49 = vsub.s32 4, %v7125_v0 }
 0x440   :  { %v2622_v47 = vshrl.u32 %v2604_v53, %v2620_v18  ;;  %v2625_v12 = vadd.s32 127, %v2624_v30  ;;  %v2711_v55 = vsel %vm2709_vm13, %v2710_v46, %v7192_v16  ;;  %vm2549_vm4 = vcmp.le.f32.partialorder %v2548_v13, 0.7853982 }
 0x441   :  { %v2712_v42 = vadd.s32 %v2711_v55, %v2707_v37  ;;  %vm2393_vm14 = vcmp.eq.s32.totalorder %v2388_v61, 2  ;;  %vm2390_vm15 = vcmp.eq.s32.totalorder %v2388_v61, 0  ;;  %vm2389_vm0 = vcmp.lt.s32.totalorder %v2388_v61, 2 }
 0x442   :  { %v2623_v17 = vor.u32 %v2622_v47, %v2621_v3  ;;  %v2626_v48 = vshll.u32 %v2625_v12, 23  ;;  %v2635_v38 = vsel %vm2550_vm3, %v2634_v49, %v7125_v0  ;;  %v2708_v19 = vadd.s32 %v7191_v43, %v7189_v4 }
 0x443   :  { %v2713_v50 = vadd.s32 536870912, %v2712_v42  ;;  %v2637_v16 = vsel %vm2549_vm4, 0, %v2635_v38  ;;  %vm2640_vm9 = vweird.f32 %v6760_v21  ;;  %vm2654_vm10 = vcmp.lt.s32.totalorder %v6771_v25, 0 }
 0x444   :  { %v2627_v6 = vor.u32 4788187, %v2626_v48  ;;  %v2630_v9 = vcvt.s32.f32 %v2623_v17  ;;  %v2641_v13 = vadd.s32 3, %v2637_v16  ;;  %vm2653_vm11 = vcmp.le.f32.partialorder %v2652_v5, 0.7853982 }
 0x445   :  { %v7204_v24 = vshrl.u32 %v2713_v50, 30 }
 0x446   :  { %v2628_v28 = vand.u32 2147483647, %v2627_v6  ;;  %v2642_v46 = vand.u32 3, %v2641_v13 }
 0x447   :  { %v5213_v44 = vpop.eup %5212  ;;  %v2715_v7 = vshll.u32 %v7204_v24, 30 }
 0x448   :  { %v5215_v39 = vpop.eup %5214  ;;  %v2394_v29 = vxor.u32 2147483648, %v5213_v44  ;;  %v2631_v40 = vmul.f32 %v2630_v9, %v2628_v28  ;;  %vm2647_vm6 = vcmp.eq.s32.totalorder %v2642_v46, 2  ;;  %vm2644_vm7 = vcmp.eq.s32.totalorder %v2642_v46, 0 }
 0x449   :  { %v2391_v56 = vxor.u32 2147483648, %v5215_v39  ;;  %v2716_v52 = vsub.s32 %v2712_v42, %v2715_v7  ;;  %vm2643_vm8 = vcmp.lt.s32.totalorder %v2642_v46, 2  ;;  %v2738_v9 = vsub.s32 4, %v7204_v24 }
 0x44a   :  { %v2395_v11 = vsel %vm2393_vm14, %v2394_v29, %v5215_v39  ;;  %v2632_v54 = vxor.u32 2147483648, %v2631_v40 }
 0x44b   :  { %v2392_v58 = vsel %vm2390_vm15, %v5213_v44, %v2391_v56  ;;  %v2718_v14 = vsub.s32 0, %v2716_v52  ;;  %v2739_v29 = vsel %vm2654_vm10, %v2738_v9, %v7204_v24  ;;  %vm2744_vm15 = vweird.f32 %v6771_v25 }
 0x44c   :  { %v2396_v22 = vsel %vm2389_vm0, %v2392_v58, %v2395_v11  ;;  %v2633_v31 = vsel %vm2550_vm3, %v2632_v54, %v2631_v40  ;;  %v4674_v54 = vld [vmem:[%s8324_s6 + $0x1] ss:$0 sm:$0xff] }
 0x44d   :  { %v2397_v63 = vsel %vm2386_vm1, nan, %v2396_v22  ;;  %v2636_v45 = vsel %vm2549_vm4, %v6760_v21, %v2633_v31  ;;  %v4670_v57 = vmin.u32 %v2718_v14, %v2716_v52 }
 0x44e   :  { %v7213_v1 = vadd.f32 %v2397_v63, %v6305_v36  ;;  %5216 = vcosq.f32 %v2636_v45 }
 0x44f   :  { %5218 = vsinq.f32 %v2636_v45  ;;  %v2720_v51 = vclz %v4670_v57 }
 0x450   :  { %8396 = vst [vmem:[#allocation7_spill] sm:$0xff] %v7213_v1  ;;  %4971 = vmatmul.mubr.msk.f32.vlgmr.msra.gmra.mxu0 %vm260_vm2, %v7213_v1 }
 0x451   :  { %v4671_v60 = vadd.s32 4294967294, %v2720_v51 }
 0x453   :  { %vm4672_vm5 = vcmp.lt.s32.totalorder %v4671_v60, 0 }
 0x454   :  { %v2723_v10 = vsel %vm4672_vm5, 0, %v4671_v60  ;;  %v4690_v60 = vld [vmem:[%s8324_s6 + $0x3] ss:$0 sm:$0xff] }
 0x455   :  { %v2724_v36 = vsub.s32 32, %v2723_v10  ;;  %v2728_v53 = vsub.s32 4294967266, %v2723_v10  ;;  %v2725_v18 = vshll.u32 %v2716_v52, %v2723_v10 }
 0x457   :  { %v2726_v30 = vshrl.u32 %v2708_v19, %v2724_v36  ;;  %v2729_v41 = vadd.s32 127, %v2728_v53 }
 0x459   :  { %v2727_v3 = vor.u32 %v2726_v30, %v2725_v18  ;;  %v2730_v47 = vshll.u32 %v2729_v41, 23 }
 0x45b   :  { %v5217_v12 = vpop.eup %5216  ;;  %v2731_v55 = vor.u32 4788187, %v2730_v47  ;;  %v2734_v61 = vcvt.s32.f32 %v2727_v3 }
 0x45c   :  { %v5219_v37 = vpop.eup %5218  ;;  %v2648_v0 = vxor.u32 2147483648, %v5217_v12 }
 0x45d   :  { %v2645_v17 = vxor.u32 2147483648, %v5219_v37  ;;  %v2732_v42 = vand.u32 2147483647, %v2731_v55 }
 0x45e   :  { %v2649_v48 = vsel %vm2647_vm6, %v2648_v0, %v5219_v37 }
 0x45f   :  { %v2646_v4 = vsel %vm2644_vm7, %v5217_v12, %v2645_v17  ;;  %v2735_v6 = vmul.f32 %v2734_v61, %v2732_v42  ;;  %v4706_v12 = vld [vmem:[%s8324_s6 + $0x5] ss:$0 sm:$0xff] }
 0x460   :  { %v2650_v43 = vsel %vm2643_vm8, %v2646_v4, %v2649_v48 }
 0x461   :  { %v2651_v50 = vsel %vm2640_vm9, nan, %v2650_v43  ;;  %v2736_v28 = vxor.u32 2147483648, %v2735_v6 }
 0x462   :  { %v7222_v44 = vadd.f32 %v2651_v50, %v6275_v33  ;;  %v2741_v33 = vsel %vm2653_vm11, 0, %v2739_v29 }
 0x463   :  { %v2737_v39 = vsel %vm2654_vm10, %v2736_v28, %v2735_v6  ;;  %v2745_v56 = vadd.s32 3, %v2741_v33 }
 0x464   :  { %4989 = vmatprep.mubr.msk.f32.mxu1 %vm260_vm2, %v7222_v44  ;;  %v2740_v21 = vsel %vm2653_vm11, %v6771_v25, %v2737_v39 }
 0x465   :  { %5220 = vcosq.f32 %v2740_v21  ;;  %v2746_v40 = vand.u32 3, %v2745_v56 }
 0x466   :  { %5222 = vsinq.f32 %v2740_v21 }
 0x467   :  { %vm2751_vm12 = vcmp.eq.s32.totalorder %v2746_v40, 2  ;;  %vm2748_vm13 = vcmp.eq.s32.totalorder %v2746_v40, 0  ;;  %vm2747_vm14 = vcmp.lt.s32.totalorder %v2746_v40, 2  ;;  %v4722_v40 = vld [vmem:[%s8324_s6 + $0x7] ss:$0 sm:$0xff] }
 0x472   :  { %v5221_v7 = vpop.eup %5220 }
 0x473   :  { %v5223_v11 = vpop.eup %5222  ;;  %v2752_v58 = vxor.u32 2147483648, %v5221_v7 }
 0x474   :  { %v2749_v52 = vxor.u32 2147483648, %v5223_v11 }
 0x475   :  { %v2753_v5 = vsel %vm2751_vm12, %v2752_v58, %v5223_v11 }
 0x476   :  { %v2750_v49 = vsel %vm2748_vm13, %v5221_v7, %v2749_v52 }
 0x477   :  { %v2754_v24 = vsel %vm2747_vm14, %v2750_v49, %v2753_v5 }
 0x478   :  { %v2755_v14 = vsel %vm2744_vm15, nan, %v2754_v24 }
 0x479   :  { %v4934_v22 = vpop.f32.mrf.mxu0  ;;  %v7243_v38 = vadd.f32 %v2755_v14, %v6316_v26 }
 0x47a   :  { %v7235_v63 = vadd.f32 %v4934_v22, %v4674_v54 }
 0x47b   :  { %v2847_v31 = vpop.f32.mrf.mxu0  ;;  %8397 = vst [vmem:[#allocation8_spill] sm:$0xff] %v7243_v38  ;;  %4990 = vmatmul.mubr.msk.f32.vlgmr.msra.gmra.mxu1 %vm260_vm2, %v7243_v38 }
 0x47c   :  { %v7238_v45 = vadd.f32 %v4674_v54, %v2847_v31  ;;  %v2863_v57 = vsel %vm260_vm2, %v7235_v63, 0.0  ;;  %v2869_v36 = vmul.f32 %v7235_v63, %v7235_v63 }
 0x47d   :  { %2864 = vadd.xlane.f32.xlu0 %v2863_v57 }
 0x47e   :  { %v2860_v51 = vsel %vm260_vm2, %v7238_v45, 0.0  ;;  %v2868_v25 = vmul.f32 %v7238_v45, %v7238_v45  ;;  %v2873_v41 = vsel %vm260_vm2, %v2869_v36, 0.0 }
 0x480   :  { %v2870_v16 = vsel %vm260_vm2, %v2868_v25, 0.0  ;;  %v7310_v25 = vld [vmem:[%s8325_s7 + $0x1] ss:$0 sm:$0xff] }
 0x481   :  { %2861 = vadd.xlane.f32.xlu0 %v2860_v51 }
 0x485   :  { %2871 = vadd.xlane.f32.xlu0 %v2870_v16 }
 0x4dc   :  { %v4953_v26 = vpop.f32.mrf.mxu1 }
 0x4dd   :  { %v7255_v13 = vadd.f32 %v4953_v26, %v4690_v60 }
 0x4de   :  { %v3205_v53 = vpop.f32.mrf.mxu1 }
 0x4df   :  { %v3221_v10 = vsel %vm260_vm2, %v7255_v13, 0.0  ;;  %v3227_v19 = vmul.f32 %v7255_v13, %v7255_v13  ;;  %v7264_v30 = vadd.f32 %v4690_v60, %v3205_v53  ;;  %v7316_v60 = vld [vmem:[%s8326_s8 + $0x1] ss:$0 sm:$0xff] }
 0x4e0   :  { %3222 = vadd.xlane.f32.xlu1 %v3221_v10 }
 0x4e1   :  { %v3231_v18 = vsel %vm260_vm2, %v3227_v19, 0.0  ;;  %v3218_v46 = vsel %vm260_vm2, %v7264_v30, 0.0  ;;  %v3226_v3 = vmul.f32 %v7264_v30, %v7264_v30 }
 0x4e2   :  { %3232 = vadd.xlane.f32.xlu0 %v3231_v18 }
 0x4e3   :  { %v3228_v47 = vsel %vm260_vm2, %v3226_v3, 0.0 }
 0x4e4   :  { %2874 = vadd.xlane.f32.xlu1 %v2873_v41 }
 0x4e8   :  { %3219 = vadd.xlane.f32.xlu1 %v3218_v46 }
 0x4ec   :  { %3229 = vadd.xlane.f32.xlu1 %v3228_v47 }
 0x506   :  { %v2865_v50 = vpop.xlane.xlu0 %2864 }
 0x507   :  { %v7322_v18 = vmul.f32 0.015625, %v2865_v50 }
 0x509   :  { %v2879_v3 = vmul.f32 %v7322_v18, %v7322_v18 }
 0x50a   :  { %v2862_v28 = vpop.xlane.xlu0 %2861 }
 0x50b   :  { %v2866_v39 = vmul.f32 0.015625, %v2862_v28 }
 0x50d   :  { %v2878_v29 = vmul.f32 %v2866_v39, %v2866_v39  ;;  %v2882_v57 = vsub.f32 %v7238_v45, %v2866_v39 }
 0x50e   :  { %v2872_v9 = vpop.xlane.xlu0 %2871 }
 0x50f   :  { %v2876_v21 = vmul.f32 0.015625, %v2872_v9 }
 0x510   :  { %v4972_v37 = vpop.f32.mrf.mxu0 }
 0x511   :  { %v7275_v0 = vadd.f32 %v4972_v37, %v4706_v12  ;;  %v2880_v33 = vsub.f32 %v2876_v21, %v2878_v29 }
 0x512   :  { %v3563_v55 = vpop.f32.mrf.mxu0 }
 0x513   :  { %v7277_v17 = vadd.f32 %v4706_v12, %v3563_v55  ;;  %v3579_v48 = vsel %vm260_vm2, %v7275_v0, 0.0  ;;  %v3585_v61 = vmul.f32 %v7275_v0, %v7275_v0  ;;  %v2884_v56 = vadd.f32 1e-05, %v2880_v33 }
 0x514   :  { %3580 = vadd.xlane.f32.xlu1 %v3579_v48 }
 0x515   :  { %v3576_v42 = vsel %vm260_vm2, %v7277_v17, 0.0  ;;  %v3589_v4 = vsel %vm260_vm2, %v3585_v61, 0.0  ;;  %v3584_v43 = vmul.f32 %v7277_v17, %v7277_v17  ;;  %5224 = vrsqrt.f32 %v2884_v56 }
 0x516   :  { %3577 = vadd.xlane.f32.xlu0 %v3576_v42 }
 0x517   :  { %v3586_v6 = vsel %vm260_vm2, %v3584_v43, 0.0 }
 0x51a   :  { %3590 = vadd.xlane.f32.xlu0 %v3589_v4 }
 0x51e   :  { %3587 = vadd.xlane.f32.xlu0 %v3586_v6 }
 0x522   :  { %v5225_v14 = vpop.eup %5224 }
 0x523   :  { %v2888_v51 = vmul.f32 %v5225_v14, %v2882_v57 }
 0x525   :  { %v2896_v16 = vmul.f32 %v7310_v25, %v2888_v51 }
 0x527   :  { %v7319_v26 = vadd.f32 %v7316_v60, %v2896_v16 }
 0x529   :  { %v2909_v10 = vand.u32 2139095040, %v7319_v26  ;;  %v2906_v48 = vand.u32 2147483647, %v7319_v26 }
 0x52b   :  { %v2910_v19 = vshrl.u32 %v2909_v10, 23  ;;  %v2913_v6 = vand.u32 8388607, %v2906_v48 }
 0x52d   :  { %v4681_v45 = vadd.s32 4294967169, %v2910_v19  ;;  %v2914_v29 = vor.u32 8388608, %v2913_v6 }
 0x52f   :  { %v2916_v36 = vadd.s32 1, %v4681_v45 }
 0x531   :  { %vm2917_vm0 = vcmp.gt.s32.totalorder %v2916_v36, 0 }
 0x532   :  { %v2918_v41 = vsel %vm2917_vm0, %v2916_v36, 0 }
 0x533   :  { %v2920_v12 = vand.u32 31, %v2918_v41  ;;  %v2919_v9 = vshrl.u32 %v2918_v41, 5 }
 0x535   :  { %v2921_v43 = vsub.s32 32, %v2920_v12  ;;  %v2923_v33 = vshll.u32 %v8348_v23, %v2920_v12  ;;  %v2935_v14 = vshll.u32 %v8351_v35, %v2920_v12  ;;  %vm2938_vm1 = vcmp.lt.s32.totalorder %v2919_v9, 1 }
 0x536   :  { %vm2940_vm3 = vcmp.lt.s32.totalorder %v2919_v9, 3  ;;  %vm2941_vm4 = vcmp.lt.s32.totalorder %v2919_v9, 4  ;;  %vm2939_vm5 = vcmp.lt.s32.totalorder %v2919_v9, 2 }
 0x537   :  { %v2924_v56 = vshrl.u32 %v8370_v34, %v2921_v43  ;;  %v2936_v10 = vshrl.u32 %v8386_v62, %v2921_v43  ;;  %v2922_v45 = vshrl.u32 %v8348_v23, %v2921_v43 }
 0x53b   :  { %v4991_v7 = vpop.f32.mrf.mxu1 }
 0x53c   :  { %v7292_v11 = vadd.f32 %v4991_v7, %v4722_v40 }
 0x53d   :  { %v3921_v58 = vpop.f32.mrf.mxu1 }
 0x53e   :  { %v7294_v54 = vadd.f32 %v4722_v40, %v3921_v58  ;;  %v3937_v52 = vsel %vm260_vm2, %v7292_v11, 0.0  ;;  %v3943_v24 = vmul.f32 %v7292_v11, %v7292_v11  ;;  %v2926_v40 = vshll.u32 %v8370_v34, %v2920_v12 }
 0x53f   :  { %3938 = vadd.xlane.f32.xlu1 %v3937_v52  ;;  %v2927_v52 = vshrl.u32 %v8371_v20, %v2921_v43 }
 0x540   :  { %v3942_v5 = vmul.f32 %v7294_v54, %v7294_v54  ;;  %v3934_v22 = vsel %vm260_vm2, %v7294_v54, 0.0  ;;  %v3947_v31 = vsel %vm260_vm2, %v3943_v24, 0.0  ;;  %v2932_v24 = vshll.u32 %v8362_v32, %v2920_v12 }
 0x541   :  { %v2928_v51 = vor.u32 %v2927_v52, %v2926_v40 }
 0x542   :  { %v3944_v49 = vsel %vm260_vm2, %v3942_v5, 0.0  ;;  %v2929_v5 = vshll.u32 %v8371_v20, %v2920_v12 }
 0x543   :  { %3935 = vadd.xlane.f32.xlu1 %v3934_v22  ;;  %3945 = vadd.xlane.f32.xlu0 %v3944_v49  ;;  %v2930_v22 = vshrl.u32 %v8362_v32, %v2921_v43  ;;  %v2925_v49 = vor.u32 %v2924_v56, %v2923_v33 }
 0x545   :  { %v2931_v16 = vor.u32 %v2930_v22, %v2929_v5 }
 0x547   :  { %3948 = vadd.xlane.f32.xlu1 %v3947_v31  ;;  %v2933_v31 = vshrl.u32 %v8351_v35, %v2921_v43  ;;  %v2943_v41 = vsel %vm2941_vm4, %v2931_v16, 2102212464  ;;  %v2883_v43 = vsub.f32 %v7235_v63, %v7322_v18 }
 0x548   :  { %v2944_v6 = vsel %vm2940_vm3, %v2928_v51, %v2943_v41 }
 0x549   :  { %v2934_v36 = vor.u32 %v2933_v31, %v2932_v24 }
 0x569   :  { %v3223_v53 = vpop.xlane.xlu1 %3222 }
 0x56a   :  { %v7327_v42 = vmul.f32 0.015625, %v3223_v53  ;;  %v2937_v53 = vor.u32 %v2936_v10, %v2935_v14 }
 0x56b   :  { %v3233_v7 = vpop.xlane.xlu0 %3232 }
 0x56c   :  { %v3237_v28 = vmul.f32 %v7327_v42, %v7327_v42  ;;  %v3235_v19 = vmul.f32 0.015625, %v3233_v7 }
 0x56d   :  { %v2875_v46 = vpop.xlane.xlu1 %2874 }
 0x56e   :  { %v2877_v47 = vmul.f32 0.015625, %v2875_v46  ;;  %v2946_v46 = vsel %vm2938_vm1, %v2925_v49, %v2928_v51  ;;  %v3239_v7 = vsub.f32 %v3235_v19, %v3237_v28 }
 0x570   :  { %v2881_v37 = vsub.f32 %v2877_v47, %v2879_v3  ;;  %v2947_v3 = vsel %vm2941_vm4, %v2934_v36, 920167782  ;;  %v2950_v47 = vsel %vm2938_vm1, %v2928_v51, %v2931_v16 }
 0x571   :  { %v3220_v55 = vpop.xlane.xlu1 %3219  ;;  %v2948_v12 = vsel %vm2940_vm3, %v2931_v16, %v2947_v3 }
 0x572   :  { %v2885_v61 = vadd.f32 1e-05, %v2881_v37  ;;  %v7329_v4 = vmul.f32 0.015625, %v3220_v55  ;;  %v2951_v37 = vsel %vm2941_vm4, %v2937_v53, 1326507024  ;;  %v2954_v55 = vshll.u32 %v2914_v29, 8 }
 0x574   :  { %5226 = vrsqrt.f32 %v2885_v61  ;;  %v3236_v39 = vmul.f32 %v7329_v4, %v7329_v4  ;;  %v2942_v61 = vsel %vm2938_vm1, %v2922_v45, %v2925_v49  ;;  %v3243_v49 = vadd.f32 1e-05, %v3239_v7 }
 0x575   :  { %v3230_v50 = vpop.xlane.xlu1 %3229  ;;  %v2945_v5 = vsel %vm2939_vm5, %v2942_v61, %v2944_v6  ;;  %v3240_v28 = vsub.f32 %v7264_v30, %v7329_v4  ;;  %v4696_v30 = vld [vmem:[%s8326_s8 + $0x3] ss:$0 sm:$0xff]  ;;  %v3241_v61 = vsub.f32 %v7255_v13, %v7327_v42 }
 0x576   :  { %v3234_v21 = vmul.f32 0.015625, %v3230_v50  ;;  %v2949_v50 = vsel %vm2939_vm5, %v2946_v46, %v2948_v12  ;;  %v2961_v24 = vmul.u32 %v2954_v55, %v2945_v5 }
 0x577   :  { %v7350_v33 = vmul.u32.u64.low %v2954_v55, %v2949_v50  ;;  %v7351_v56 = vmul.u32.u64.high %v2954_v55, %v2949_v50, %v7350_v33 }
 0x578   :  { %v3238_v58 = vsub.f32 %v3234_v21, %v3236_v39  ;;  %v2952_v39 = vsel %vm2940_vm3, %v2934_v36, %v2951_v37 }
 0x579   :  { %v2953_v21 = vsel %vm2939_vm5, %v2950_v47, %v2952_v39  ;;  %v2964_v29 = vadd.s32 1, %v7351_v56  ;;  %vm2908_vm5 = vcmp.lt.s32.totalorder %v7319_v26, 0 }
 0x57a   :  { %v3242_v57 = vadd.f32 1e-05, %v3238_v58  ;;  %v7354_v58 = vmul.u32.u64.low %v2954_v55, %v2953_v21  ;;  %v7355_v52 = vmul.u32.u64.high %v2954_v55, %v2953_v21, %v7354_v58 }
 0x57c   :  { %5228 = vrsqrt.f32 %v3242_v57  ;;  %vm2963_vm6 = vc.u32 %v7355_v52, %v7350_v33 }
 0x57d   :  { %v2965_v63 = vsel %vm2963_vm6, %v2964_v29, %v7351_v56  ;;  %5230 = vrsqrt.f32 %v3243_v49 }
 0x57e   :  { %v2966_v18 = vadd.s32 %v2965_v63, %v2961_v24 }
 0x580   :  { %v2967_v57 = vadd.s32 536870912, %v2966_v18 }
 0x581   :  { %v5227_v40 = vpop.eup %5226 }
 0x582   :  { %v2889_v9 = vmul.f32 %v5227_v40, %v2883_v43  ;;  %v7370_v16 = vshrl.u32 %v2967_v57, 30 }
 0x584   :  { %v2897_v22 = vmul.f32 %v7310_v25, %v2889_v9  ;;  %v4695_v25 = vld [vmem:[%s8325_s7 + $0x3] ss:$0 sm:$0xff]  ;;  %v2969_v4 = vshll.u32 %v7370_v16, 30 }
 0x586   :  { %v7365_v14 = vadd.f32 %v7316_v60, %v2897_v22  ;;  %v7379_v45 = vsub.s32 %v2966_v18, %v2969_v4 }
 0x588   :  { %v3013_v19 = vand.u32 2139095040, %v7365_v14  ;;  %v2972_v46 = vsub.s32 0, %v7379_v45 }
 0x589   :  { %v5229_v31 = vpop.eup %5228 }
 0x58a   :  { %v3246_v51 = vmul.f32 %v5229_v31, %v3240_v28  ;;  %v3014_v53 = vshrl.u32 %v3013_v19, 23  ;;  %v5231_v12 = vpop.eup %5230  ;;  %v4682_v55 = vmin.u32 %v2972_v46, %v7379_v45 }
 0x58b   :  { %v3247_v50 = vmul.f32 %v5231_v12, %v3241_v61 }
 0x58c   :  { %v3254_v10 = vmul.f32 %v4695_v25, %v3246_v51  ;;  %v4685_v47 = vadd.s32 4294967169, %v3014_v53  ;;  %v2974_v21 = vclz %v4682_v55 }
 0x58d   :  { %v3255_v7 = vmul.f32 %v4695_v25, %v3247_v50 }
 0x58e   :  { %v7377_v60 = vadd.f32 %v4696_v30, %v3254_v10  ;;  %v3020_v6 = vadd.s32 1, %v4685_v47  ;;  %v4683_v58 = vadd.s32 4294967294, %v2974_v21 }
 0x58f   :  { %v7397_v51 = vadd.f32 %v4696_v30, %v3255_v7 }
 0x590   :  { %v3267_v36 = vand.u32 2139095040, %v7377_v60  ;;  %v8347_v56 = vand.u32 2147483647, %v7377_v60  ;;  %vm3021_vm8 = vcmp.gt.s32.totalorder %v3020_v6, 0  ;;  %vm4684_vm9 = vcmp.lt.s32.totalorder %v4683_v58, 0 }
 0x591   :  { %v3022_v63 = vsel %vm3021_vm8, %v3020_v6, 0  ;;  %v7411_v21 = vsel %vm4684_vm9, 0, %v4683_v58  ;;  %vm7541_vm8 = vcmp.le.f32.partialorder %v2906_v48, 0.7853982 }
 0x592   :  { %v3268_v41 = vshrl.u32 %v3267_v36, 23  ;;  %v3271_v9 = vand.u32 8388607, %v8347_v56 }
 0x594   :  { %v4697_v3 = vadd.s32 4294967169, %v3268_v41  ;;  %v7401_v41 = vand.u32 31, %v3022_v63  ;;  %v3272_v47 = vor.u32 8388608, %v3271_v9 }
 0x596   :  { %v3274_v37 = vadd.s32 1, %v4697_v3  ;;  %v7425_v58 = vsub.s32 32, %v7401_v41 }
 0x598   :  { %vm3275_vm7 = vcmp.gt.s32.totalorder %v3274_v37, 0 }
 0x599   :  { %v3276_v39 = vsel %vm3275_vm7, %v3274_v37, 0 }
 0x59a   :  { %v3278_v43 = vand.u32 31, %v3276_v39  ;;  %v3277_v18 = vshrl.u32 %v3276_v39, 5 }
 0x59c   :  { %v3279_v40 = vsub.s32 32, %v3278_v43  ;;  %v3281_v42 = vshll.u32 %v8348_v23, %v3278_v43  ;;  %v3284_v22 = vshll.u32 %v8370_v34, %v3278_v43  ;;  %v3287_v31 = vshll.u32 %v8371_v20, %v3278_v43 }
 0x59d   :  { %v3581_v28 = vpop.xlane.xlu1 %3580  ;;  %v3290_v57 = vshll.u32 %v8362_v32, %v3278_v43  ;;  %v3293_v36 = vshll.u32 %v8351_v35, %v3278_v43  ;;  %vm3296_vm10 = vcmp.lt.s32.totalorder %v3277_v18, 1  ;;  %vm3299_vm11 = vcmp.lt.s32.totalorder %v3277_v18, 4 }
 0x59e   :  { %v3282_v5 = vshrl.u32 %v8370_v34, %v3279_v40  ;;  %v3285_v29 = vshrl.u32 %v8371_v20, %v3279_v40  ;;  %v3288_v49 = vshrl.u32 %v8362_v32, %v3279_v40  ;;  %v3291_v24 = vshrl.u32 %v8351_v35, %v3279_v40 }
 0x59f   :  { %v3578_v13 = vpop.xlane.xlu0 %3577  ;;  %v3294_v53 = vshrl.u32 %v8386_v62, %v3279_v40  ;;  %v7403_v46 = vmul.f32 0.015625, %v3581_v28  ;;  %v3280_v30 = vshrl.u32 %v8348_v23, %v3279_v40  ;;  %vm3298_vm12 = vcmp.lt.s32.totalorder %v3277_v18, 3 }
 0x5a0   :  { %v3283_v25 = vor.u32 %v3282_v5, %v3281_v42  ;;  %v3286_v10 = vor.u32 %v3285_v29, %v3284_v22  ;;  %v3289_v19 = vor.u32 %v3288_v49, %v3287_v31  ;;  %v3292_v4 = vor.u32 %v3291_v24, %v3290_v57 }
 0x5a1   :  { %v7405_v12 = vmul.f32 0.015625, %v3578_v13  ;;  %v3295_v37 = vor.u32 %v3294_v53, %v3293_v36  ;;  %vm3297_vm13 = vcmp.lt.s32.totalorder %v3277_v18, 2  ;;  %v3312_v5 = vshll.u32 %v3272_v47, 8 }
 0x5a2   :  { %v3304_v55 = vsel %vm3296_vm10, %v3283_v25, %v3286_v10  ;;  %v3305_v61 = vsel %vm3299_vm11, %v3292_v4, 920167782  ;;  %v3301_v6 = vsel %vm3299_vm11, %v3289_v19, 2102212464  ;;  %v3308_v39 = vsel %vm3296_vm10, %v3286_v10, %v3289_v19 }
 0x5a3   :  { %v3591_v3 = vpop.xlane.xlu0 %3590  ;;  %v3306_v50 = vsel %vm3298_vm12, %v3289_v19, %v3305_v61  ;;  %v3309_v9 = vsel %vm3299_vm11, %v3295_v37, 1326507024  ;;  %v3594_v40 = vmul.f32 %v7405_v12, %v7405_v12  ;;  %v3300_v13 = vsel %vm3296_vm10, %v3280_v30, %v3283_v25 }
 0x5a4   :  { %v3307_v7 = vsel %vm3297_vm13, %v3304_v55, %v3306_v50  ;;  %v3310_v42 = vsel %vm3298_vm12, %v3292_v4, %v3309_v9  ;;  %v3302_v22 = vsel %vm3298_vm12, %v3286_v10, %v3301_v6  ;;  %v3595_v31 = vmul.f32 %v7403_v46, %v7403_v46 }
 0x5a5   :  { %v3311_v49 = vsel %vm3297_vm13, %v3308_v39, %v3310_v42  ;;  %v7420_v24 = vmul.u32.u64.low %v3312_v5, %v3307_v7  ;;  %v7421_v28 = vmul.u32.u64.high %v3312_v5, %v3307_v7, %v7420_v24  ;;  %v3593_v57 = vmul.f32 0.015625, %v3591_v3 }
 0x5a6   :  { %v2982_v25 = vsub.s32 4294967266, %v7411_v21  ;;  %v7430_v36 = vmul.u32.u64.low %v3312_v5, %v3311_v49  ;;  %v7431_v4 = vmul.u32.u64.high %v3312_v5, %v3311_v49, %v7430_v36  ;;  %v3303_v53 = vsel %vm3297_vm13, %v3300_v13, %v3302_v22 }
 0x5a7   :  { %v3588_v43 = vpop.xlane.xlu0 %3587  ;;  %v3371_v47 = vand.u32 2139095040, %v7397_v51  ;;  %v2962_v37 = vadd.s32 %v7350_v33, %v7355_v52  ;;  %v3322_v30 = vadd.s32 1, %v7421_v28  ;;  %v8345_v55 = vand.u32 2147483647, %v7365_v14 }
 0x5a8   :  { %v3592_v29 = vmul.f32 0.015625, %v3588_v43  ;;  %v7439_v61 = vshrl.u32 %v3022_v63, 5  ;;  %v3597_v3 = vsub.f32 %v3593_v57, %v3595_v31  ;;  %v3037_v6 = vshrl.u32 %v8351_v35, %v7425_v58 }
 0x5a9   :  { %v2983_v50 = vadd.s32 127, %v2982_v25  ;;  %v3319_v39 = vmul.u32 %v3312_v5, %v3303_v53  ;;  %vm3321_vm14 = vc.u32 %v7431_v4, %v7420_v24  ;;  %v3040_v18 = vshrl.u32 %v8386_v62, %v7425_v58 }
 0x5aa   :  { %v3596_v19 = vsub.f32 %v3592_v29, %v3594_v40  ;;  %v3323_v33 = vsel %vm3321_vm14, %v3322_v30, %v7421_v28  ;;  %v3028_v52 = vshrl.u32 %v8370_v34, %v7425_v58  ;;  %v3031_v63 = vshrl.u32 %v8371_v20, %v7425_v58 }
 0x5ab   :  { %v3036_v43 = vshll.u32 %v8362_v32, %v7401_v41  ;;  %v2978_v7 = vsub.s32 32, %v7411_v21  ;;  %v3324_v9 = vadd.s32 %v3323_v33, %v3319_v39  ;;  %v3034_v5 = vshrl.u32 %v8362_v32, %v7425_v58 }
 0x5ac   :  { %v3600_v10 = vadd.f32 1e-05, %v3596_v19  ;;  %v3039_v40 = vshll.u32 %v8351_v35, %v7401_v41  ;;  %v3601_v29 = vadd.f32 1e-05, %v3597_v3  ;;  %v3027_v13 = vshll.u32 %v8348_v23, %v7401_v41 }
 0x5ad   :  { %v3030_v42 = vshll.u32 %v8370_v34, %v7401_v41  ;;  %v3038_v22 = vor.u32 %v3037_v6, %v3036_v43  ;;  %v2984_v49 = vshll.u32 %v2983_v50, 23  ;;  %v3325_v28 = vadd.s32 536870912, %v3324_v9 }
 0x5ae   :  { %5232 = vrsqrt.f32 %v3600_v10  ;;  %v3033_v31 = vshll.u32 %v8371_v20, %v7401_v41  ;;  %v3041_v57 = vor.u32 %v3040_v18, %v3039_v40  ;;  %v3017_v19 = vand.u32 8388607, %v8345_v55 }
 0x5af   :  { %v3029_v25 = vor.u32 %v3028_v52, %v3027_v13  ;;  %v3032_v36 = vor.u32 %v3031_v63, %v3030_v42  ;;  %v2980_v10 = vshrl.u32 %v2962_v37, %v2978_v7  ;;  %v7467_v53 = vshrl.u32 %v3325_v28, 30 }
 0x5b0   :  { %v3035_v30 = vor.u32 %v3034_v5, %v3033_v31  ;;  %vm3045_vm15 = vcmp.lt.s32.totalorder %v7439_v61, 4  ;;  %v3372_v3 = vshrl.u32 %v3371_v47, 23  ;;  %5234 = vrsqrt.f32 %v3601_v29 }
 0x5b1   :  { %v3051_v6 = vsel %vm3045_vm15, %v3038_v22, 920167782  ;;  %v2979_v41 = vshll.u32 %v7379_v45, %v7411_v21  ;;  %v2985_v50 = vor.u32 4788187, %v2984_v49  ;;  %v3327_v39 = vshll.u32 %v7467_v53, 30 }
 0x5b2   :  { %v3055_v18 = vsel %vm3045_vm15, %v3041_v57, 1326507024  ;;  %v3018_v37 = vor.u32 8388608, %v3017_v19  ;;  %vm3042_vm0 = vcmp.lt.s32.totalorder %v7439_v61, 1  ;;  %vm3044_vm1 = vcmp.lt.s32.totalorder %v7439_v61, 3 }
 0x5b3   :  { %v2981_v33 = vor.u32 %v2980_v10, %v2979_v41  ;;  %v7479_v47 = vsub.s32 %v3324_v9, %v3327_v39  ;;  %v3050_v52 = vsel %vm3042_vm0, %v3029_v25, %v3032_v36  ;;  %v3052_v45 = vsel %vm3044_vm1, %v3035_v30, %v3051_v6  ;;  %v4712_v57 = vld [vmem:[%s8326_s8 + $0x5] ss:$0 sm:$0xff] }
 0x5b4   :  { %v4701_v21 = vadd.s32 4294967169, %v3372_v3  ;;  %v3598_v63 = vsub.f32 %v7277_v17, %v7405_v12  ;;  %v3054_v43 = vsel %vm3042_vm0, %v3032_v36, %v3035_v30  ;;  %v3056_v7 = vsel %vm3044_vm1, %v3038_v22, %v3055_v18  ;;  %v4711_v17 = vld [vmem:[%s8325_s7 + $0x5] ss:$0 sm:$0xff] }
 0x5b5   :  { %v2986_v40 = vand.u32 2147483647, %v2985_v50  ;;  %v3330_v9 = vsub.s32 0, %v7479_v47  ;;  %vm3043_vm3 = vcmp.lt.s32.totalorder %v7439_v61, 2  ;;  %v2988_v12 = vcvt.s32.f32 %v2981_v33 }
 0x5b6   :  { %v3053_v13 = vsel %vm3043_vm3, %v3050_v52, %v3052_v45  ;;  %v3057_v22 = vsel %vm3043_vm3, %v3054_v43, %v3056_v7  ;;  %v3058_v49 = vshll.u32 %v3018_v37, 8  ;;  %v3378_v28 = vadd.s32 1, %v4701_v21 }
 0x5b7   :  { %v4698_v42 = vmin.u32 %v3330_v9, %v7479_v47  ;;  %v2989_v19 = vmul.f32 %v2988_v12, %v2986_v40  ;;  %v2992_v45 = vsub.s32 4, %v7370_v16  ;;  %v3047_v21 = vsel %vm3045_vm15, %v3035_v30, 2102212464 }
 0x5b8   :  { %v7504_v3 = vmul.u32.u64.low %v3058_v49, %v3053_v13  ;;  %v7505_v6 = vmul.u32.u64.high %v3058_v49, %v3053_v13, %v7504_v3  ;;  %v7510_v50 = vmul.u32.u64.low %v3058_v49, %v3057_v22  ;;  %v7511_v39 = vmul.u32.u64.high %v3058_v49, %v3057_v22, %v7510_v50 }
 0x5b9   :  { %v3332_v10 = vclz %v4698_v42  ;;  %vm3379_vm4 = vcmp.gt.s32.totalorder %v3378_v28, 0  ;;  %v2990_v52 = vxor.u32 2147483648, %v2989_v19  ;;  %v3026_v7 = vshrl.u32 %v8348_v23, %v7425_v58 }
 0x5ba   :  { %v8344_v40 = vand.u32 2147483647, %v7397_v51  ;;  %v3048_v30 = vsel %vm3044_vm1, %v3032_v36, %v3047_v21  ;;  %v3068_v12 = vadd.s32 1, %v7505_v6  ;;  %vm3067_vm7 = vc.u32 %v7511_v39, %v7504_v3 }
 0x5bb   :  { %v5233_v5 = vpop.eup %5232  ;;  %v4699_v18 = vadd.s32 4294967294, %v3332_v10  ;;  %v3046_v13 = vsel %vm3042_vm0, %v3026_v7, %v3029_v25  ;;  %vm3266_vm15 = vcmp.lt.s32.totalorder %v7377_v60, 0 }
 0x5bc   :  { %v3604_v29 = vmul.f32 %v5233_v5, %v3598_v63  ;;  %v3599_v63 = vsub.f32 %v7275_v0, %v7403_v46  ;;  %v7521_v5 = vsel %vm3379_vm4, %v3378_v28, 0  ;;  %v2991_v0 = vsel %vm2908_vm5, %v2990_v52, %v2989_v19 }
 0x5bd   :  { %v5235_v33 = vpop.eup %5234  ;;  %vm4700_vm6 = vcmp.lt.s32.totalorder %v4699_v18, 0  ;;  %v2993_v46 = vsel %vm2908_vm5, %v2992_v45, %v7370_v16  ;;  %v7537_v28 = vand.u32 31, %v7521_v5  ;;  %v3049_v16 = vsel %vm3043_vm3, %v3046_v13, %v3048_v30 }
 0x5be   :  { %v3612_v31 = vmul.f32 %v4711_v17, %v3604_v29  ;;  %v3605_v9 = vmul.f32 %v5235_v33, %v3599_v63  ;;  %v7532_v22 = vsel %vm4700_vm6, 0, %v4699_v18  ;;  %v7549_v36 = vand.u32 8388607, %v8344_v40 }
 0x5bf   :  { %v2994_v10 = vsel %vm7541_vm8, %v7319_v26, %v2991_v0  ;;  %v2995_v48 = vsel %vm7541_vm8, 0, %v2993_v46  ;;  %v3340_v18 = vsub.s32 4294967266, %v7532_v22  ;;  %v3065_v52 = vmul.u32 %v3058_v49, %v3049_v16 }
 0x5c0   :  { %v7508_v41 = vadd.f32 %v4712_v57, %v3612_v31  ;;  %v3613_v31 = vmul.f32 %v4711_v17, %v3605_v9  ;;  %v7561_v17 = vsub.s32 32, %v7537_v28  ;;  %5236 = vcosq.f32 %v2994_v10 }
 0x5c1   :  { %v2999_v45 = vadd.s32 3, %v2995_v48  ;;  %v3376_v21 = vor.u32 8388608, %v7549_v36  ;;  %5238 = vsinq.f32 %v2994_v10  ;;  %v7570_v30 = vadd.s32 127, %v3340_v18 }
 0x5c2   :  { %v3625_v37 = vand.u32 2139095040, %v7508_v41  ;;  %v8346_v58 = vand.u32 2147483647, %v7508_v41  ;;  %v7564_v63 = vadd.f32 %v4712_v57, %v3613_v31  ;;  %v3320_v48 = vadd.s32 %v7420_v24, %v7431_v4 }
 0x5c4   :  { %v3626_v43 = vshrl.u32 %v3625_v37, 23  ;;  %v3629_v61 = vand.u32 8388607, %v8346_v58  ;;  %v3069_v37 = vsel %vm3067_vm7, %v3068_v12, %v7505_v6  ;;  %v3729_v31 = vand.u32 2139095040, %v7564_v63 }
 0x5c6   :  { %v4713_v29 = vadd.s32 4294967169, %v3626_v43  ;;  %v3630_v49 = vor.u32 8388608, %v3629_v61 }
 0x5c8   :  { %v3632_v42 = vadd.s32 1, %v4713_v29  ;;  %v3939_v19 = vpop.xlane.xlu1 %3938  ;;  %v7566_v29 = vadd.s32 %v3069_v37, %v3065_v52  ;;  %v3670_v38 = vshll.u32 %v3630_v49, 8 }
 0x5c9   :  { %v7590_v24 = vmul.f32 0.015625, %v3939_v19 }
 0x5ca   :  { %vm3633_vm9 = vcmp.gt.s32.totalorder %v3632_v42, 0  ;;  %v3071_v58 = vadd.s32 536870912, %v7566_v29 }
 0x5cb   :  { %v3634_v50 = vsel %vm3633_vm9, %v3632_v42, 0 }
 0x5cc   :  { %v3636_v33 = vand.u32 31, %v3634_v50  ;;  %v3936_v43 = vpop.xlane.xlu1 %3935  ;;  %v3946_v7 = vpop.xlane.xlu0 %3945  ;;  %v3635_v10 = vshrl.u32 %v3634_v50, 5  ;;  %v3342_v50 = vshll.u32 %v7570_v30, 23 }
 0x5cd   :  { %v7568_v13 = vmul.f32 0.015625, %v3936_v43  ;;  %v3950_v6 = vmul.f32 0.015625, %v3946_v7  ;;  %v7593_v49 = vpop.eup %5236 }
 0x5ce   :  { %v3637_v9 = vsub.s32 32, %v3636_v33  ;;  %v3639_v0 = vshll.u32 %v8348_v23, %v3636_v33  ;;  %v3642_v25 = vshll.u32 %v8370_v34, %v3636_v33  ;;  %v3645_v16 = vshll.u32 %v8371_v20, %v3636_v33 }
 0x5cf   :  { %v3952_v42 = vmul.f32 %v7568_v13, %v7568_v13  ;;  %v3648_v18 = vshll.u32 %v8362_v32, %v3636_v33  ;;  %v3651_v40 = vshll.u32 %v8351_v35, %v3636_v33  ;;  %v3336_v23 = vsub.s32 32, %v7532_v22 }
 0x5d0   :  { %v3640_v46 = vshrl.u32 %v8370_v34, %v3637_v9  ;;  %v3643_v12 = vshrl.u32 %v8371_v20, %v3637_v9  ;;  %v3646_v57 = vshrl.u32 %v8362_v32, %v3637_v9  ;;  %v3649_v36 = vshrl.u32 %v8351_v35, %v3637_v9  ;;  %v3949_v4 = vpop.xlane.xlu1 %3948 }
 0x5d1   :  { %v3954_v61 = vsub.f32 %v3950_v6, %v3952_v42  ;;  %v3652_v55 = vshrl.u32 %v8386_v62, %v3637_v9  ;;  %vm3654_vm10 = vcmp.lt.s32.totalorder %v3635_v10, 1  ;;  %vm3657_vm11 = vcmp.lt.s32.totalorder %v3635_v10, 4 }
 0x5d2   :  { %v3641_v37 = vor.u32 %v3640_v46, %v3639_v0  ;;  %v3644_v52 = vor.u32 %v3643_v12, %v3642_v25  ;;  %v3647_v43 = vor.u32 %v3646_v57, %v3645_v16  ;;  %v3650_v7 = vor.u32 %v3649_v36, %v3648_v18 }
 0x5d3   :  { %v3958_v56 = vadd.f32 1e-05, %v3954_v61  ;;  %v3653_v6 = vor.u32 %v3652_v55, %v3651_v40  ;;  %v8400_v0 = vmov 683565275   ;;  %vm3656_vm12 = vcmp.lt.s32.totalorder %v3635_v10, 3  ;;  %v7597_v40 = vpop.eup %5238 }
 0x5d4   :  { %v3638_v46 = vshrl.u32 %v8400_v0, %v3637_v9  ;;  %v3659_v33 = vsel %vm3657_vm11, %v3647_v43, 2102212464  ;;  %v3662_v12 = vsel %vm3654_vm10, %v3641_v37, %v3644_v52  ;;  %v3663_v57 = vsel %vm3657_vm11, %v3650_v7, 920167782 }
 0x5d5   :  { %5240 = vrsqrt.f32 %v3958_v56  ;;  %v3666_v42 = vsel %vm3654_vm10, %v3644_v52, %v3647_v43  ;;  %v3667_v25 = vsel %vm3657_vm11, %v3653_v6, 1326507024  ;;  %v3951_v16 = vmul.f32 0.015625, %v3949_v4 }
 0x5d6   :  { %vm3655_vm13 = vcmp.lt.s32.totalorder %v3635_v10, 2  ;;  %v3664_v36 = vsel %vm3656_vm12, %v3647_v43, %v3663_v57  ;;  %v3668_v30 = vsel %vm3656_vm12, %v3650_v7, %v3667_v25  ;;  %v3658_v19 = vsel %vm3654_vm10, %v3638_v46, %v3641_v37 }
 0x5d7   :  { %v3660_v18 = vsel %vm3656_vm12, %v3644_v52, %v3659_v33  ;;  %v3665_v55 = vsel %vm3655_vm13, %v3662_v12, %v3664_v36  ;;  %v3669_v56 = vsel %vm3655_vm13, %v3666_v42, %v3668_v30  ;;  %v7607_v43 = vshrl.u32 %v7521_v5, 5 }
 0x5d8   :  { %v7599_v9 = vmul.u32.u64.low %v3670_v38, %v3669_v56  ;;  %v7600_v61 = vmul.u32.u64.high %v3670_v38, %v3669_v56, %v7599_v9  ;;  %v7602_v35 = vmul.u32.u64.low %v3670_v38, %v3665_v55  ;;  %v7603_v1 = vmul.u32.u64.high %v3670_v38, %v3665_v55, %v7602_v35 }
 0x5d9   :  { %v7609_v7 = vand.u32 3, %v2999_v45  ;;  %v7611_v37 = vshll.u32 %v3376_v21, 8  ;;  %v3953_v52 = vmul.f32 %v7590_v24, %v7590_v24  ;;  %v3338_v4 = vshrl.u32 %v3320_v48, %v3336_v23  ;;  %v7649_v9 = vld [vmem:[%s8325_s7 + $0x7] ss:$0 sm:$0xff] }
 0x5da   :  { %v3661_v6 = vsel %vm3655_vm13, %v3658_v19, %v3660_v18  ;;  %v7616_v46 = vshrl.u32 %v3071_v58, 30  ;;  %v3730_v33 = vshrl.u32 %v3729_v31, 23  ;;  %v3337_v12 = vshll.u32 %v7479_v47, %v7532_v22 }
 0x5db   :  { %v3386_v5 = vshrl.u32 %v8370_v34, %v7561_v17  ;;  %v8402_v45 = vmov 920167782   ;;  %v3955_v21 = vsub.f32 %v3951_v16, %v3953_v52  ;;  %v3343_v42 = vor.u32 4788187, %v3342_v50 }
 0x5dc   :  { %8401 = vst [vmem:[#allocation9_spill] sm:$0xff] %v7616_v46  ;;  %v3395_v57 = vshrl.u32 %v8402_v45, %v7561_v17  ;;  %vm3679_vm14 = vc.u32 %v7600_v61, %v7602_v35  ;;  %v3680_v23 = vadd.s32 1, %v7603_v1  ;;  %v3677_v10 = vmul.u32 %v3670_v38, %v3661_v6 }
 0x5dd   :  { %v3389_v58 = vshrl.u32 %v8371_v20, %v7561_v17  ;;  %v3392_v47 = vshrl.u32 %v8362_v32, %v7561_v17  ;;  %v3394_v22 = vshll.u32 %v8362_v32, %v7537_v28  ;;  %v3339_v31 = vor.u32 %v3338_v4, %v3337_v12 }
 0x5de   :  { %v3681_v48 = vsel %vm3679_vm14, %v3680_v23, %v7603_v1  ;;  %v3073_v50 = vshll.u32 %v7616_v46, 30  ;;  %v3385_v25 = vshll.u32 %v8400_v0, %v7537_v28  ;;  %v3388_v16 = vshll.u32 %v8370_v34, %v7537_v28 }
 0x5df   :  { %v3682_v38 = vadd.s32 %v3681_v48, %v3677_v10  ;;  %v3391_v36 = vshll.u32 %v8371_v20, %v7537_v28  ;;  %v7642_v30 = vor.u32 %v3395_v57, %v3394_v22  ;;  %v4717_v19 = vadd.s32 4294967169, %v3730_v33 }
 0x5e0   :  { %v3956_v18 = vsub.f32 %v7294_v54, %v7568_v13  ;;  %v3959_v55 = vadd.f32 1e-05, %v3955_v21  ;;  %v3344_v1 = vand.u32 2147483647, %v3343_v42  ;;  %v8403_v52 = vand.u32 2147483647, %v7377_v60 }
 0x5e1   :  { %v3683_v6 = vadd.s32 536870912, %v3682_v38  ;;  %v7657_v12 = vor.u32 %v3386_v5, %v3385_v25  ;;  %v7659_v33 = vor.u32 %v3389_v58, %v3388_v16  ;;  %v7661_v54 = vor.u32 %v3392_v47, %v3391_v36  ;;  %v7671_v42 = vld [vmem:[%s8326_s8 + $0x7] ss:$0 sm:$0xff] }
 0x5e2   :  { %v5241_v56 = vpop.eup %5240  ;;  %vm7653_vm0 = vcmp.le.f32.partialorder %v8403_v52, 0.7853982  ;;  %vm3002_vm1 = vcmp.eq.s32.totalorder %v7609_v7, 0  ;;  %v3346_v57 = vcvt.s32.f32 %v3339_v31  ;;  %v7665_v21 = vsub.s32 %v7566_v29, %v3073_v50 }
 0x5e3   :  { %v3962_v13 = vmul.f32 %v5241_v56, %v3956_v18  ;;  %vm3403_vm3 = vcmp.lt.s32.totalorder %v7607_v43, 4  ;;  %v3350_v5 = vsub.s32 4, %v7467_v53  ;;  %v7674_v23 = vshrl.u32 %v3683_v6, 30 }
 0x5e4   :  { %v3397_v10 = vshll.u32 %v8402_v45, %v7537_v28  ;;  %v3409_v58 = vsel %vm3403_vm3, %v7642_v30, 920167782  ;;  %v3736_v29 = vadd.s32 1, %v4717_v19  ;;  %5242 = vrsqrt.f32 %v3959_v55 }
 0x5e5   :  { %v3970_v47 = vmul.f32 %v7649_v9, %v3962_v13  ;;  %v3347_v22 = vmul.f32 %v3346_v57, %v3344_v1  ;;  %vm3001_vm4 = vcmp.lt.s32.totalorder %v7609_v7, 2  ;;  %v3685_v31 = vshll.u32 %v7674_v23, 30 }
 0x5e6   :  { %v3398_v48 = vshrl.u32 %v8386_v62, %v7561_v17  ;;  %vm3400_vm5 = vcmp.lt.s32.totalorder %v7607_v43, 1  ;;  %vm3402_vm6 = vcmp.lt.s32.totalorder %v7607_v43, 3  ;;  %v3076_v50 = vsub.s32 0, %v7665_v21 }
 0x5e7   :  { %v7689_v28 = vadd.f32 %v7671_v42, %v3970_v47  ;;  %v3408_v25 = vsel %vm3400_vm5, %v7657_v12, %v7659_v33  ;;  %v3410_v16 = vsel %vm3402_vm6, %v7661_v54, %v3409_v58  ;;  %v3003_v36 = vxor.u32 2147483648, %v7597_v40 }
 0x5e8   :  { %v3006_v19 = vxor.u32 2147483648, %v7593_v49  ;;  %v3351_v18 = vsel %vm3266_vm15, %v3350_v5, %v7467_v53  ;;  %v7704_v55 = vsub.s32 %v3682_v38, %v3685_v31  ;;  %vm3737_vm7 = vcmp.gt.s32.totalorder %v3736_v29, 0 }
 0x5e9   :  { %v3983_v1 = vand.u32 2139095040, %v7689_v28  ;;  %v3348_v56 = vxor.u32 2147483648, %v3347_v22  ;;  %vm3401_vm8 = vcmp.lt.s32.totalorder %v7607_v43, 2  ;;  %vm3005_vm9 = vcmp.eq.s32.totalorder %v7609_v7, 2 }
 0x5ea   :  { %v3688_v52 = vsub.s32 0, %v7704_v55  ;;  %v3384_v6 = vshrl.u32 %v8400_v0, %v7561_v17  ;;  %v3411_v13 = vsel %vm3401_vm8, %v3408_v25, %v3410_v16  ;;  %v3353_v53 = vsel %vm7653_vm0, 0, %v3351_v18 }
 0x5eb   :  { %v3984_v57 = vshrl.u32 %v3983_v1, 23  ;;  %v4686_v38 = vmin.u32 %v3076_v50, %v7665_v21  ;;  %v3399_v5 = vor.u32 %v3398_v48, %v3397_v10  ;;  %v7717_v58 = vsel %vm3737_vm7, %v3736_v29, 0 }
 0x5ec   :  { %v3004_v47 = vsel %vm3002_vm1, %v7593_v49, %v3003_v36  ;;  %v3007_v31 = vsel %vm3005_vm9, %v3006_v19, %v7597_v40  ;;  %v4714_v17 = vmin.u32 %v3688_v52, %v7704_v55  ;;  %v3349_v25 = vsel %vm3266_vm15, %v3348_v56, %v3347_v22 }
 0x5ed   :  { %v4729_v8 = vadd.s32 4294967169, %v3984_v57  ;;  %v7727_v16 = vmul.u32.u64.low %v7611_v37, %v3411_v13  ;;  %v7728_v18 = vmul.u32.u64.high %v7611_v37, %v3411_v13, %v7727_v16  ;;  %v7731_v10 = vadd.s32 3, %v3353_v53 }
 0x5ee   :  { %v3690_v29 = vclz %v4714_v17  ;;  %v8355_v48 = vand.u32 2147483647, %v7689_v28  ;;  %v3405_v49 = vsel %vm3403_vm3, %v7661_v54, 2102212464  ;;  %v7739_v50 = vsel %vm3001_vm4, %v3004_v47, %v3007_v31 }
 0x5ef   :  { %v3990_v40 = vadd.s32 1, %v4729_v8  ;;  %v3078_v22 = vclz %v4686_v38  ;;  %v3413_v36 = vsel %vm3403_vm3, %v3399_v5, 1326507024  ;;  %v7744_v19 = vand.u32 31, %v7717_v58 }
 0x5f0   :  { %v3957_v1 = vsub.f32 %v7292_v11, %v7590_v24  ;;  %v3352_v56 = vsel %vm7653_vm0, %v7377_v60, %v3349_v25  ;;  %v4715_v52 = vadd.s32 4294967294, %v3690_v29  ;;  %v3404_v8 = vsel %vm3400_vm5, %v3384_v6, %v7657_v12 }
 0x5f1   :  { %vm3991_vm10 = vcmp.gt.s32.totalorder %v3990_v40, 0  ;;  %v3406_v7 = vsel %vm3402_vm6, %v7659_v33, %v3405_v49  ;;  %v3412_v13 = vsel %vm3400_vm5, %v7659_v33, %v7661_v54  ;;  %v5243_v11 = vpop.eup %5242  ;;  %v3987_v4 = vand.u32 8388607, %v8355_v48 }
 0x5f2   :  { %v3992_v24 = vsel %vm3991_vm10, %v3990_v40, 0  ;;  %vm4716_vm11 = vcmp.lt.s32.totalorder %v4715_v52, 0  ;;  %v3414_v57 = vsel %vm3402_vm6, %v7642_v30, %v3413_v36  ;;  %5244 = vcosq.f32 %v3352_v56 }
 0x5f3   :  { %v3994_v12 = vand.u32 31, %v3992_v24  ;;  %v7766_v6 = vsel %vm4716_vm11, 0, %v4715_v52  ;;  %v4687_v53 = vadd.s32 4294967294, %v3078_v22  ;;  %5246 = vsinq.f32 %v3352_v56 }
 0x5f4   :  { %v3678_v38 = vadd.s32 %v7602_v35, %v7600_v61  ;;  %v3698_v33 = vsub.s32 4294967266, %v7766_v6  ;;  %v7773_v54 = vsel %vm3401_vm8, %v3404_v8, %v3406_v7  ;;  %v3963_v5 = vmul.f32 %v5243_v11, %v3957_v1 }
 0x5f5   :  { %v3995_v47 = vsub.s32 32, %v3994_v12  ;;  %v3415_v30 = vsel %vm3401_vm8, %v3412_v13, %v3414_v57  ;;  %v3426_v31 = vadd.s32 1, %v7728_v18  ;;  %v3988_v17 = vor.u32 8388608, %v3987_v4 }
 0x5f6   :  { %v3993_v25 = vshrl.u32 %v3992_v24, 5  ;;  %v3997_v29 = vshll.u32 %v8400_v0, %v3994_v12  ;;  %v4000_v49 = vshll.u32 %v8370_v34, %v3994_v12  ;;  %v4003_v40 = vshll.u32 %v8371_v20, %v3994_v12 }
 0x5f7   :  { %v3998_v35 = vshrl.u32 %v8370_v34, %v3995_v47  ;;  %v4001_v61 = vshrl.u32 %v8371_v20, %v3995_v47  ;;  %v4004_v22 = vshrl.u32 %v8362_v32, %v3995_v47  ;;  %vm4688_vm12 = vcmp.lt.s32.totalorder %v4687_v53, 0 }
 0x5f8   :  { %v3699_v36 = vadd.s32 127, %v3698_v33  ;;  %v4006_v43 = vshll.u32 %v8362_v32, %v3994_v12  ;;  %v4007_v1 = vshrl.u32 %v8402_v45, %v3995_v47  ;;  %v4009_v56 = vshll.u32 %v8402_v45, %v3994_v12 }
 0x5f9   :  { %v3999_v52 = vor.u32 %v3998_v35, %v3997_v29  ;;  %v4002_v8 = vor.u32 %v4001_v61, %v4000_v49  ;;  %v4005_v7 = vor.u32 %v4004_v22, %v4003_v40  ;;  %v4010_v13 = vshrl.u32 %v8386_v62, %v3995_v47 }
 0x5fa   :  { %v3971_v11 = vmul.f32 %v7649_v9, %v3963_v5  ;;  %v4008_v24 = vor.u32 %v4007_v1, %v4006_v43  ;;  %v7790_v4 = vmul.u32.u64.low %v7611_v37, %v3415_v30  ;;  %v7791_v57 = vmul.u32.u64.high %v7611_v37, %v3415_v30, %v7790_v4 }
 0x5fb   :  { %v3694_v33 = vsub.s32 32, %v7766_v6  ;;  %v4011_v48 = vor.u32 %v4010_v13, %v4009_v56  ;;  %vm4012_vm13 = vcmp.lt.s32.totalorder %v3993_v25, 1  ;;  %v4028_v2 = vshll.u32 %v3988_v17, 8 }
 0x5fc   :  { %v3700_v46 = vshll.u32 %v3699_v36, 23  ;;  %vm4014_vm14 = vcmp.lt.s32.totalorder %v3993_v25, 3  ;;  %vm4015_vm15 = vcmp.lt.s32.totalorder %v3993_v25, 4  ;;  %v4020_v12 = vsel %vm4012_vm13, %v3999_v52, %v4002_v8 }
 0x5fd   :  { %v4017_v29 = vsel %vm4015_vm15, %v4005_v7, 2102212464  ;;  %v4021_v49 = vsel %vm4015_vm15, %v4008_v24, 920167782  ;;  %v4024_v35 = vsel %vm4012_vm13, %v4002_v8, %v4005_v7  ;;  %v4025_v9 = vsel %vm4015_vm15, %v4011_v48, 1326507024 }
 0x5fe   :  { %v3996_v5 = vshrl.u32 %v8400_v0, %v3995_v47  ;;  %vm4013_vm0 = vcmp.lt.s32.totalorder %v3993_v25, 2  ;;  %v4022_v30 = vsel %vm4014_vm14, %v4005_v7, %v4021_v49  ;;  %v4026_v61 = vsel %vm4014_vm14, %v4008_v24, %v4025_v9 }
 0x5ff   :  { %v7800_v40 = vadd.f32 %v7671_v42, %v3971_v11  ;;  %v3696_v17 = vshrl.u32 %v3678_v38, %v3694_v33  ;;  %v4023_v22 = vsel %vm4013_vm0, %v4020_v12, %v4022_v30  ;;  %v4027_v36 = vsel %vm4013_vm0, %v4024_v35, %v4026_v61  ;;  %v7804_v43 = vpop.eup %5244 }
 0x600   :  { %v4016_v1 = vsel %vm4012_vm13, %v3996_v5, %v3999_v52  ;;  %v4018_v48 = vsel %vm4014_vm14, %v4002_v8, %v4017_v29  ;;  %v7808_v47 = vmul.u32.u64.low %v4028_v2, %v4027_v36  ;;  %v7809_v56 = vmul.u32.u64.high %v4028_v2, %v4027_v36, %v7808_v47  ;;  %v7811_v7 = vpop.eup %5246 }
 0x601   :  { %v3695_v42 = vshll.u32 %v7704_v55, %v7766_v6  ;;  %v3701_v13 = vor.u32 4788187, %v3700_v46  ;;  %v7815_v38 = vmul.u32.u64.low %v4028_v2, %v4023_v22  ;;  %v7816_v11 = vmul.u32.u64.high %v4028_v2, %v4023_v22, %v7815_v38 }
 0x602   :  { %vm2998_vm1 = vweird.f32 %v7319_v26  ;;  %v7821_v24 = vsel %vm4688_vm12, 0, %v4687_v53  ;;  %vm3425_vm3 = vc.u32 %v7791_v57, %v7727_v16  ;;  %v4019_v8 = vsel %vm4013_vm0, %v4016_v1, %v4018_v48 }
 0x603   :  { %v3697_v52 = vor.u32 %v3696_v17, %v3695_v42  ;;  %v3423_v4 = vmul.u32 %v7611_v37, %v7773_v54  ;;  %v3427_v46 = vsel %vm3425_vm3, %v3426_v31, %v7728_v18  ;;  %v4087_v55 = vand.u32 2139095040, %v7800_v40 }
 0x604   :  { %v3009_v6 = vsel %vm2998_vm1, nan, %v7739_v50  ;;  %v7832_v26 = vand.u32 3, %v7731_v10  ;;  %vm4037_vm4 = vc.u32 %v7809_v56, %v7815_v38  ;;  %v3702_v53 = vand.u32 2147483647, %v3701_v13 }
 0x605   :  { %v4038_v33 = vadd.s32 1, %v7816_v11  ;;  %v3428_v25 = vadd.s32 %v3427_v46, %v3423_v4  ;;  %v7838_v12 = vsub.s32 32, %v7744_v19  ;;  %v4035_v37 = vmul.u32 %v4028_v2, %v4019_v8 }
 0x606   :  { %v3066_v18 = vadd.s32 %v7504_v3, %v7511_v39  ;;  %v3082_v54 = vsub.s32 32, %v7821_v24  ;;  %v3086_v50 = vsub.s32 4294967266, %v7821_v24  ;;  %v7845_v10 = vadd.f32 %v3009_v6, %v6556_v15 }
 0x607   :  { %v3704_v31 = vcvt.s32.f32 %v3697_v52  ;;  %v4039_v29 = vsel %vm4037_vm4, %v4038_v33, %v7816_v11  ;;  %v3429_v49 = vadd.s32 536870912, %v3428_v25  ;;  %v7849_v35 = vshrl.u32 %v7717_v58, 5 }
 0x608   :  { %v4088_v9 = vshrl.u32 %v4087_v55, 23  ;;  %vm3363_vm5 = vcmp.eq.s32.totalorder %v7832_v26, 2  ;;  %v4040_v2 = vadd.s32 %v4039_v29, %v4035_v37  ;;  %vm3624_vm6 = vcmp.lt.s32.totalorder %v7508_v41, 0 }
 0x609   :  { %v3705_v3 = vmul.f32 %v3704_v31, %v3702_v53  ;;  %v3083_v39 = vshll.u32 %v7665_v21, %v7821_v24  ;;  %v7855_v5 = vshrl.u32 %v3429_v49, 30  ;;  %v3756_v15 = vshrl.u32 %v8386_v62, %v7838_v12 }
 0x60a   :  { %v3364_v30 = vxor.u32 2147483648, %v7804_v43  ;;  %v4041_v61 = vadd.s32 536870912, %v4040_v2  ;;  %v3084_v58 = vshrl.u32 %v3066_v18, %v3082_v54  ;;  %v7860_v17 = vadd.s32 127, %v3086_v50 }
 0x60b   :  { %v3431_v22 = vshll.u32 %v7855_v5, 30  ;;  %v3726_v36 = vand.u32 2147483647, %v7564_v63  ;;  %v3753_v1 = vshrl.u32 %v8402_v45, %v7838_v12  ;;  %v3755_v21 = vshll.u32 %v8402_v45, %v7744_v19 }
 0x60c   :  { %v4733_v48 = vadd.s32 4294967169, %v4088_v9  ;;  %vm3360_vm7 = vcmp.eq.s32.totalorder %v7832_v26, 0  ;;  %v8406_v47 = vand.u32 2147483647, %v7508_v41  ;;  %v7875_v13 = vshrl.u32 %v4041_v61, 30 }
 0x60d   :  { %v3747_v11 = vshrl.u32 %v8371_v20, %v7838_v12  ;;  %v3750_v24 = vshrl.u32 %v8362_v32, %v7838_v12  ;;  %v3706_v52 = vxor.u32 2147483648, %v3705_v3  ;;  %v3746_v8 = vshll.u32 %v8370_v34, %v7744_v19 }
 0x60e   :  { %vm7871_vm8 = vcmp.le.f32.partialorder %v8406_v47, 0.7853982  ;;  %v3752_v4 = vshll.u32 %v8362_v32, %v7744_v19  ;;  %v3757_v46 = vor.u32 %v3756_v15, %v3755_v21  ;;  %v4043_v55 = vshll.u32 %v7875_v13, 30 }
 0x60f   :  { %v7886_v6 = vsub.s32 %v3428_v25, %v3431_v22  ;;  %v3744_v53 = vshrl.u32 %v8370_v34, %v7838_v12  ;;  %v3749_v33 = vshll.u32 %v8371_v20, %v7744_v19  ;;  %v3708_v37 = vsub.s32 4, %v7674_v23 }
 0x610   :  { %v3733_v18 = vand.u32 8388607, %v3726_v36  ;;  %v3743_v54 = vshll.u32 %v8400_v0, %v7744_v19  ;;  %v3754_v50 = vor.u32 %v3753_v1, %v3752_v4  ;;  %vm3359_vm9 = vcmp.lt.s32.totalorder %v7832_v26, 2 }
 0x611   :  { %v7898_v31 = vsub.s32 %v4040_v2, %v4043_v55  ;;  %v3748_v25 = vor.u32 %v3747_v11, %v3746_v8  ;;  %v3751_v29 = vor.u32 %v3750_v24, %v3749_v33  ;;  %vm3761_vm10 = vcmp.lt.s32.totalorder %v7849_v35, 4 }
 0x612   :  { %v4094_v49 = vadd.s32 1, %v4733_v48  ;;  %v3361_v9 = vxor.u32 2147483648, %v7811_v7  ;;  %v3365_v15 = vsel %vm3363_vm5, %v3364_v30, %v7811_v7  ;;  %v3771_v61 = vsel %vm3761_vm10, %v3757_v46, 1326507024 }
 0x613   :  { %v3707_v19 = vsel %vm3624_vm6, %v3706_v52, %v3705_v3  ;;  %v4046_v2 = vsub.s32 0, %v7898_v31  ;;  %v3434_v22 = vsub.s32 0, %v7886_v6  ;;  %v3745_v1 = vor.u32 %v3744_v53, %v3743_v54 }
 0x614   :  { %v3709_v21 = vsel %vm3624_vm6, %v3708_v37, %v7674_v23  ;;  %vm3758_vm11 = vcmp.lt.s32.totalorder %v7849_v35, 1  ;;  %vm3760_vm12 = vcmp.lt.s32.totalorder %v7849_v35, 3  ;;  %v3767_v7 = vsel %vm3761_vm10, %v3754_v50, 920167782 }
 0x615   :  { %v4730_v30 = vmin.u32 %v4046_v2, %v7898_v31  ;;  %v3734_v48 = vor.u32 8388608, %v3733_v18  ;;  %v3770_v3 = vsel %vm3758_vm11, %v3748_v25, %v3751_v29  ;;  %v3772_v47 = vsel %vm3760_vm12, %v3754_v50, %v3771_v61 }
 0x616   :  { %vm4095_vm13 = vcmp.gt.s32.totalorder %v4094_v49, 0  ;;  %v3362_v23 = vsel %vm3360_vm7, %v7804_v43, %v3361_v9  ;;  %v3710_v11 = vsel %vm7871_vm8, %v7508_v41, %v3707_v19  ;;  %vm3759_vm14 = vcmp.lt.s32.totalorder %v7849_v35, 2 }
 0x617   :  { %vm3356_vm15 = vweird.f32 %v7377_v60  ;;  %v4048_v24 = vclz %v4730_v30  ;;  %v4702_v52 = vmin.u32 %v3434_v22, %v7886_v6  ;;  %v3766_v8 = vsel %vm3758_vm11, %v3745_v1, %v3748_v25 }
 0x618   :  { %v3768_v4 = vsel %vm3760_vm12, %v3751_v29, %v3767_v7  ;;  %v3711_v43 = vsel %vm7871_vm8, 0, %v3709_v21  ;;  %v7938_v46 = vor.u32 %v3084_v58, %v3083_v39  ;;  %v3088_v55 = vshll.u32 %v7860_v17, 23 }
 0x619   :  { %v3773_v53 = vsel %vm3759_vm14, %v3770_v3, %v3772_v47  ;;  %v4096_v33 = vsel %vm4095_vm13, %v4094_v49, 0  ;;  %5248 = vcosq.f32 %v3710_v11  ;;  %v4731_v37 = vadd.s32 4294967294, %v4048_v24 }
 0x61a   :  { %v3774_v18 = vshll.u32 %v3734_v48, 8  ;;  %v3366_v54 = vsel %vm3359_vm9, %v3362_v23, %v3365_v15  ;;  %v3742_v50 = vshrl.u32 %v8400_v0, %v7838_v12  ;;  %v3763_v42 = vsel %vm3761_vm10, %v3751_v29, 2102212464 }
 0x61b   :  { %v3769_v39 = vsel %vm3759_vm14, %v3766_v8, %v3768_v4  ;;  %vm4732_vm0 = vcmp.lt.s32.totalorder %v4731_v37, 0  ;;  %v3436_v58 = vclz %v4702_v52  ;;  %v4098_v49 = vand.u32 31, %v4096_v33 }
 0x61c   :  { %v7951_v17 = vmul.u32.u64.low %v3774_v18, %v3773_v53  ;;  %v7952_v9 = vmul.u32.u64.high %v3774_v18, %v3773_v53, %v7951_v17  ;;  %v3715_v61 = vadd.s32 3, %v3711_v43  ;;  %v4036_v26 = vadd.s32 %v7815_v38, %v7809_v56 }
 0x61d   :  { %v4051_v15 = vsel %vm4732_vm0, 0, %v4731_v37  ;;  %v3762_v12 = vsel %vm3758_vm11, %v3742_v50, %v3745_v1  ;;  %v3764_v29 = vsel %vm3760_vm12, %v3748_v25, %v3763_v42  ;;  %5250 = vsinq.f32 %v3710_v11 }
 0x61e   :  { %v4052_v19 = vsub.s32 32, %v4051_v15  ;;  %v4056_v2 = vsub.s32 4294967266, %v4051_v15  ;;  %v4066_v22 = vsub.s32 4, %v7875_v13  ;;  %v4053_v30 = vshll.u32 %v7898_v31, %v4051_v15 }
 0x61f   :  { %v7961_v21 = vmul.u32.u64.low %v3774_v18, %v3769_v39  ;;  %v7962_v7 = vmul.u32.u64.high %v3774_v18, %v3769_v39, %v7961_v21  ;;  %v4703_v38 = vadd.s32 4294967294, %v3436_v58  ;;  %v7968_v3 = vsel %vm3356_vm15, nan, %v3366_v54 }
 0x620   :  { %v4054_v48 = vshrl.u32 %v4036_v26, %v4052_v19  ;;  %v4057_v56 = vadd.s32 127, %v4056_v2  ;;  %v7970_v1 = vor.u32 4788187, %v3088_v55  ;;  %v3765_v25 = vsel %vm3759_vm14, %v3762_v12, %v3764_v29 }
 0x621   :  { %v4084_v47 = vand.u32 2147483647, %v7800_v40  ;;  %vm3783_vm1 = vc.u32 %v7952_v9, %v7961_v21  ;;  %v7977_v31 = vsub.s32 32, %v4098_v49  ;;  %v7979_v24 = vand.u32 3, %v3715_v61 }
 0x622   :  { %v4055_v23 = vor.u32 %v4054_v48, %v4053_v30  ;;  %v4058_v11 = vshll.u32 %v4057_v56, 23  ;;  %v8409_v60 = vand.u32 2147483647, %v7689_v28  ;;  %vm3982_vm4 = vcmp.lt.s32.totalorder %v7689_v28, 0 }
 0x623   :  { %v3784_v35 = vadd.s32 1, %v7962_v7  ;;  %v4067_v4 = vsel %vm3982_vm4, %v4066_v22, %v7875_v13  ;;  %vm4704_vm5 = vcmp.lt.s32.totalorder %v4703_v38, 0  ;;  %v3781_v43 = vmul.u32 %v3774_v18, %v3765_v25 }
 0x624   :  { %vm7983_vm3 = vcmp.le.f32.partialorder %v8409_v60, 0.7853982  ;;  %v4059_v8 = vor.u32 4788187, %v4058_v11  ;;  %v4091_v53 = vand.u32 8388607, %v4084_v47  ;;  %v4102_v37 = vshrl.u32 %v8370_v34, %v7977_v31 }
 0x625   :  { %v3785_v55 = vsel %vm3783_vm1, %v3784_v35, %v7962_v7  ;;  %v4105_v54 = vshrl.u32 %v8371_v20, %v7977_v31  ;;  %v4062_v42 = vcvt.s32.f32 %v4055_v23  ;;  %v4101_v58 = vshll.u32 %v8400_v0, %v4098_v49 }
 0x626   :  { %v4060_v50 = vand.u32 2147483647, %v4059_v8  ;;  %v3786_v39 = vadd.s32 %v3785_v55, %v3781_v43  ;;  %v5249_v17 = vpop.eup %5248  ;;  %v4104_v13 = vshll.u32 %v8370_v34, %v4098_v49  ;;  %v4108_v18 = vshrl.u32 %v8362_v32, %v7977_v31 }
 0x627   :  { %v4110_v61 = vshll.u32 %v8362_v32, %v4098_v49  ;;  %v4111_v26 = vshrl.u32 %v8402_v45, %v7977_v31  ;;  %vm3721_vm6 = vcmp.eq.s32.totalorder %v7979_v24, 2  ;;  %v8007_v2 = vshrl.u32 %v4096_v33, 5 }
 0x628   :  { %v4063_v15 = vmul.f32 %v4062_v42, %v4060_v50  ;;  %v3787_v19 = vadd.s32 536870912, %v3786_v39  ;;  %v4107_v12 = vshll.u32 %v8371_v20, %v4098_v49  ;;  %v4103_v29 = vor.u32 %v4102_v37, %v4101_v58 }
 0x629   :  { %v4106_v22 = vor.u32 %v4105_v54, %v4104_v13  ;;  %v4112_v7 = vor.u32 %v4111_v26, %v4110_v61  ;;  %v4114_v30 = vshrl.u32 %v8386_v62, %v7977_v31  ;;  %v3722_v48 = vxor.u32 2147483648, %v5249_v17 }
 0x62a   :  { %v4064_v56 = vxor.u32 2147483648, %v4063_v15  ;;  %v4069_v25 = vsel %vm7983_vm3, 0, %v4067_v4  ;;  %v8014_v23 = vshrl.u32 %v3787_v19, 30  ;;  %v8017_v11 = vsel %vm4704_vm5, 0, %v4703_v38  ;;  %v5251_v8 = vpop.eup %5250 }
 0x62b   :  { %v4092_v33 = vor.u32 8388608, %v4091_v53  ;;  %v4109_v60 = vor.u32 %v4108_v18, %v4107_v12  ;;  %v4113_v35 = vshll.u32 %v8402_v45, %v4098_v49  ;;  %vm4116_vm7 = vcmp.lt.s32.totalorder %v8007_v2, 1 }
 0x62c   :  { %v4065_v43 = vsel %vm3982_vm4, %v4064_v56, %v4063_v15  ;;  %v3789_v55 = vshll.u32 %v8014_v23, 30  ;;  %vm4119_vm8 = vcmp.lt.s32.totalorder %v8007_v2, 4  ;;  %v4124_v53 = vsel %vm4116_vm7, %v4103_v29, %v4106_v22 }
 0x62d   :  { %v4068_v4 = vsel %vm7983_vm3, %v7689_v28, %v4065_v43  ;;  %v4115_v38 = vor.u32 %v4114_v30, %v4113_v35  ;;  %v4125_v49 = vsel %vm4119_vm8, %v4112_v7, 920167782  ;;  %v3444_v37 = vsub.s32 4294967266, %v8017_v11 }
 0x62e   :  { %5252 = vcosq.f32 %v4068_v4  ;;  %v8033_v54 = vsub.s32 %v3786_v39, %v3789_v55  ;;  %vm4118_vm9 = vcmp.lt.s32.totalorder %v8007_v2, 3  ;;  %v4073_v50 = vadd.s32 3, %v4069_v25 }
 0x62f   :  { %5254 = vsinq.f32 %v4068_v4  ;;  %vm4117_vm10 = vcmp.lt.s32.totalorder %v8007_v2, 2  ;;  %v4126_v52 = vsel %vm4118_vm9, %v4109_v60, %v4125_v49  ;;  %v3719_v42 = vxor.u32 2147483648, %v5251_v8 }
 0x630   :  { %v3792_v58 = vsub.s32 0, %v8033_v54  ;;  %v4127_v13 = vsel %vm4117_vm10, %v4124_v53, %v4126_v52  ;;  %v4128_v18 = vsel %vm4116_vm7, %v4106_v22, %v4109_v60  ;;  %vm3718_vm11 = vcmp.eq.s32.totalorder %v7979_v24, 0 }
 0x631   :  { %v3723_v39 = vsel %vm3721_vm6, %v3722_v48, %v5251_v8  ;;  %v4129_v61 = vsel %vm4119_vm8, %v4115_v38, 1326507024  ;;  %v4132_v26 = vshll.u32 %v4092_v33, 8  ;;  %v3445_v15 = vadd.s32 127, %v3444_v37 }
 0x632   :  { %v4718_v19 = vmin.u32 %v3792_v58, %v8033_v54  ;;  %v4121_v12 = vsel %vm4119_vm8, %v4109_v60, 2102212464  ;;  %v4130_v30 = vsel %vm4118_vm9, %v4112_v7, %v4129_v61  ;;  %v4100_v56 = vshrl.u32 %v8400_v0, %v7977_v31 }
 0x633   :  { %v4131_v25 = vsel %vm4117_vm10, %v4128_v18, %v4130_v30  ;;  %v8058_v48 = vmul.u32.u64.low %v4132_v26, %v4127_v13  ;;  %v8059_v35 = vmul.u32.u64.high %v4132_v26, %v4127_v13, %v8058_v48  ;;  %v3720_v33 = vsel %vm3718_vm11, %v5249_v17, %v3719_v42 }
 0x634   :  { %v4074_v8 = vand.u32 3, %v4073_v50  ;;  %v3440_v43 = vsub.s32 32, %v8017_v11  ;;  %v3794_v55 = vclz %v4718_v19  ;;  %v4120_v60 = vsel %vm4116_vm7, %v4100_v56, %v4103_v29 }
 0x635   :  { %v4122_v7 = vsel %vm4118_vm9, %v4106_v22, %v4121_v12  ;;  %v8067_v4 = vmul.u32.u64.low %v4132_v26, %v4131_v25  ;;  %v8068_v31 = vmul.u32.u64.high %v4132_v26, %v4131_v25, %v8067_v4  ;;  %vm3714_vm12 = vweird.f32 %v7508_v41 }
 0x636   :  { %vm3717_vm13 = vcmp.lt.s32.totalorder %v7979_v24, 2  ;;  %v3092_v38 = vcvt.s32.f32 %v7938_v46  ;;  %v4719_v17 = vadd.s32 4294967294, %v3794_v55  ;;  %v3424_v49 = vadd.s32 %v7727_v16, %v7791_v57 }
 0x637   :  { %v3724_v53 = vsel %vm3717_vm13, %v3720_v33, %v3723_v39  ;;  %v3446_v37 = vshll.u32 %v3445_v15, 23  ;;  %v4142_v29 = vadd.s32 1, %v8059_v35  ;;  %v3472_v22 = vadd.f32 %v7968_v3, %v6929_v59 }
 0x638   :  { %v3090_v50 = vand.u32 2147483647, %v7970_v1  ;;  %vm4720_vm14 = vcmp.lt.s32.totalorder %v4719_v17, 0  ;;  %v4123_v52 = vsel %vm4117_vm10, %v4120_v60, %v4122_v7  ;;  %vm4075_vm15 = vcmp.lt.s32.totalorder %v4074_v8, 2 }
 0x639   :  { %v3442_v24 = vshrl.u32 %v3424_v49, %v3440_v43  ;;  %v3797_v46 = vsel %vm4720_vm14, 0, %v4719_v17  ;;  %vm4141_vm0 = vc.u32 %v8068_v31, %v8058_v48  ;;  %v3725_v16 = vsel %vm3714_vm12, nan, %v3724_v53 }
 0x63a   :  { %v3782_v57 = vadd.s32 %v7961_v21, %v7952_v9  ;;  %v3798_v42 = vsub.s32 32, %v3797_v46  ;;  %v3802_v59 = vsub.s32 4294967266, %v3797_v46  ;;  %v3441_v1 = vshll.u32 %v7886_v6, %v8017_v11 }
 0x63b   :  { %v5253_v3 = vpop.eup %5252  ;;  %v3447_v2 = vor.u32 4788187, %v3446_v37  ;;  %v4139_v58 = vmul.u32 %v4132_v26, %v4123_v52  ;;  %v4143_v13 = vsel %vm4141_vm0, %v4142_v29, %v8059_v35  ;;  %vm4079_vm1 = vcmp.eq.s32.totalorder %v4074_v8, 2 }
 0x63c   :  { %v5255_v18 = vpop.eup %5254  ;;  %v4080_v39 = vxor.u32 2147483648, %v5253_v3  ;;  %v3800_v61 = vshrl.u32 %v3782_v57, %v3798_v42  ;;  %v3803_v15 = vadd.s32 127, %v3802_v59  ;;  %v3443_v19 = vor.u32 %v3442_v24, %v3441_v1 }
 0x63d   :  { %v4077_v41 = vxor.u32 2147483648, %v5255_v18  ;;  %v3799_v12 = vshll.u32 %v8033_v54, %v3797_v46  ;;  %v4144_v9 = vadd.s32 %v4143_v13, %v4139_v58  ;;  %v3830_v21 = vadd.f32 %v3725_v16, %v7168_v27 }
 0x63e   :  { %vm4076_vm3 = vcmp.eq.s32.totalorder %v4074_v8, 0  ;;  %v4081_v30 = vsel %vm4079_vm1, %v4080_v39, %v5255_v18  ;;  %v3804_v56 = vshll.u32 %v3803_v15, 23  ;;  %v3448_v11 = vand.u32 2147483647, %v3447_v2 }
 0x63f   :  { %v4078_v6 = vsel %vm4076_vm3, %v5253_v3, %v4077_v41  ;;  %v3801_v26 = vor.u32 %v3800_v61, %v3799_v12  ;;  %v4145_v25 = vadd.s32 536870912, %v4144_v9  ;;  %vm4072_vm4 = vweird.f32 %v7689_v28 }
 0x640   :  { %v4082_v35 = vsel %vm4075_vm15, %v4078_v6, %v4081_v30  ;;  %v4190_v33 = vadd.f32 %v3472_v22, %v7845_v10  ;;  %v3805_v43 = vor.u32 4788187, %v3804_v56  ;;  %v3093_v60 = vmul.f32 %v3092_v38, %v3090_v50  ;;  %v8420_v30 = vld [vmem:[#allocation9_spill] sm:$0xff] }
 0x641   :  { %v4083_v55 = vsel %vm4072_vm4, nan, %v4082_v35  ;;  %v3450_v54 = vcvt.s32.f32 %v3443_v19  ;;  %v8095_v7 = vshrl.u32 %v4145_v25, 30  ;;  %v3808_v49 = vcvt.s32.f32 %v3801_v26 }
 0x642   :  { %v4188_v27 = vadd.f32 %v4083_v55, %v7222_v44  ;;  %v4192_v4 = vadd.f32 %v4190_v33, %v3830_v21  ;;  %v3806_v17 = vand.u32 2147483647, %v3805_v43  ;;  %v3094_v28 = vxor.u32 2147483648, %v3093_v60 }
 0x643   :  { %v3451_v53 = vmul.f32 %v3450_v54, %v3448_v11  ;;  %v4147_v37 = vshll.u32 %v8095_v7, 30  ;;  %vm3012_vm5 = vcmp.lt.s32.totalorder %v7365_v14, 0  ;;  %vm3370_vm6 = vcmp.lt.s32.totalorder %v7397_v51, 0 }
 0x644   :  { %v4194_v29 = vadd.f32 %v4192_v4, %v4188_v27  ;;  %v3809_v8 = vmul.f32 %v3808_v49, %v3806_v17  ;;  %v3095_v50 = vsel %vm3012_vm5, %v3094_v28, %v3093_v60  ;;  %v8412_v57 = vand.u32 2147483647, %v7365_v14 }
 0x645   :  { %v4148_v52 = vsub.s32 %v4144_v9, %v4147_v37  ;;  %v3452_v10 = vxor.u32 2147483648, %v3451_v53  ;;  %vm3728_vm8 = vcmp.lt.s32.totalorder %v7564_v63, 0  ;;  %v8415_v58 = vand.u32 2147483647, %v7397_v51 }
 0x646   :  { %v8099_v24 = vmul.f32 0.25, %v4194_v29  ;;  %v3810_v46 = vxor.u32 2147483648, %v3809_v8  ;;  %vm8111_vm7 = vcmp.le.f32.partialorder %v8412_v57, 0.7853982  ;;  %vm8135_vm10 = vcmp.le.f32.partialorder %v3726_v36, 0.7853982 }
 0x647   :  { %v4150_v22 = vsub.s32 0, %v4148_v52  ;;  %v3453_v59 = vsel %vm3370_vm6, %v3452_v10, %v3451_v53  ;;  %v3098_v1 = vsel %vm8111_vm7, %v7365_v14, %v3095_v50  ;;  %vm8124_vm9 = vcmp.le.f32.partialorder %v8415_v58, 0.7853982 }
 0x648   :  { %v4200_v38 = vsel %vm260_vm2, %v8099_v24, 0.0  ;;  %v4208_v44 = vmul.f32 %v8099_v24, %v8099_v24  ;;  %v3811_v18 = vsel %vm3728_vm8, %v3810_v46, %v3809_v8  ;;  %v3456_v61 = vsel %vm8124_vm9, %v7397_v51, %v3453_v59 }
 0x649   :  { %4201 = vadd.xlane.f32.xlu0 %v4200_v38  ;;  %v4734_v16 = vmin.u32 %v4150_v22, %v4148_v52  ;;  %5256 = vcosq.f32 %v3098_v1  ;;  %v3814_v41 = vsel %vm8135_vm10, %v7564_v63, %v3811_v18  ;;  %v4140_v12 = vadd.s32 %v8058_v48, %v8068_v31  ;;  %v4457_v22 = vld [vmem:[%s8329_s11 + $0x18] sm:$0xff] }
 0x64a   :  { %v4210_v2 = vsel %vm260_vm2, %v4208_v44, 0.0  ;;  %5258 = vsinq.f32 %v3098_v1  ;;  %v3096_v56 = vsub.s32 4, %v8420_v30  ;;  %v3454_v36 = vsub.s32 4, %v7855_v5 }
 0x64b   :  { %v4152_v3 = vclz %v4734_v16  ;;  %5260 = vcosq.f32 %v3456_v61  ;;  %v3812_v25 = vsub.s32 4, %v8014_v23  ;;  %vm4086_vm12 = vcmp.lt.s32.totalorder %v7800_v40, 0 }
 0x64c   :  { %5262 = vsinq.f32 %v3456_v61  ;;  %v3097_v48 = vsel %vm3012_vm5, %v3096_v56, %v8420_v30  ;;  %v3455_v31 = vsel %vm3370_vm6, %v3454_v36, %v7855_v5  ;;  %vm8166_vm13 = vcmp.le.f32.partialorder %v4084_v47, 0.7853982 }
 0x64d   :  { %v4735_v39 = vadd.s32 4294967294, %v4152_v3  ;;  %4211 = vadd.xlane.f32.xlu0 %v4210_v2  ;;  %5264 = vcosq.f32 %v3814_v41  ;;  %v3099_v55 = vsel %vm8111_vm7, 0, %v3097_v48  ;;  %v3813_v60 = vsel %vm3728_vm8, %v3812_v25, %v8014_v23  ;;  %v8424_v48 = vld [vmem:[#allocation6_spill] sm:$0xff] }
 0x64e   :  { %5266 = vsinq.f32 %v3814_v41  ;;  %v3457_v4 = vsel %vm8124_vm9, 0, %v3455_v31  ;;  %v3103_v49 = vadd.s32 3, %v3099_v55  ;;  %v3815_v37 = vsel %vm8135_vm10, 0, %v3813_v60  ;;  %v8425_v60 = vld [vmem:[#allocation7_spill] sm:$0xff] }
 0x64f   :  { %vm4736_vm11 = vcmp.lt.s32.totalorder %v4735_v39, 0  ;;  %v3461_v29 = vadd.s32 3, %v3457_v4  ;;  %v3819_v10 = vadd.s32 3, %v3815_v37  ;;  %vm3102_vm8 = vweird.f32 %v7365_v14 }
 0x650   :  { %v4155_v19 = vsel %vm4736_vm11, 0, %v4735_v39  ;;  %v3104_v50 = vand.u32 3, %v3103_v49  ;;  %vm3460_vm9 = vweird.f32 %v7397_v51  ;;  %vm3818_vm10 = vweird.f32 %v7564_v63 }
 0x651   :  { %v4156_v9 = vsub.s32 32, %v4155_v19  ;;  %v4160_v21 = vsub.s32 4294967266, %v4155_v19  ;;  %v4157_v6 = vshll.u32 %v4148_v52, %v4155_v19  ;;  %v4170_v52 = vsub.s32 4, %v8095_v7 }
 0x652   :  { %v3462_v59 = vand.u32 3, %v3461_v29  ;;  %v3820_v2 = vand.u32 3, %v3819_v10  ;;  %vm3106_vm14 = vcmp.eq.s32.totalorder %v3104_v50, 0  ;;  %vm3109_vm15 = vcmp.eq.s32.totalorder %v3104_v50, 2  ;;  %v4458_v10 = vld [vmem:[%s8329_s11 + $0x20] sm:$0xff] }
 0x653   :  { %v4158_v11 = vshrl.u32 %v4140_v12, %v4156_v9  ;;  %v4161_v26 = vadd.s32 127, %v4160_v21  ;;  %v4171_v47 = vsel %vm4086_vm12, %v4170_v52, %v8095_v7  ;;  %vm3105_vm3 = vcmp.lt.s32.totalorder %v3104_v50, 2  ;;  %v4460_v52 = vld [vmem:[%s8329_s11 + $0x30] sm:$0xff]  ;;  %v4454_v50 = vld [vmem:[%s8329_s11] sm:$0xff] }
 0x654   :  { %vm3464_vm0 = vcmp.eq.s32.totalorder %v3462_v59, 0  ;;  %vm3467_vm1 = vcmp.eq.s32.totalorder %v3462_v59, 2  ;;  %v4173_v18 = vsel %vm8166_vm13, 0, %v4171_v47  ;;  %vm3822_vm4 = vcmp.eq.s32.totalorder %v3820_v2, 0 }
 0x655   :  { %v4159_v35 = vor.u32 %v4158_v11, %v4157_v6  ;;  %v4162_v33 = vshll.u32 %v4161_v26, 23  ;;  %vm3825_vm5 = vcmp.eq.s32.totalorder %v3820_v2, 2  ;;  %vm3463_vm6 = vcmp.lt.s32.totalorder %v3462_v59, 2 }
 0x656   :  { %v5257_v53 = vpop.eup %5256  ;;  %v4177_v12 = vadd.s32 3, %v4173_v18  ;;  %vm3821_vm7 = vcmp.lt.s32.totalorder %v3820_v2, 2  ;;  %v8228_v18 = vld [vmem:[%s8328_s10] ss:$0 sm:$0xff] }
 0x657   :  { %v4163_v43 = vor.u32 4788187, %v4162_v33  ;;  %v4166_v27 = vcvt.s32.f32 %v4159_v35  ;;  %v5259_v5 = vpop.eup %5258  ;;  %v3110_v42 = vxor.u32 2147483648, %v5257_v53  ;;  %v8423_v35 = vld [vmem:[#allocation5_spill] sm:$0xff] }
 0x658   :  { %v5261_v8 = vpop.eup %5260  ;;  %v3107_v57 = vxor.u32 2147483648, %v5259_v5  ;;  %v4178_v6 = vand.u32 3, %v4177_v12 }
 0x659   :  { %v4164_v54 = vand.u32 2147483647, %v4163_v43  ;;  %v5263_v23 = vpop.eup %5262  ;;  %v3468_v1 = vxor.u32 2147483648, %v5261_v8  ;;  %v3111_v61 = vsel %vm3109_vm15, %v3110_v42, %v5259_v5 }
 0x65a   :  { %v5265_v44 = vpop.eup %5264  ;;  %v3465_v3 = vxor.u32 2147483648, %v5263_v23  ;;  %v3108_v39 = vsel %vm3106_vm14, %v5257_v53, %v3107_v57  ;;  %vm4183_vm11 = vcmp.eq.s32.totalorder %v4178_v6, 2  ;;  %vm4176_vm14 = vweird.f32 %v7800_v40 }
 0x65b   :  { %v4167_v17 = vmul.f32 %v4166_v27, %v4164_v54  ;;  %v5267_v16 = vpop.eup %5266  ;;  %v3826_v13 = vxor.u32 2147483648, %v5265_v44  ;;  %v3469_v41 = vsel %vm3467_vm1, %v3468_v1, %v5263_v23  ;;  %v3112_v9 = vsel %vm3105_vm3, %v3108_v39, %v3111_v61  ;;  %v4459_v23 = vld [vmem:[%s8329_s11 + $0x28] sm:$0xff] }
 0x65c   :  { %v3823_v58 = vxor.u32 2147483648, %v5267_v16  ;;  %v3466_v15 = vsel %vm3464_vm0, %v5261_v8, %v3465_v3  ;;  %v3113_v56 = vsel %vm3102_vm8, nan, %v3112_v9 }
 0x65d   :  { %v4168_v28 = vxor.u32 2147483648, %v4167_v17  ;;  %v3827_v19 = vsel %vm3825_vm5, %v3826_v13, %v5267_v16  ;;  %v3470_v21 = vsel %vm3463_vm6, %v3466_v15, %v3469_v41  ;;  %v3115_v33 = vadd.f32 %v3113_v56, %v8423_v35 }
 0x65e   :  { %v3824_v7 = vsel %vm3822_vm4, %v5265_v44, %v3823_v58  ;;  %v3471_v36 = vsel %vm3460_vm9, nan, %v3470_v21  ;;  %v4455_v44 = vld [vmem:[%s8329_s11 + $0x8] sm:$0xff]  ;;  %v8223_v58 = vld [vmem:[%s8327_s9] ss:$0 sm:$0xff] }
 0x65f   :  { %v4169_v38 = vsel %vm4086_vm12, %v4168_v28, %v4167_v17  ;;  %v3828_v30 = vsel %vm3821_vm7, %v3824_v7, %v3827_v19  ;;  %v3473_v31 = vadd.f32 %v3471_v36, %v8424_v48  ;;  %vm4180_vm12 = vcmp.eq.s32.totalorder %v4178_v6, 0  ;;  %v8426_v17 = vld [vmem:[#allocation8_spill] sm:$0xff] }
 0x660   :  { %v4172_v46 = vsel %vm8166_vm13, %v7800_v40, %v4169_v38  ;;  %v3829_v26 = vsel %vm3818_vm10, nan, %v3828_v30  ;;  %vm4179_vm13 = vcmp.lt.s32.totalorder %v4178_v6, 2  ;;  %v4461_v40 = vld [vmem:[%s8329_s11 + $0x38] sm:$0xff]  ;;  %v4456_v38 = vld [vmem:[%s8329_s11 + $0x10] sm:$0xff] }
 0x661   :  { %5268 = vcosq.f32 %v4172_v46  ;;  %v3831_v14 = vadd.f32 %v3829_v26, %v8425_v60  ;;  %v4191_v63 = vadd.f32 %v3473_v31, %v3115_v33  ;;  %4992 = vmatprep.subr.mxu0 %v4461_v40 }
 0x662   :  { %5270 = vsinq.f32 %v4172_v46  ;;  %4993 = vmatpush3.msra.mxu0 %v4461_v40 }
 0x663   :  { %v4193_v49 = vadd.f32 %v4191_v63, %v3831_v14  ;;  %4994 = vmatprep.subr.mxu0 %v4460_v52 }
 0x664   :  { %4995 = vmatpush3.msra.mxu0 %v4460_v52 }
 0x665   :  { %4996 = vmatprep.subr.mxu0 %v4459_v23 }
 0x666   :  { %4997 = vmatpush3.msra.mxu0 %v4459_v23 }
 0x667   :  { %4998 = vmatprep.subr.mxu0 %v4458_v10 }
 0x668   :  { %4999 = vmatpush3.msra.mxu0 %v4458_v10 }
 0x669   :  { %5000 = vmatprep.subr.mxu0 %v4457_v22 }
 0x66a   :  { %5001 = vmatpush3.msra.mxu0 %v4457_v22 }
 0x66b   :  { %5002 = vmatprep.subr.mxu0 %v4456_v38 }
 0x66c   :  { %5003 = vmatpush3.msra.mxu0 %v4456_v38 }
 0x66d   :  { %5004 = vmatprep.subr.mxu0 %v4455_v44 }
 0x66e   :  { %v5269_v11 = vpop.eup %5268  ;;  %5005 = vmatpush3.msra.mxu0 %v4455_v44 }
 0x66f   :  { %v5271_v25 = vpop.eup %5270  ;;  %v4184_v43 = vxor.u32 2147483648, %v5269_v11  ;;  %5006 = vmatprep.subr.mxu0 %v4454_v50 }
 0x670   :  { %v4181_v55 = vxor.u32 2147483648, %v5271_v25  ;;  %5007 = vmatpush3.msra.mxu0 %v4454_v50 }
 0x671   :  { %v4185_v51 = vsel %vm4183_vm11, %v4184_v43, %v5271_v25 }
 0x672   :  { %v4182_v54 = vsel %vm4180_vm12, %v5269_v11, %v4181_v55 }
 0x673   :  { %v4186_v27 = vsel %vm4179_vm13, %v4182_v54, %v4185_v51 }
 0x674   :  { %v4187_v4 = vsel %vm4176_vm14, nan, %v4186_v27 }
 0x675   :  { %v4189_v53 = vadd.f32 %v4187_v4, %v8426_v17 }
 0x677   :  { %v4195_v37 = vadd.f32 %v4193_v49, %v4189_v53 }
 0x679   :  { %v8188_v5 = vmul.f32 0.25, %v4195_v37 }
 0x67b   :  { %v4203_v29 = vsel %vm260_vm2, %v8188_v5, 0.0  ;;  %v4209_v28 = vmul.f32 %v8188_v5, %v8188_v5 }
 0x67c   :  { %4204 = vadd.xlane.f32.xlu1 %v4203_v29 }
 0x67d   :  { %v4213_v8 = vsel %vm260_vm2, %v4209_v28, 0.0 }
 0x680   :  { %4214 = vadd.xlane.f32.xlu1 %v4213_v8 }
 0x6d2   :  { %v4202_v46 = vpop.xlane.xlu0 %4201 }
 0x6d3   :  { %v4206_v16 = vmul.f32 0.015625, %v4202_v46 }
 0x6d5   :  { %v4218_v42 = vmul.f32 %v4206_v16, %v4206_v16  ;;  %v4222_v47 = vsub.f32 %v8099_v24, %v4206_v16 }
 0x6d6   :  { %v4212_v57 = vpop.xlane.xlu0 %4211 }
 0x6d7   :  { %v4216_v59 = vmul.f32 0.015625, %v4212_v57 }
 0x6d9   :  { %v4220_v3 = vsub.f32 %v4216_v59, %v4218_v42 }
 0x6db   :  { %v4224_v1 = vadd.f32 1e-05, %v4220_v3 }
 0x6dd   :  { %5272 = vrsqrt.f32 %v4224_v1 }
 0x6ea   :  { %v5273_v2 = vpop.eup %5272 }
 0x6eb   :  { %v4228_v13 = vmul.f32 %v5273_v2, %v4222_v47 }
 0x6ed   :  { %v4236_v39 = vmul.f32 %v8223_v58, %v4228_v13 }
 0x6ef   :  { %v8232_v61 = vadd.f32 %v8228_v18, %v4236_v39 }
 0x6f1   :  { %v4249_v15 = vand.u32 2139095040, %v8232_v61  ;;  %v4246_v7 = vand.u32 2147483647, %v8232_v61  ;;  %vm4248_vm7 = vcmp.lt.s32.totalorder %v8232_v61, 0 }
 0x6f3   :  { %v4250_v24 = vshrl.u32 %v4249_v15, 23  ;;  %v4253_v12 = vand.u32 8388607, %v4246_v7  ;;  %vm8269_vm9 = vcmp.le.f32.partialorder %v4246_v7, 0.7853982 }
 0x6f5   :  { %v4739_v41 = vadd.s32 4294967169, %v4250_v24  ;;  %v4254_v56 = vor.u32 8388608, %v4253_v12 }
 0x6f7   :  { %v4256_v19 = vadd.s32 1, %v4739_v41  ;;  %v4294_v29 = vshll.u32 %v4254_v56, 8 }
 0x6f9   :  { %vm4257_vm15 = vcmp.gt.s32.totalorder %v4256_v19, 0 }
 0x6fa   :  { %v4258_v9 = vsel %vm4257_vm15, %v4256_v19, 0 }
 0x6fb   :  { %v4260_v21 = vand.u32 31, %v4258_v9  ;;  %v4259_v36 = vshrl.u32 %v4258_v9, 5 }
 0x6fd   :  { %v4261_v30 = vsub.s32 32, %v4260_v21  ;;  %v4263_v6 = vshll.u32 %v8400_v0, %v4260_v21  ;;  %v4266_v11 = vshll.u32 %v8370_v34, %v4260_v21  ;;  %v4269_v35 = vshll.u32 %v8371_v20, %v4260_v21 }
 0x6fe   :  { %v4272_v48 = vshll.u32 %v8362_v32, %v4260_v21  ;;  %v4275_v43 = vshll.u32 %v8402_v45, %v4260_v21  ;;  %vm4278_vm0 = vcmp.lt.s32.totalorder %v4259_v36, 1  ;;  %vm4281_vm1 = vcmp.lt.s32.totalorder %v4259_v36, 4 }
 0x6ff   :  { %v4264_v26 = vshrl.u32 %v8370_v34, %v4261_v30  ;;  %v4267_v25 = vshrl.u32 %v8371_v20, %v4261_v30  ;;  %v4270_v33 = vshrl.u32 %v8362_v32, %v4261_v30  ;;  %v4273_v31 = vshrl.u32 %v8402_v45, %v4261_v30 }
 0x700   :  { %v4276_v55 = vshrl.u32 %v8386_v62, %v4261_v30  ;;  %v4262_v63 = vshrl.u32 %v8400_v0, %v4261_v30  ;;  %vm4280_vm3 = vcmp.lt.s32.totalorder %v4259_v36, 3  ;;  %vm4279_vm4 = vcmp.lt.s32.totalorder %v4259_v36, 2 }
 0x701   :  { %v4265_v60 = vor.u32 %v4264_v26, %v4263_v6  ;;  %v4268_v14 = vor.u32 %v4267_v25, %v4266_v11  ;;  %v4271_v51 = vor.u32 %v4270_v33, %v4269_v35  ;;  %v4274_v54 = vor.u32 %v4273_v31, %v4272_v48 }
 0x702   :  { %v4277_v27 = vor.u32 %v4276_v55, %v4275_v43 }
 0x703   :  { %v4283_v4 = vsel %vm4281_vm1, %v4271_v51, 2102212464  ;;  %v4286_v17 = vsel %vm4278_vm0, %v4265_v60, %v4268_v14  ;;  %v4290_v53 = vsel %vm4278_vm0, %v4268_v14, %v4271_v51  ;;  %v4287_v49 = vsel %vm4281_vm1, %v4274_v54, 920167782 }
 0x704   :  { %v4291_v37 = vsel %vm4281_vm1, %v4277_v27, 1326507024  ;;  %v4282_v8 = vsel %vm4278_vm0, %v4262_v63, %v4265_v60  ;;  %v4288_v40 = vsel %vm4280_vm3, %v4271_v51, %v4287_v49  ;;  %v4284_v10 = vsel %vm4280_vm3, %v4268_v14, %v4283_v4 }
 0x705   :  { %v4205_v28 = vpop.xlane.xlu1 %4204  ;;  %v4292_v52 = vsel %vm4280_vm3, %v4274_v54, %v4291_v37  ;;  %v4289_v22 = vsel %vm4279_vm4, %v4286_v17, %v4288_v40  ;;  %v4285_v42 = vsel %vm4279_vm4, %v4282_v8, %v4284_v10  ;;  %vm4338_vm3 = vweird.f32 %v8232_v61 }
 0x706   :  { %v4207_v23 = vmul.f32 0.015625, %v4205_v28  ;;  %v4293_v38 = vsel %vm4279_vm4, %v4290_v53, %v4292_v52  ;;  %v8252_v46 = vmul.u32.u64.low %v4294_v29, %v4289_v22  ;;  %v8253_v16 = vmul.u32.u64.high %v4294_v29, %v4289_v22, %v8252_v46 }
 0x707   :  { %v8249_v44 = vmul.u32.u64.low %v4294_v29, %v4293_v38  ;;  %v8250_v50 = vmul.u32.u64.high %v4294_v29, %v4293_v38, %v8249_v44  ;;  %v4301_v2 = vmul.u32 %v4294_v29, %v4285_v42 }
 0x708   :  { %v4219_v59 = vmul.f32 %v4207_v23, %v4207_v23  ;;  %v4304_v1 = vadd.s32 1, %v8253_v16  ;;  %v4223_v30 = vsub.f32 %v8188_v5, %v4207_v23 }
 0x709   :  { %v4215_v57 = vpop.xlane.xlu1 %4214  ;;  %vm4303_vm5 = vc.u32 %v8250_v50, %v8252_v46  ;;  %v4302_v33 = vadd.s32 %v8252_v46, %v8250_v50 }
 0x70a   :  { %v4217_v3 = vmul.f32 0.015625, %v4215_v57  ;;  %v4305_v13 = vsel %vm4303_vm5, %v4304_v1, %v8253_v16 }
 0x70b   :  { %v4306_v15 = vadd.s32 %v4305_v13, %v4301_v2 }
 0x70c   :  { %v4221_v47 = vsub.f32 %v4217_v3, %v4219_v59 }
 0x70d   :  { %v4307_v24 = vadd.s32 536870912, %v4306_v15 }
 0x70e   :  { %v4225_v39 = vadd.f32 1e-05, %v4221_v47 }
 0x70f   :  { %v4308_v41 = vshrl.u32 %v4307_v24, 30 }
 0x710   :  { %5274 = vrsqrt.f32 %v4225_v39 }
 0x711   :  { %v4309_v19 = vshll.u32 %v4308_v41, 30  ;;  %v4332_v63 = vsub.s32 4, %v4308_v41 }
 0x713   :  { %v4310_v12 = vsub.s32 %v4306_v15, %v4309_v19  ;;  %v4333_v37 = vsel %vm4248_vm7, %v4332_v63, %v4308_v41 }
 0x714   :  { %v4335_v52 = vsel %vm8269_vm9, 0, %v4333_v37 }
 0x715   :  { %v4312_v9 = vsub.s32 0, %v4310_v12  ;;  %v4339_v2 = vadd.s32 3, %v4335_v52 }
 0x717   :  { %v4740_v21 = vmin.u32 %v4312_v9, %v4310_v12 }
 0x719   :  { %v4314_v56 = vclz %v4740_v21 }
 0x71b   :  { %v4741_v11 = vadd.s32 4294967294, %v4314_v56 }
 0x71d   :  { %v5275_v36 = vpop.eup %5274  ;;  %vm4742_vm6 = vcmp.lt.s32.totalorder %v4741_v11, 0 }
 0x71e   :  { %v4229_v6 = vmul.f32 %v5275_v36, %v4223_v30  ;;  %v4317_v25 = vsel %vm4742_vm6, 0, %v4741_v11 }
 0x71f   :  { %v4318_v48 = vsub.s32 32, %v4317_v25  ;;  %v4322_v31 = vsub.s32 4294967266, %v4317_v25  ;;  %v4319_v43 = vshll.u32 %v4310_v12, %v4317_v25 }
 0x720   :  { %v4237_v26 = vmul.f32 %v8223_v58, %v4229_v6 }
 0x721   :  { %v4320_v55 = vshrl.u32 %v4302_v33, %v4318_v48  ;;  %v4323_v60 = vadd.s32 127, %v4322_v31  ;;  %v4340_v31 = vand.u32 3, %v4339_v2 }
 0x722   :  { %v8261_v35 = vadd.f32 %v8228_v18, %v4237_v26 }
 0x723   :  { %v4321_v14 = vor.u32 %v4320_v55, %v4319_v43  ;;  %v4324_v51 = vshll.u32 %v4323_v60, 23  ;;  %vm4345_vm15 = vcmp.eq.s32.totalorder %v4340_v31, 2  ;;  %vm4342_vm0 = vcmp.eq.s32.totalorder %v4340_v31, 0 }
 0x724   :  { %v4353_v5 = vand.u32 2139095040, %v8261_v35  ;;  %v4350_v18 = vand.u32 2147483647, %v8261_v35  ;;  %vm4341_vm1 = vcmp.lt.s32.totalorder %v4340_v31, 2  ;;  %vm4352_vm5 = vcmp.lt.s32.totalorder %v8261_v35, 0 }
 0x725   :  { %v4325_v27 = vor.u32 4788187, %v4324_v51  ;;  %v4328_v17 = vcvt.s32.f32 %v4321_v14 }
 0x726   :  { %v4354_v54 = vshrl.u32 %v4353_v5, 23  ;;  %v4357_v23 = vand.u32 8388607, %v4350_v18  ;;  %vm4351_vm6 = vcmp.le.f32.partialorder %v4350_v18, 0.7853982 }
 0x727   :  { %v4326_v4 = vand.u32 2147483647, %v4325_v27 }
 0x728   :  { %v4743_v58 = vadd.s32 4294967169, %v4354_v54  ;;  %v4358_v13 = vor.u32 8388608, %v4357_v23 }
 0x729   :  { %v4329_v49 = vmul.f32 %v4328_v17, %v4326_v4 }
 0x72a   :  { %v4360_v53 = vadd.s32 1, %v4743_v58  ;;  %v4398_v30 = vshll.u32 %v4358_v13, 8 }
 0x72b   :  { %v4330_v8 = vxor.u32 2147483648, %v4329_v49 }
 0x72c   :  { %vm4361_vm8 = vcmp.gt.s32.totalorder %v4360_v53, 0 }
 0x72d   :  { %v4362_v29 = vsel %vm4361_vm8, %v4360_v53, 0  ;;  %v4331_v10 = vsel %vm4248_vm7, %v4330_v8, %v4329_v49 }
 0x72e   :  { %v4364_v40 = vand.u32 31, %v4362_v29  ;;  %v4363_v22 = vshrl.u32 %v4362_v29, 5  ;;  %v4334_v7 = vsel %vm8269_vm9, %v8232_v61, %v4331_v10 }
 0x72f   :  { %5276 = vcosq.f32 %v4334_v7 }
 0x730   :  { %v4365_v38 = vsub.s32 32, %v4364_v40  ;;  %v4367_v44 = vshll.u32 %v8400_v0, %v4364_v40  ;;  %v4370_v50 = vshll.u32 %v8370_v34, %v4364_v40  ;;  %v4373_v46 = vshll.u32 %v8371_v20, %v4364_v40 }
 0x731   :  { %v4376_v16 = vshll.u32 %v8362_v32, %v4364_v40  ;;  %v4379_v59 = vshll.u32 %v8402_v45, %v4364_v40  ;;  %5278 = vsinq.f32 %v4334_v7  ;;  %vm4382_vm10 = vcmp.lt.s32.totalorder %v4363_v22, 1 }
 0x732   :  { %v4368_v57 = vshrl.u32 %v8370_v34, %v4365_v38  ;;  %v4371_v42 = vshrl.u32 %v8371_v20, %v4365_v38  ;;  %v4374_v3 = vshrl.u32 %v8362_v32, %v4365_v38  ;;  %v4377_v1 = vshrl.u32 %v8402_v45, %v4365_v38 }
 0x733   :  { %v4380_v47 = vshrl.u32 %v8386_v62, %v4365_v38  ;;  %v4366_v34 = vshrl.u32 %v8400_v0, %v4365_v38  ;;  %vm4384_vm11 = vcmp.lt.s32.totalorder %v4363_v22, 3  ;;  %vm4385_vm12 = vcmp.lt.s32.totalorder %v4363_v22, 4 }
 0x734   :  { %v4369_v39 = vor.u32 %v4368_v57, %v4367_v44  ;;  %v4372_v15 = vor.u32 %v4371_v42, %v4370_v50  ;;  %v4375_v24 = vor.u32 %v4374_v3, %v4373_v46  ;;  %v4378_v41 = vor.u32 %v4377_v1, %v4376_v16 }
 0x735   :  { %v4381_v19 = vor.u32 %v4380_v47, %v4379_v59  ;;  %vm4383_vm13 = vcmp.lt.s32.totalorder %v4363_v22, 2 }
 0x736   :  { %v4390_v20 = vsel %vm4382_vm10, %v4369_v39, %v4372_v15  ;;  %v4387_v12 = vsel %vm4385_vm12, %v4375_v24, 2102212464  ;;  %v4391_v9 = vsel %vm4385_vm12, %v4378_v41, 920167782  ;;  %v4394_v32 = vsel %vm4382_vm10, %v4372_v15, %v4375_v24 }
 0x737   :  { %v4395_v21 = vsel %vm4385_vm12, %v4381_v19, 1326507024  ;;  %v4392_v45 = vsel %vm4384_vm11, %v4375_v24, %v4391_v9  ;;  %v4386_v56 = vsel %vm4382_vm10, %v4366_v34, %v4369_v39  ;;  %v4388_v36 = vsel %vm4384_vm11, %v4372_v15, %v4387_v12 }
 0x738   :  { %v4396_v62 = vsel %vm4384_vm11, %v4378_v41, %v4395_v21  ;;  %v4393_v6 = vsel %vm4383_vm13, %v4390_v20, %v4392_v45  ;;  %v4389_v48 = vsel %vm4383_vm13, %v4386_v56, %v4388_v36  ;;  %vm4442_vm10 = vweird.f32 %v8261_v35  ;;  %v4747_v21 = vld [vmem:[%s8330_s12] ss:$0 sm:$0xff] }
 0x739   :  { %v4397_v11 = vsel %vm4383_vm13, %v4394_v32, %v4396_v62  ;;  %v8294_v33 = vmul.u32.u64.low %v4398_v30, %v4393_v6  ;;  %v8295_v0 = vmul.u32.u64.high %v4398_v30, %v4393_v6, %v8294_v33  ;;  %v4405_v60 = vmul.u32 %v4398_v30, %v4389_v48 }
 0x73a   :  { %v8291_v26 = vmul.u32.u64.low %v4398_v30, %v4397_v11  ;;  %v8292_v25 = vmul.u32.u64.high %v4398_v30, %v4397_v11, %v8291_v26  ;;  %vm4550_vm11 = vcmask 15360  }
 0x73b   :  { %v4408_v43 = vadd.s32 1, %v8295_v0 }
 0x73c   :  { %vm4407_vm14 = vc.u32 %v8292_v25, %v8294_v33  ;;  %v5277_v55 = vpop.eup %5276  ;;  %v4406_v10 = vadd.s32 %v8294_v33, %v8292_v25 }
 0x73d   :  { %v4346_v14 = vxor.u32 2147483648, %v5277_v55  ;;  %v4409_v51 = vsel %vm4407_vm14, %v4408_v43, %v8295_v0 }
 0x73e   :  { %v5279_v5 = vpop.eup %5278  ;;  %v4410_v27 = vadd.s32 %v4409_v51, %v4405_v60 }
 0x73f   :  { %v4343_v54 = vxor.u32 2147483648, %v5279_v5  ;;  %v4347_v63 = vsel %vm4345_vm15, %v4346_v14, %v5279_v5 }
 0x740   :  { %v4411_v4 = vadd.s32 536870912, %v4410_v27 }
 0x741   :  { %v4344_v58 = vsel %vm4342_vm0, %v5277_v55, %v4343_v54 }
 0x742   :  { %v4348_v17 = vsel %vm4341_vm1, %v4344_v58, %v4347_v63  ;;  %v4412_v49 = vshrl.u32 %v4411_v4, 30 }
 0x743   :  { %v4349_v53 = vsel %vm4338_vm3, nan, %v4348_v17 }
 0x744   :  { %5008 = vmatprep.mubr.msk.f32.mxu0 %vm260_vm2, %v4349_v53  ;;  %v4413_v37 = vshll.u32 %v4412_v49, 30  ;;  %v4436_v1 = vsub.s32 4, %v4412_v49 }
 0x746   :  { %v4414_v29 = vsub.s32 %v4410_v27, %v4413_v37  ;;  %v4437_v13 = vsel %vm4352_vm5, %v4436_v1, %v4412_v49 }
 0x747   :  { %v4439_v39 = vsel %vm4351_vm6, 0, %v4437_v13 }
 0x748   :  { %v4416_v28 = vsub.s32 0, %v4414_v29  ;;  %v4443_v15 = vadd.s32 3, %v4439_v39 }
 0x74a   :  { %v4744_v8 = vmin.u32 %v4416_v28, %v4414_v29  ;;  %v4444_v24 = vand.u32 3, %v4443_v15 }
 0x74c   :  { %v4418_v40 = vclz %v4744_v8  ;;  %vm4449_vm7 = vcmp.eq.s32.totalorder %v4444_v24, 2  ;;  %vm4446_vm8 = vcmp.eq.s32.totalorder %v4444_v24, 0  ;;  %vm4445_vm9 = vcmp.lt.s32.totalorder %v4444_v24, 2 }
 0x74e   :  { %v4745_v52 = vadd.s32 4294967294, %v4418_v40 }
 0x750   :  { %vm4746_vm4 = vcmp.lt.s32.totalorder %v4745_v52, 0 }
 0x751   :  { %v4421_v23 = vsel %vm4746_vm4, 0, %v4745_v52 }
 0x752   :  { %v4422_v22 = vsub.s32 32, %v4421_v23  ;;  %v4426_v38 = vsub.s32 4294967266, %v4421_v23  ;;  %v4423_v44 = vshll.u32 %v4414_v29, %v4421_v23 }
 0x754   :  { %v4424_v7 = vshrl.u32 %v4406_v10, %v4422_v22  ;;  %v4427_v61 = vadd.s32 127, %v4426_v38 }
 0x756   :  { %v4425_v50 = vor.u32 %v4424_v7, %v4423_v44  ;;  %v4428_v46 = vshll.u32 %v4427_v61, 23 }
 0x758   :  { %v4429_v16 = vor.u32 4788187, %v4428_v46  ;;  %v4432_v42 = vcvt.s32.f32 %v4425_v50 }
 0x75a   :  { %v4430_v57 = vand.u32 2147483647, %v4429_v16 }
 0x75c   :  { %v4433_v59 = vmul.f32 %v4432_v42, %v4430_v57 }
 0x75e   :  { %v4434_v3 = vxor.u32 2147483648, %v4433_v59 }
 0x760   :  { %v4435_v47 = vsel %vm4352_vm5, %v4434_v3, %v4433_v59 }
 0x761   :  { %v4438_v2 = vsel %vm4351_vm6, %v8261_v35, %v4435_v47 }
 0x762   :  { %5280 = vcosq.f32 %v4438_v2 }
 0x763   :  { %5282 = vsinq.f32 %v4438_v2 }
 0x76f   :  { %v5281_v41 = vpop.eup %5280 }
 0x770   :  { %v5283_v19 = vpop.eup %5282  ;;  %v4450_v34 = vxor.u32 2147483648, %v5281_v41 }
 0x771   :  { %v4447_v20 = vxor.u32 2147483648, %v5283_v19 }
 0x772   :  { %v4451_v12 = vsel %vm4449_vm7, %v4450_v34, %v5283_v19 }
 0x773   :  { %v4448_v9 = vsel %vm4446_vm8, %v5281_v41, %v4447_v20 }
 0x774   :  { %v4452_v18 = vsel %vm4445_vm9, %v4448_v9, %v4451_v12 }
 0x775   :  { %v4453_v32 = vsel %vm4442_vm10, nan, %v4452_v18 }
 0x776   :  { %5009 = vmatmul.mubr.msk.f32.vlgmr.msra.gmra.mxu0 %vm260_vm2, %v4453_v32 }
 0x836   :  { %v5010_v45 = vpop.f32.mrf.mxu0 }
 0x837   :  { %v4547_v62 = vadd.f32 %v5010_v45, %v4747_v21 }
 0x838   :  { %v4541_v30 = vpop.f32.mrf.mxu0 }
 0x839   :  { %4552 = vst.msk [vmem:[%s8331_s13 + $0x8] sm:$0xff] %vm4550_vm11, %v4547_v62  ;;  %v4542_v56 = vadd.f32 %v4747_v21, %v4541_v30 }
 0x83b   :  { %4551 = vst.msk [vmem:[%s8331_s13] sm:$0xff] %vm4550_vm11, %v4542_v56 }
 0x83c   :  { %4557 = vsyncpa [#allocation3], 1 }

</bundles_post_ra>
